<compile_context>
chip_gen: v7x
topology: tpu7x:2x2x1
jax: 0.10.0
libtpu: 0.0.40
codegen_flags: <defaults>
</compile_context>

<pallas_src>
import math

import jax
import jax.numpy as jnp
from jax.experimental import pallas as pl
from jax.experimental.pallas import tpu as pltpu

# ----------------------------- synthetic config -----------------------------
N_IMGS = 2              # batch
C_FEAT = 16             # feature channels
HF = WF = 16            # feature map spatial size
STRIDE = 4              # feature stride -> image is 64x64
IMG_H, IMG_W = HF * STRIDE, WF * STRIDE
R_PER_IMG = 8           # proposals per image
POOLER_RES = 4          # ROI_BOX_HEAD.POOLER_RESOLUTION
SAMPLING_RATIO = 2      # ROI_BOX_HEAD.POOLER_SAMPLING_RATIO
FC_DIM = 64             # box_head fc dim (2 FC layers)
D_IN = C_FEAT * POOLER_RES * POOLER_RES

SEEN_IDS = (0, 2, 4, 6)     # cfg.DATASETS.SEEN_IDS   -> base head, K=4
UNSEEN_IDS = (1, 3, 5)      # cfg.DATASETS.UNSEEN_IDS -> novel head, K=3
K_BASE = len(SEEN_IDS)
K_NOVEL = len(UNSEEN_IDS)

SCORE_THRESH = 0.05
NMS_THRESH = 0.5
MAX_DET_PER_IMG = 10
TOPK_CAND = 256         # NMS candidate cap BEFORE building the pairwise IOU matrix

BBOX_REG_WEIGHTS = (10.0, 10.0, 5.0, 5.0)
SCALE_CLAMP = math.log(1000.0 / 16.0)

# ----------------------- fused-kernel column layout --------------------------
LANES = 128             # lane-dense output width
FC2 = 2 * FC_DIM        # both branches' hidden dims packed block-diagonally (=128)
BLK = 16                # width of each column block
CLS_BASE_OFF = 0        # base cls logits (K_BASE+1)  at cols [0, 5)
CLS_NOVEL_OFF = 8       # novel cls logits (K_NOVEL+1) at cols [8, 12)
DX_OFF = 16             # dx block (dw in the second 128-lane half, same offsets)
DY_OFF = 32             # dy block (dh in the second 128-lane half, same offsets)
NOVEL_COL0 = 8          # novel classes' offset inside each 16-wide block


def _default_tile_r():
    """ROI tile height: 128 on v5e (128-wide MXU), 256 on v6e/v7x (256-wide MXU)."""
    try:
        kind = jax.devices()[0].device_kind.lower()
    except Exception:
        return 128
    return 128 if "v5" in kind else 256


TILE_R = _default_tile_r()


# ------------------- Pallas kernel: both heads + predictors + deltas ---------
def _fused_heads_kernel(x_ref, boxes_ref, w1_ref, b1_ref, w2_ref, b2_ref,
                        wp_ref, bp_ref, probs_ref, boxlo_ref, boxhi_ref):
    f32 = jnp.float32
    bf16 = jnp.bfloat16

    # ---- box_head: fc1/fc2 (+ReLU) for BOTH branches via block-diag weights ----
    h = jnp.dot(x_ref[...], w1_ref[...], preferred_element_type=f32) + b1_ref[...]
    h = jnp.maximum(h, 0.0)
    h = jnp.dot(h.astype(bf16), w2_ref[...], preferred_element_type=f32) + b2_ref[...]
    h = jnp.maximum(h, 0.0)

    # ---- box_predictor: cls + bbox for both branches in one 256-wide matmul ----
    # TODO(synk): on v5e a 128-lane repack (dw/dh rolled onto dx/dy cols via
    # pltpu.roll) would halve the predictor vmatmul passes; keep the 256-lane
    # layout here since it is pass-count-neutral on v6e/v7x.
    raw = jnp.dot(h.astype(bf16), wp_ref[...], preferred_element_type=f32) + bp_ref[...]
    a = raw[:, :LANES]        # cls logits | dx | dy   (first 128 lanes)
    b = raw[:, LANES:]        # dw | dh at the SAME block offsets (second 128 lanes)

    col = jax.lax.broadcasted_iota(jnp.int32, (1, LANES), 1)
    in_x = (col >= DX_OFF) & (col < DX_OFF + BLK)
    in_y = (col >= DY_OFF) & (col < DY_OFF + BLK)
    base_cls = (col >= CLS_BASE_OFF) & (col < CLS_BASE_OFF + K_BASE + 1)
    novel_cls = (col >= CLS_NOVEL_OFF) & (col < CLS_NOVEL_OFF + K_NOVEL + 1)
    cls_mask = base_cls | novel_cls

    # ---- single-pass dual softmax (incl. background col per branch) -----------
    # One exp over the union of both branches' logit lanes: per-lane max selected
    # with a where, masked lanes pushed to -1e30 so exp underflows to exactly 0.
    neg = jnp.float32(-1e30)
    m_base = jnp.max(jnp.where(base_cls, a, neg), axis=-1, keepdims=True)
    m_novel = jnp.max(jnp.where(novel_cls, a, neg), axis=-1, keepdims=True)
    m_col = jnp.where(base_cls, m_base, m_novel)
    e = jnp.exp(jnp.where(cls_mask, a - m_col, neg))       # ONE exp pass
    s_base = jnp.sum(jnp.where(base_cls, e, 0.0), axis=-1, keepdims=True)
    s_novel = jnp.sum(e, axis=-1, keepdims=True) - s_base
    inv_col = jnp.where(base_cls, pl.reciprocal(s_base, approx=True),
                        pl.reciprocal(s_novel, approx=True))
    probs_ref[...] = e * inv_col

    # ---- Box2BoxTransform.apply_deltas, fused (elementwise + exp) --------------
    bx = boxes_ref[...]                                   # (TILE_R, 4) proposal xyxy
    widths = bx[:, 2:3] - bx[:, 0:1]
    heights = bx[:, 3:4] - bx[:, 1:2]
    ctr_x = bx[:, 0:1] + 0.5 * widths
    ctr_y = bx[:, 1:2] + 0.5 * heights

    wx, wy, ww, wh = BBOX_REG_WEIGHTS
    inv_a = jnp.where(in_x, 1.0 / wx, 0.0) + jnp.where(in_y, 1.0 / wy, 0.0)
    inv_b = jnp.where(in_x, 1.0 / ww, 0.0) + jnp.where(in_y, 1.0 / wh, 0.0)
    size_col = jnp.where(in_x, widths, heights)           # (TILE_R, 128)
    ctr_col = jnp.where(in_x, ctr_x, 0.0) + jnp.where(in_y, ctr_y, 0.0)

    centers = (a * inv_a) * size_col + ctr_col            # pcx in dx cols, pcy in dy cols
    sizes = jnp.exp(jnp.minimum(b * inv_b, SCALE_CLAMP)) * size_col   # pw / ph
    boxlo_ref[...] = centers - 0.5 * sizes                # x1 (dx cols) / y1 (dy cols)
    boxhi_ref[...] = centers + 0.5 * sizes                # x2 (dx cols) / y2 (dy cols)


# --------------------------- weight packing (once) ---------------------------
def pack_params(params_base, params_novel):
    """Pack both branches into block-diagonal / lane-padded fused weights."""
    f32, bf16 = jnp.float32, jnp.bfloat16

    # fc1: concat along the output dim; rows permuted so the kernel consumes the
    # NHWC-flattened pooled features directly (no NCHW transpose of activations).
    idx = jnp.arange(D_IN)
    c = idx % C_FEAT
    pyx = idx // C_FEAT
    py, px = pyx // POOLER_RES, pyx % POOLER_RES
    perm = c * POOLER_RES * POOLER_RES + py * POOLER_RES + px
    w1 = jnp.concatenate([params_base["w1"], params_novel["w1"]], axis=1)[perm]
    b1 = jnp.concatenate([params_base["b1"], params_novel["b1"]], axis=1)

    # fc2: block diagonal so the two branches stay independent inside one matmul.
    w2 = jnp.zeros((FC2, FC2), f32)
    w2 = w2.at[:FC_DIM, :FC_DIM].set(params_base["w2"])
    w2 = w2.at[FC_DIM:, FC_DIM:].set(params_novel["w2"])
    b2 = jnp.concatenate([params_base["b2"], params_novel["b2"]], axis=1)

    # predictor: one (128, 256) weight. First 128 lanes: cls | dx | dy blocks,
    # second 128 lanes: dw | dh at the same block offsets.
    wp = jnp.zeros((FC2, 2 * LANES), f32)
    bp = jnp.zeros((1, 2 * LANES), f32)

    def place(wp, bp, prm, row_sl, k, col0, cls_off):
        wp = wp.at[row_sl, cls_off:cls_off + k + 1].set(prm["wc"])
        bp = bp.at[:, cls_off:cls_off + k + 1].set(prm["bc"])
        wb, bb = prm["wb"], prm["bb"]          # torch layout: [k*4 + (dx,dy,dw,dh)]
        for j, dest in enumerate((DX_OFF + col0, DY_OFF + col0,
                                  LANES + DX_OFF + col0, LANES + DY_OFF + col0)):
            wp = wp.at[row_sl, dest:dest + k].set(wb[:, j::4])
            bp = bp.at[:, dest:dest + k].set(bb[:, j::4])
        return wp, bp

    wp, bp = place(wp, bp, params_base, slice(0, FC_DIM), K_BASE, 0, CLS_BASE_OFF)
    wp, bp = place(wp, bp, params_novel, slice(FC_DIM, FC2), K_NOVEL,
                   NOVEL_COL0, CLS_NOVEL_OFF)

    return {"w1": w1.astype(bf16), "b1": b1.astype(f32),
            "w2": w2.astype(bf16), "b2": b2.astype(f32),
            "wp": wp.astype(bf16), "bp": bp.astype(f32)}


def run_fused_heads(x, boxes, packed, tile_r=TILE_R):
    """One Pallas call, tiled over ROIs: heads, predictors, softmax, apply_deltas."""
    r = x.shape[0]
    n_blk = pl.cdiv(r, tile_r)
    r_pad = n_blk * tile_r
    x = x.astype(jnp.bfloat16)                 # no-op if roi_align already emitted bf16
    boxes = boxes.astype(jnp.float32)
    if r_pad != r:                             # pad ROI dim to the tile multiple
        x = jnp.pad(x, ((0, r_pad - r), (0, 0)))
        boxes = jnp.pad(boxes, ((0, r_pad - r), (0, 0)))

    flops = 2 * r_pad * (D_IN * FC2 + FC2 * FC2 + FC2 * 2 * LANES)
    bytes_accessed = (r_pad * D_IN * 2 + r_pad * 4 * 4
                      + D_IN * FC2 * 2 + FC2 * FC2 * 2 + FC2 * 2 * LANES * 2
                      + (2 * FC2 + 2 * LANES) * 4 + 3 * r_pad * LANES * 4)

    row = lambda i: (i, 0)        # ROI-tiled arrays follow the grid
    whole = lambda i: (0, 0)      # weights/biases: constant block -> VMEM resident

    probs, boxlo, boxhi = pl.pallas_call(
        _fused_heads_kernel,
        out_shape=(jax.ShapeDtypeStruct((r_pad, LANES), jnp.float32),
                   jax.ShapeDtypeStruct((r_pad, LANES), jnp.float32),
                   jax.ShapeDtypeStruct((r_pad, LANES), jnp.float32)),
        grid=(n_blk,),
        in_specs=[pl.BlockSpec((tile_r, D_IN), row),        # pooled activations
                  pl.BlockSpec((tile_r, 4), row),           # proposal boxes
                  pl.BlockSpec((D_IN, FC2), whole),         # w1 (resident)
                  pl.BlockSpec((1, FC2), whole),            # b1
                  pl.BlockSpec((FC2, FC2), whole),          # w2
                  pl.BlockSpec((1, FC2), whole),            # b2
                  pl.BlockSpec((FC2, 2 * LANES), whole),    # wp
                  pl.BlockSpec((1, 2 * LANES), whole)],     # bp
        out_specs=(pl.BlockSpec((tile_r, LANES), row),
                   pl.BlockSpec((tile_r, LANES), row),
                   pl.BlockSpec((tile_r, LANES), row)),
        compiler_params=pltpu.CompilerParams(
            dimension_semantics=("parallel",)),              # v7x: split ROI axis over 2 TCs
        cost_estimate=pl.CostEstimate(flops=flops,
                                      transcendentals=2 * r_pad * LANES,
                                      bytes_accessed=bytes_accessed),
    )(x, boxes, packed["w1"], packed["b1"], packed["w2"], packed["b2"],
      packed["wp"], packed["bp"])

    probs, boxlo, boxhi = probs[:r], boxlo[:r], boxhi[:r]

    def branch(col0, cls_off, k):
        scores = probs[:, cls_off:cls_off + k]                 # drop background col
        x1 = boxlo[:, DX_OFF + col0:DX_OFF + col0 + k]
        y1 = boxlo[:, DY_OFF + col0:DY_OFF + col0 + k]
        x2 = boxhi[:, DX_OFF + col0:DX_OFF + col0 + k]
        y2 = boxhi[:, DY_OFF + col0:DY_OFF + col0 + k]
        return scores, jnp.stack([x1, y1, x2, y2], axis=-1)    # (R,k), (R,k,4)

    sb, pb = branch(0, CLS_BASE_OFF, K_BASE)
    sn, pn = branch(NOVEL_COL0, CLS_NOVEL_OFF, K_NOVEL)
    return sb, pb, sn, pn


# ------------------------------ JAX glue: ROIAlign ---------------------------
# TODO(synk): ROIAlign is a data-dependent bilinear gather; kept in plain JAX.
# At realistic FPN sizes, fuse it into the Pallas call via PrefetchScalarGridSpec
# (scalar-prefetch per-ROI batch/bin indices + make_async_copy row gather into a
# VMEM scratch sized against v7x's 64 MiB VMEM) to kill the pooled-tensor HBM
# round trip.  Pooled output is emitted bf16 directly so the intermediate is
# half the HBM bytes of an f32 materialization.
def roi_align(feat_nhwc, boxes, batch_idx, spatial_scale, out_size, sampling_ratio):
    nf, hf, wf, c = feat_nhwc.shape
    r = boxes.shape[0]
    p, s = out_size, sampling_ratio
    # aligned=True (ROIAlignV2): half-pixel offset
    x1 = boxes[:, 0] * spatial_scale - 0.5
    y1 = boxes[:, 1] * spatial_scale - 0.5
    x2 = boxes[:, 2] * spatial_scale - 0.5
    y2 = boxes[:, 3] * spatial_scale - 0.5
    bin_w = (x2 - x1) / p
    bin_h = (y2 - y1) / p
    grid = jnp.arange(p, dtype=jnp.float32)[:, None] + \
        (jnp.arange(s, dtype=jnp.float32)[None, :] + 0.5) / s          # (P, S)
    ys = y1[:, None, None] + grid[None] * bin_h[:, None, None]          # (R,P,S)
    xs = x1[:, None, None] + grid[None] * bin_w[:, None, None]          # (R,P,S)
    Y = jnp.broadcast_to(ys[:, :, :, None, None], (r, p, s, p, s))
    X = jnp.broadcast_to(xs[:, None, None, :, :], (r, p, s, p, s))
    inside = (Y >= -1.0) & (Y <= hf) & (X >= -1.0) & (X <= wf)
    Yc = jnp.clip(Y, 0.0, hf - 1.0)
    Xc = jnp.clip(X, 0.0, wf - 1.0)
    y0 = jnp.floor(Yc).astype(jnp.int32)
    x0 = jnp.floor(Xc).astype(jnp.int32)
    y1i = jnp.minimum(y0 + 1, hf - 1)
    x1i = jnp.minimum(x0 + 1, wf - 1)
    ly = Yc - y0.astype(jnp.float32)
    lx = Xc - x0.astype(jnp.float32)
    hy, hx = 1.0 - ly, 1.0 - lx
    b = jnp.broadcast_to(batch_idx[:, None, None, None, None], (r, p, s, p, s))
    f00 = feat_nhwc[b, y0, x0]
    f01 = feat_nhwc[b, y0, x1i]
    f10 = feat_nhwc[b, y1i, x0]
    f11 = feat_nhwc[b, y1i, x1i]
    val = (f00 * (hy * hx)[..., None] + f01 * (hy * lx)[..., None] +
           f10 * (ly * hx)[..., None] + f11 * (ly * lx)[..., None])
    val = jnp.where(inside[..., None], val, 0.0)
    # mean over sampling points, cast to bf16 in the reduction epilogue so the
    # pooled intermediate never materializes in f32.
    return val.mean(axis=(2, 4)).astype(jnp.bfloat16)   # (R, Py, Px, C) -- NHWC pooled


# ----------------- JAX glue: score filter + class-wise greedy NMS ------------
def _pairwise_iou(a, b):
    area_a = (a[:, 2] - a[:, 0]) * (a[:, 3] - a[:, 1])
    area_b = (b[:, 2] - b[:, 0]) * (b[:, 3] - b[:, 1])
    lt = jnp.maximum(a[:, None, :2], b[None, :, :2])
    rb = jnp.minimum(a[:, None, 2:], b[None, :, 2:])
    wh = jnp.clip(rb - lt, 0.0)
    inter = wh[..., 0] * wh[..., 1]
    union = area_a[:, None] + area_b[None, :] - inter
    return jnp.where(union > 0, inter / union, 0.0)


# TODO(synk): dynamic-shape score filtering + torchvision batched_nms is done as
# a fixed-size padded/masked greedy loop (lax.fori_loop), vmapped over images.
def _greedy_nms(boxes, scores, classes, valid):
    m = boxes.shape[0]
    offset_boxes = boxes + classes.astype(jnp.float32)[:, None] * 10000.0
    iou = _pairwise_iou(offset_boxes, offset_boxes)
    arange_m = jnp.arange(m)

    def body(t, carry):
        remaining, idxs, oks = carry
        s = jnp.where(remaining, scores, -jnp.inf)
        i = jnp.argmax(s)
        ok = s[i] > -jnp.inf
        suppress = iou[i] > NMS_THRESH
        remaining = remaining & jnp.logical_not(suppress) & (arange_m != i)
        return remaining, idxs.at[t].set(i.astype(jnp.int32)), oks.at[t].set(ok)

    init = (valid,
            jnp.zeros((MAX_DET_PER_IMG,), jnp.int32),
            jnp.zeros((MAX_DET_PER_IMG,), jnp.bool_))
    _, idxs, oks = jax.lax.fori_loop(0, MAX_DET_PER_IMG, body, init)
    return idxs, oks


def _per_image_inference(pred_boxes, scores, k):
    """pred_boxes: (R, K, 4), scores: (R, K). Returns padded detections."""
    h_img, w_img = float(IMG_H), float(IMG_W)
    boxes = jnp.stack(
        [jnp.clip(pred_boxes[..., 0], 0.0, w_img),
         jnp.clip(pred_boxes[..., 1], 0.0, h_img),
         jnp.clip(pred_boxes[..., 2], 0.0, w_img),
         jnp.clip(pred_boxes[..., 3], 0.0, h_img)], axis=-1)
    r = boxes.shape[0]
    cand_boxes = boxes.reshape(r * k, 4)
    cand_scores = scores.reshape(r * k)
    cand_classes = jnp.tile(jnp.arange(k, dtype=jnp.int32), r)

    # Score threshold + fixed top-K candidate pre-selection BEFORE building the
    # pairwise IOU matrix: IOU cost goes from (R*K)^2 to TOPK_CAND^2.
    m = min(TOPK_CAND, r * k)
    masked_scores = jnp.where(cand_scores > SCORE_THRESH, cand_scores, -jnp.inf)
    sel_scores, sel_idx = jax.lax.top_k(masked_scores, m)
    sel_boxes = cand_boxes[sel_idx]
    sel_classes = cand_classes[sel_idx]
    sel_valid = sel_scores > SCORE_THRESH

    keep_idx, keep_ok = _greedy_nms(sel_boxes, sel_scores, sel_classes, sel_valid)
    out_scores = jnp.where(keep_ok, sel_scores[keep_idx], 0.0)
    return (sel_boxes[keep_idx], out_scores, sel_classes[keep_idx], keep_ok)


def _branch_inference(pred_boxes, scores, k, class_map, n, r):
    pbs = pred_boxes.reshape(n, r, k, 4)
    scs = scores.reshape(n, r, k)
    b, s, cls, ok = jax.vmap(lambda bb, ss: _per_image_inference(bb, ss, k))(pbs, scs)
    mapped = jnp.where(ok, class_map[cls], -1)            # seen/unseen remap
    return b, s, mapped, ok


# ------------------------- ParallelStandardROIHeads --------------------------
def parallel_roi_heads_inference(features_nchw, proposal_boxes, packed, seen, unseen):
    n, c, hf, wf = features_nchw.shape
    r = proposal_boxes.shape[1]
    boxes_flat = proposal_boxes.reshape(n * r, 4)
    batch_idx = jnp.repeat(jnp.arange(n, dtype=jnp.int32), r)
    # TODO(synk): a real pipeline should keep features NHWC end-to-end; we take
    # NCHW at the module boundary (torch convention) and transpose once.
    feat_nhwc = jnp.transpose(features_nchw, (0, 2, 3, 1))

    pooled = roi_align(feat_nhwc, boxes_flat, batch_idx,
                       1.0 / STRIDE, POOLER_RES, SAMPLING_RATIO)   # (NR, P, P, C) bf16
    x = pooled.reshape(n * r, -1)      # NHWC flatten; fc1 rows were permuted to match

    sb, pb, sn, pn = run_fused_heads(x, boxes_flat, packed)        # single Pallas call

    bb, scb, cb, vb = _branch_inference(pb, sb, K_BASE, seen, n, r)
    bn, scn, cn, vn = _branch_inference(pn, sn, K_NOVEL, unseen, n, r)

    # TODO(synk): training path (label_and_sample_proposals + losses) not
    # implemented; this reproduces the eval/inference forward only.
    return {
        "pred_boxes": jnp.concatenate([bb, bn], axis=1),       # (N, 2*MAX_DET, 4)
        "scores": jnp.concatenate([scb, scn], axis=1),
        "pred_classes": jnp.concatenate([cb, cn], axis=1),
        "valid": jnp.concatenate([vb, vn], axis=1),
    }


# --------------------------------- params ------------------------------------
def init_branch_params(key, k):
    ks = jax.random.split(key, 4)
    return {
        "w1": 0.05 * jax.random.normal(ks[0], (D_IN, FC_DIM), jnp.float32),
        "b1": jnp.zeros((1, FC_DIM), jnp.float32),
        "w2": 0.05 * jax.random.normal(ks[1], (FC_DIM, FC_DIM), jnp.float32),
        "b2": jnp.zeros((1, FC_DIM), jnp.float32),
        "wc": 0.05 * jax.random.normal(ks[2], (FC_DIM, k + 1), jnp.float32),
        "bc": jnp.zeros((1, k + 1), jnp.float32),
        "wb": 0.05 * jax.random.normal(ks[3], (FC_DIM, 4 * k), jnp.float32),
        "bb": jnp.zeros((1, 4 * k), jnp.float32),
    }


if __name__ == "__main__":
    key = jax.random.PRNGKey(0)
    k_feat, k_box, k_base, k_novel = jax.random.split(key, 4)

    # features: single FPN level "p2"-like map, NCHW
    features = jax.random.normal(k_feat, (N_IMGS, C_FEAT, HF, WF), jnp.float32)

    # proposals: (N, R, 4) valid xyxy boxes inside the 64x64 image
    kb = jax.random.split(k_box, 4)
    cx = jax.random.uniform(kb[0], (N_IMGS, R_PER_IMG), minval=12.0, maxval=52.0)
    cy = jax.random.uniform(kb[1], (N_IMGS, R_PER_IMG), minval=12.0, maxval=52.0)
    bw = jax.random.uniform(kb[2], (N_IMGS, R_PER_IMG), minval=8.0, maxval=28.0)
    bh = jax.random.uniform(kb[3], (N_IMGS, R_PER_IMG), minval=8.0, maxval=28.0)
    proposals = jnp.stack(
        [jnp.clip(cx - bw / 2, 0, IMG_W), jnp.clip(cy - bh / 2, 0, IMG_H),
         jnp.clip(cx + bw / 2, 0, IMG_W), jnp.clip(cy + bh / 2, 0, IMG_H)],
        axis=-1)

    params_base = init_branch_params(k_base, K_BASE)
    params_novel = init_branch_params(k_novel, K_NOVEL)
    packed = pack_params(params_base, params_novel)      # one-time weight packing
    seen = jnp.array(SEEN_IDS, dtype=jnp.int32)
    unseen = jnp.array(UNSEEN_IDS, dtype=jnp.int32)

    inference = jax.jit(parallel_roi_heads_inference)
    out = inference(features, proposals, packed, seen, unseen)
    jax.block_until_ready(out)
    print("KERNEL_OK")
</pallas_src>

<mosaic_0001>
module attributes {stable_mosaic.version = 11 : i64} {
  func.func @_fused_heads_kernel(%arg0: i32, %arg1: memref<256x256xbf16, #tpu.memory_space<vmem>>, %arg2: memref<256x4xf32, #tpu.memory_space<vmem>>, %arg3: memref<256x128xbf16, #tpu.memory_space<vmem>>, %arg4: memref<1x128xf32, #tpu.memory_space<vmem>>, %arg5: memref<128x128xbf16, #tpu.memory_space<vmem>>, %arg6: memref<1x128xf32, #tpu.memory_space<vmem>>, %arg7: memref<128x256xbf16, #tpu.memory_space<vmem>>, %arg8: memref<1x256xf32, #tpu.memory_space<vmem>>, %arg9: memref<256x128xf32, #tpu.memory_space<vmem>>, %arg10: memref<256x128xf32, #tpu.memory_space<vmem>>, %arg11: memref<256x128xf32, #tpu.memory_space<vmem>>) attributes {dimension_semantics = [#tpu.dimension_semantics<parallel>], iteration_bounds = array<i64: 1>, scalar_prefetch = 0 : i64, scratch_operands = 0 : i64, tpu.core_type = #tpu.core_type<tc>, window_params = [{transform_indices = @transform_0, window_bounds = array<i64: 256, 256>}, {transform_indices = @transform_1, window_bounds = array<i64: 256, 4>}, {pipeline_mode = #tpu.pipeline_mode<synchronous>, transform_indices = @transform_2, window_bounds = array<i64: 256, 128>}, {pipeline_mode = #tpu.pipeline_mode<synchronous>, transform_indices = @transform_3, window_bounds = array<i64: 1, 128>}, {pipeline_mode = #tpu.pipeline_mode<synchronous>, transform_indices = @transform_4, window_bounds = array<i64: 128, 128>}, {pipeline_mode = #tpu.pipeline_mode<synchronous>, transform_indices = @transform_5, window_bounds = array<i64: 1, 128>}, {pipeline_mode = #tpu.pipeline_mode<synchronous>, transform_indices = @transform_6, window_bounds = array<i64: 128, 256>}, {pipeline_mode = #tpu.pipeline_mode<synchronous>, transform_indices = @transform_7, window_bounds = array<i64: 1, 256>}, {transform_indices = @transform_8, window_bounds = array<i64: 256, 128>}, {transform_indices = @transform_9, window_bounds = array<i64: 256, 128>}, {transform_indices = @transform_10, window_bounds = array<i64: 256, 128>}]} {
    %c0 = arith.constant 0 : index
    %c0_0 = arith.constant 0 : index
    %0 = vector.load %arg1[%c0, %c0_0] : memref<256x256xbf16, #tpu.memory_space<vmem>>, vector<256x256xbf16>
    %c0_1 = arith.constant 0 : index
    %c0_2 = arith.constant 0 : index
    %1 = vector.load %arg3[%c0_1, %c0_2] : memref<256x128xbf16, #tpu.memory_space<vmem>>, vector<256x128xbf16>
    %cst = arith.constant dense<0.000000e+00> : vector<256x128xf32>
    %2 = tpu.matmul %0, %1, %cst {dimension_numbers = #tpu.dot_dimension_numbers<[1], [0], [0], [1], [0, 0, 1, 1], [], []>} : vector<256x256xbf16>, vector<256x128xbf16>, vector<256x128xf32> -> vector<256x128xf32>
    %c0_3 = arith.constant 0 : index
    %c0_4 = arith.constant 0 : index
    %3 = vector.load %arg4[%c0_3, %c0_4] : memref<1x128xf32, #tpu.memory_space<vmem>>, vector<1x128xf32>
    %4 = vector.broadcast %3 : vector<1x128xf32> to vector<256x128xf32>
    %5 = arith.addf %2, %4 : vector<256x128xf32>
    %cst_5 = arith.constant 0.000000e+00 : f32
    %6 = vector.broadcast %cst_5 : f32 to vector<256x128xf32>
    %7 = arith.maximumf %5, %6 : vector<256x128xf32>
    %8 = arith.truncf %7 : vector<256x128xf32> to vector<256x128xbf16>
    %c0_6 = arith.constant 0 : index
    %c0_7 = arith.constant 0 : index
    %9 = vector.load %arg5[%c0_6, %c0_7] : memref<128x128xbf16, #tpu.memory_space<vmem>>, vector<128x128xbf16>
    %cst_8 = arith.constant dense<0.000000e+00> : vector<256x128xf32>
    %10 = tpu.matmul %8, %9, %cst_8 {dimension_numbers = #tpu.dot_dimension_numbers<[1], [0], [0], [1], [0, 0, 1, 1], [], []>} : vector<256x128xbf16>, vector<128x128xbf16>, vector<256x128xf32> -> vector<256x128xf32>
    %c0_9 = arith.constant 0 : index
    %c0_10 = arith.constant 0 : index
    %11 = vector.load %arg6[%c0_9, %c0_10] : memref<1x128xf32, #tpu.memory_space<vmem>>, vector<1x128xf32>
    %12 = vector.broadcast %11 : vector<1x128xf32> to vector<256x128xf32>
    %13 = arith.addf %10, %12 : vector<256x128xf32>
    %cst_11 = arith.constant 0.000000e+00 : f32
    %14 = vector.broadcast %cst_11 : f32 to vector<256x128xf32>
    %15 = arith.maximumf %13, %14 : vector<256x128xf32>
    %16 = arith.truncf %15 : vector<256x128xf32> to vector<256x128xbf16>
    %c0_12 = arith.constant 0 : index
    %c0_13 = arith.constant 0 : index
    %17 = vector.load %arg7[%c0_12, %c0_13] : memref<128x256xbf16, #tpu.memory_space<vmem>>, vector<128x256xbf16>
    %cst_14 = arith.constant dense<0.000000e+00> : vector<256x256xf32>
    %18 = tpu.matmul %16, %17, %cst_14 {dimension_numbers = #tpu.dot_dimension_numbers<[1], [0], [0], [1], [0, 0, 1, 1], [], []>} : vector<256x128xbf16>, vector<128x256xbf16>, vector<256x256xf32> -> vector<256x256xf32>
    %c0_15 = arith.constant 0 : index
    %c0_16 = arith.constant 0 : index
    %19 = vector.load %arg8[%c0_15, %c0_16] : memref<1x256xf32, #tpu.memory_space<vmem>>, vector<1x256xf32>
    %20 = vector.broadcast %19 : vector<1x256xf32> to vector<256x256xf32>
    %21 = arith.addf %18, %20 : vector<256x256xf32>
    %22 = vector.extract_strided_slice %21 {offsets = [0, 0], sizes = [256, 128], strides = [1, 1]} : vector<256x256xf32> to vector<256x128xf32>
    %23 = vector.extract_strided_slice %21 {offsets = [0, 128], sizes = [256, 128], strides = [1, 1]} : vector<256x256xf32> to vector<256x128xf32>
    %24 = tpu.iota {dimensions = array<i32: 1>} : vector<1x128xi32>
    %c16_i32 = arith.constant 16 : i32
    %25 = vector.broadcast %c16_i32 : i32 to vector<1x128xi32>
    %26 = arith.cmpi sge, %24, %25 : vector<1x128xi32>
    %c32_i32 = arith.constant 32 : i32
    %27 = vector.broadcast %c32_i32 : i32 to vector<1x128xi32>
    %28 = arith.cmpi slt, %24, %27 : vector<1x128xi32>
    %29 = arith.andi %26, %28 : vector<1x128xi1>
    %c32_i32_17 = arith.constant 32 : i32
    %30 = vector.broadcast %c32_i32_17 : i32 to vector<1x128xi32>
    %31 = arith.cmpi sge, %24, %30 : vector<1x128xi32>
    %c48_i32 = arith.constant 48 : i32
    %32 = vector.broadcast %c48_i32 : i32 to vector<1x128xi32>
    %33 = arith.cmpi slt, %24, %32 : vector<1x128xi32>
    %34 = arith.andi %31, %33 : vector<1x128xi1>
    %c0_i32 = arith.constant 0 : i32
    %35 = vector.broadcast %c0_i32 : i32 to vector<1x128xi32>
    %36 = arith.cmpi sge, %24, %35 : vector<1x128xi32>
    %c5_i32 = arith.constant 5 : i32
    %37 = vector.broadcast %c5_i32 : i32 to vector<1x128xi32>
    %38 = arith.cmpi slt, %24, %37 : vector<1x128xi32>
    %39 = arith.andi %36, %38 : vector<1x128xi1>
    %c8_i32 = arith.constant 8 : i32
    %40 = vector.broadcast %c8_i32 : i32 to vector<1x128xi32>
    %41 = arith.cmpi sge, %24, %40 : vector<1x128xi32>
    %c12_i32 = arith.constant 12 : i32
    %42 = vector.broadcast %c12_i32 : i32 to vector<1x128xi32>
    %43 = arith.cmpi slt, %24, %42 : vector<1x128xi32>
    %44 = arith.andi %41, %43 : vector<1x128xi1>
    %45 = arith.ori %39, %44 : vector<1x128xi1>
    %cst_18 = arith.constant -1.000000e+30 : f32
    %46 = vector.shape_cast %39 : vector<1x128xi1> to vector<1x128xi1>
    %47 = vector.broadcast %46 : vector<1x128xi1> to vector<256x128xi1>
    %48 = vector.broadcast %cst_18 : f32 to vector<256x128xf32>
    %49 = arith.select %47, %22, %48 : vector<256x128xi1>, vector<256x128xf32>
    %cst_19 = arith.constant dense<0xFF800000> : vector<256xf32>
    %50 = vector.multi_reduction <maximumf>, %49, %cst_19 [1] : vector<256x128xf32> to vector<256xf32>
    %51 = vector.shape_cast %50 : vector<256xf32> to vector<256x1xf32>
    %cst_20 = arith.constant -1.000000e+30 : f32
    %52 = vector.shape_cast %44 : vector<1x128xi1> to vector<1x128xi1>
    %53 = vector.broadcast %52 : vector<1x128xi1> to vector<256x128xi1>
    %54 = vector.broadcast %cst_20 : f32 to vector<256x128xf32>
    %55 = arith.select %53, %22, %54 : vector<256x128xi1>, vector<256x128xf32>
    %cst_21 = arith.constant dense<0xFF800000> : vector<256xf32>
    %56 = vector.multi_reduction <maximumf>, %55, %cst_21 [1] : vector<256x128xf32> to vector<256xf32>
    %57 = vector.shape_cast %56 : vector<256xf32> to vector<256x1xf32>
    %58 = vector.shape_cast %39 : vector<1x128xi1> to vector<1x128xi1>
    %59 = vector.broadcast %58 : vector<1x128xi1> to vector<256x128xi1>
    %60 = vector.shape_cast %51 : vector<256x1xf32> to vector<256x1xf32>
    %61 = vector.broadcast %60 : vector<256x1xf32> to vector<256x128xf32>
    %62 = vector.shape_cast %57 : vector<256x1xf32> to vector<256x1xf32>
    %63 = vector.broadcast %62 : vector<256x1xf32> to vector<256x128xf32>
    %64 = arith.select %59, %61, %63 : vector<256x128xi1>, vector<256x128xf32>
    %65 = arith.subf %22, %64 : vector<256x128xf32>
    %cst_22 = arith.constant -1.000000e+30 : f32
    %66 = vector.shape_cast %45 : vector<1x128xi1> to vector<1x128xi1>
    %67 = vector.broadcast %66 : vector<1x128xi1> to vector<256x128xi1>
    %68 = vector.broadcast %cst_22 : f32 to vector<256x128xf32>
    %69 = arith.select %67, %65, %68 : vector<256x128xi1>, vector<256x128xf32>
    %70 = math.exp %69 : vector<256x128xf32>
    %cst_23 = arith.constant 0.000000e+00 : f32
    %71 = vector.shape_cast %39 : vector<1x128xi1> to vector<1x128xi1>
    %72 = vector.broadcast %71 : vector<1x128xi1> to vector<256x128xi1>
    %73 = vector.broadcast %cst_23 : f32 to vector<256x128xf32>
    %74 = arith.select %72, %70, %73 : vector<256x128xi1>, vector<256x128xf32>
    %cst_24 = arith.constant dense<0.000000e+00> : vector<256xf32>
    %75 = vector.multi_reduction <add>, %74, %cst_24 [1] : vector<256x128xf32> to vector<256xf32>
    %76 = vector.shape_cast %75 : vector<256xf32> to vector<256x1xf32>
    %cst_25 = arith.constant dense<0.000000e+00> : vector<256xf32>
    %77 = vector.multi_reduction <add>, %70, %cst_25 [1] : vector<256x128xf32> to vector<256xf32>
    %78 = vector.shape_cast %77 : vector<256xf32> to vector<256x1xf32>
    %79 = arith.subf %78, %76 : vector<256x1xf32>
    %80 = tpu.reciprocal %76 {approx = true} : vector<256x1xf32> -> vector<256x1xf32>
    %81 = tpu.reciprocal %79 {approx = true} : vector<256x1xf32> -> vector<256x1xf32>
    %82 = vector.shape_cast %39 : vector<1x128xi1> to vector<1x128xi1>
    %83 = vector.broadcast %82 : vector<1x128xi1> to vector<256x128xi1>
    %84 = vector.shape_cast %80 : vector<256x1xf32> to vector<256x1xf32>
    %85 = vector.broadcast %84 : vector<256x1xf32> to vector<256x128xf32>
    %86 = vector.shape_cast %81 : vector<256x1xf32> to vector<256x1xf32>
    %87 = vector.broadcast %86 : vector<256x1xf32> to vector<256x128xf32>
    %88 = arith.select %83, %85, %87 : vector<256x128xi1>, vector<256x128xf32>
    %89 = arith.mulf %70, %88 : vector<256x128xf32>
    %c0_26 = arith.constant 0 : index
    %c0_27 = arith.constant 0 : index
    %90 = vector.load %arg9[%c0_26, %c0_27] : memref<256x128xf32, #tpu.memory_space<vmem>>, vector<256x128xf32>
    tpu.vector_store %arg9[%c0_26, %c0_27], %89 {strides = array<i32>} : memref<256x128xf32, #tpu.memory_space<vmem>>, vector<256x128xf32>,
    %c0_28 = arith.constant 0 : index
    %c0_29 = arith.constant 0 : index
    %91 = vector.load %arg2[%c0_28, %c0_29] : memref<256x4xf32, #tpu.memory_space<vmem>>, vector<256x4xf32>
    %92 = vector.extract_strided_slice %91 {offsets = [0, 2], sizes = [256, 1], strides = [1, 1]} : vector<256x4xf32> to vector<256x1xf32>
    %93 = vector.extract_strided_slice %91 {offsets = [0, 0], sizes = [256, 1], strides = [1, 1]} : vector<256x4xf32> to vector<256x1xf32>
    %94 = arith.subf %92, %93 : vector<256x1xf32>
    %95 = vector.extract_strided_slice %91 {offsets = [0, 3], sizes = [256, 1], strides = [1, 1]} : vector<256x4xf32> to vector<256x1xf32>
    %96 = vector.extract_strided_slice %91 {offsets = [0, 1], sizes = [256, 1], strides = [1, 1]} : vector<256x4xf32> to vector<256x1xf32>
    %97 = arith.subf %95, %96 : vector<256x1xf32>
    %98 = vector.extract_strided_slice %91 {offsets = [0, 0], sizes = [256, 1], strides = [1, 1]} : vector<256x4xf32> to vector<256x1xf32>
    %cst_30 = arith.constant 5.000000e-01 : f32
    %99 = vector.broadcast %cst_30 : f32 to vector<256x1xf32>
    %100 = arith.mulf %99, %94 : vector<256x1xf32>
    %101 = arith.addf %98, %100 : vector<256x1xf32>
    %102 = vector.extract_strided_slice %91 {offsets = [0, 1], sizes = [256, 1], strides = [1, 1]} : vector<256x4xf32> to vector<256x1xf32>
    %cst_31 = arith.constant 5.000000e-01 : f32
    %103 = vector.broadcast %cst_31 : f32 to vector<256x1xf32>
    %104 = arith.mulf %103, %97 : vector<256x1xf32>
    %105 = arith.addf %102, %104 : vector<256x1xf32>
    %cst_32 = arith.constant 1.000000e-01 : f32
    %cst_33 = arith.constant 0.000000e+00 : f32
    %106 = vector.broadcast %cst_32 : f32 to vector<1x128xf32>
    %107 = vector.broadcast %cst_33 : f32 to vector<1x128xf32>
    %108 = arith.select %29, %106, %107 : vector<1x128xi1>, vector<1x128xf32>
    %cst_34 = arith.constant 1.000000e-01 : f32
    %cst_35 = arith.constant 0.000000e+00 : f32
    %109 = vector.broadcast %cst_34 : f32 to vector<1x128xf32>
    %110 = vector.broadcast %cst_35 : f32 to vector<1x128xf32>
    %111 = arith.select %34, %109, %110 : vector<1x128xi1>, vector<1x128xf32>
    %112 = arith.addf %108, %111 : vector<1x128xf32>
    %cst_36 = arith.constant 2.000000e-01 : f32
    %cst_37 = arith.constant 0.000000e+00 : f32
    %113 = vector.broadcast %cst_36 : f32 to vector<1x128xf32>
    %114 = vector.broadcast %cst_37 : f32 to vector<1x128xf32>
    %115 = arith.select %29, %113, %114 : vector<1x128xi1>, vector<1x128xf32>
    %cst_38 = arith.constant 2.000000e-01 : f32
    %cst_39 = arith.constant 0.000000e+00 : f32
    %116 = vector.broadcast %cst_38 : f32 to vector<1x128xf32>
    %117 = vector.broadcast %cst_39 : f32 to vector<1x128xf32>
    %118 = arith.select %34, %116, %117 : vector<1x128xi1>, vector<1x128xf32>
    %119 = arith.addf %115, %118 : vector<1x128xf32>
    %120 = vector.shape_cast %29 : vector<1x128xi1> to vector<1x128xi1>
    %121 = vector.broadcast %120 : vector<1x128xi1> to vector<256x128xi1>
    %122 = vector.shape_cast %94 : vector<256x1xf32> to vector<256x1xf32>
    %123 = vector.broadcast %122 : vector<256x1xf32> to vector<256x128xf32>
    %124 = vector.shape_cast %97 : vector<256x1xf32> to vector<256x1xf32>
    %125 = vector.broadcast %124 : vector<256x1xf32> to vector<256x128xf32>
    %126 = arith.select %121, %123, %125 : vector<256x128xi1>, vector<256x128xf32>
    %cst_40 = arith.constant 0.000000e+00 : f32
    %127 = vector.shape_cast %29 : vector<1x128xi1> to vector<1x128xi1>
    %128 = vector.broadcast %127 : vector<1x128xi1> to vector<256x128xi1>
    %129 = vector.shape_cast %101 : vector<256x1xf32> to vector<256x1xf32>
    %130 = vector.broadcast %129 : vector<256x1xf32> to vector<256x128xf32>
    %131 = vector.broadcast %cst_40 : f32 to vector<256x128xf32>
    %132 = arith.select %128, %130, %131 : vector<256x128xi1>, vector<256x128xf32>
    %cst_41 = arith.constant 0.000000e+00 : f32
    %133 = vector.shape_cast %34 : vector<1x128xi1> to vector<1x128xi1>
    %134 = vector.broadcast %133 : vector<1x128xi1> to vector<256x128xi1>
    %135 = vector.shape_cast %105 : vector<256x1xf32> to vector<256x1xf32>
    %136 = vector.broadcast %135 : vector<256x1xf32> to vector<256x128xf32>
    %137 = vector.broadcast %cst_41 : f32 to vector<256x128xf32>
    %138 = arith.select %134, %136, %137 : vector<256x128xi1>, vector<256x128xf32>
    %139 = arith.addf %132, %138 : vector<256x128xf32>
    %140 = vector.broadcast %112 : vector<1x128xf32> to vector<256x128xf32>
    %141 = arith.mulf %22, %140 : vector<256x128xf32>
    %142 = arith.mulf %141, %126 : vector<256x128xf32>
    %143 = arith.addf %142, %139 : vector<256x128xf32>
    %144 = vector.broadcast %119 : vector<1x128xf32> to vector<256x128xf32>
    %145 = arith.mulf %23, %144 : vector<256x128xf32>
    %cst_42 = arith.constant 4.13516665 : f32
    %146 = vector.broadcast %cst_42 : f32 to vector<256x128xf32>
    %147 = arith.minimumf %145, %146 : vector<256x128xf32>
    %148 = math.exp %147 : vector<256x128xf32>
    %149 = arith.mulf %148, %126 : vector<256x128xf32>
    %cst_43 = arith.constant 5.000000e-01 : f32
    %150 = vector.broadcast %cst_43 : f32 to vector<256x128xf32>
    %151 = arith.mulf %150, %149 : vector<256x128xf32>
    %152 = arith.subf %143, %151 : vector<256x128xf32>
    %c0_44 = arith.constant 0 : index
    %c0_45 = arith.constant 0 : index
    %153 = vector.load %arg10[%c0_44, %c0_45] : memref<256x128xf32, #tpu.memory_space<vmem>>, vector<256x128xf32>
    tpu.vector_store %arg10[%c0_44, %c0_45], %152 {strides = array<i32>} : memref<256x128xf32, #tpu.memory_space<vmem>>, vector<256x128xf32>,
    %cst_46 = arith.constant 5.000000e-01 : f32
    %154 = vector.broadcast %cst_46 : f32 to vector<256x128xf32>
    %155 = arith.mulf %154, %149 : vector<256x128xf32>
    %156 = arith.addf %143, %155 : vector<256x128xf32>
    %c0_47 = arith.constant 0 : index
    %c0_48 = arith.constant 0 : index
    %157 = vector.load %arg11[%c0_47, %c0_48] : memref<256x128xf32, #tpu.memory_space<vmem>>, vector<256x128xf32>
    tpu.vector_store %arg11[%c0_47, %c0_48], %156 {strides = array<i32>} : memref<256x128xf32, #tpu.memory_space<vmem>>, vector<256x128xf32>,
    return
  }
  func.func @transform_0(%arg0: i32) -> (i32, i32) {
    %c0_i32 = arith.constant 0 : i32
    %c0_i32_0 = arith.constant 0 : i32
    return %arg0, %c0_i32 : i32, i32
  }
  func.func @transform_1(%arg0: i32) -> (i32, i32) {
    %c0_i32 = arith.constant 0 : i32
    %c0_i32_0 = arith.constant 0 : i32
    return %arg0, %c0_i32 : i32, i32
  }
  func.func @transform_2(%arg0: i32) -> (i32, i32) {
    %c0_i32 = arith.constant 0 : i32
    %c0_i32_0 = arith.constant 0 : i32
    %c0_i32_1 = arith.constant 0 : i32
    return %c0_i32, %c0_i32_0 : i32, i32
  }
  func.func @transform_3(%arg0: i32) -> (i32, i32) {
    %c0_i32 = arith.constant 0 : i32
    %c0_i32_0 = arith.constant 0 : i32
    %c0_i32_1 = arith.constant 0 : i32
    return %c0_i32, %c0_i32_0 : i32, i32
  }
  func.func @transform_4(%arg0: i32) -> (i32, i32) {
    %c0_i32 = arith.constant 0 : i32
    %c0_i32_0 = arith.constant 0 : i32
    %c0_i32_1 = arith.constant 0 : i32
    return %c0_i32, %c0_i32_0 : i32, i32
  }
  func.func @transform_5(%arg0: i32) -> (i32, i32) {
    %c0_i32 = arith.constant 0 : i32
    %c0_i32_0 = arith.constant 0 : i32
    %c0_i32_1 = arith.constant 0 : i32
    return %c0_i32, %c0_i32_0 : i32, i32
  }
  func.func @transform_6(%arg0: i32) -> (i32, i32) {
    %c0_i32 = arith.constant 0 : i32
    %c0_i32_0 = arith.constant 0 : i32
    %c0_i32_1 = arith.constant 0 : i32
    return %c0_i32, %c0_i32_0 : i32, i32
  }
  func.func @transform_7(%arg0: i32) -> (i32, i32) {
    %c0_i32 = arith.constant 0 : i32
    %c0_i32_0 = arith.constant 0 : i32
    %c0_i32_1 = arith.constant 0 : i32
    return %c0_i32, %c0_i32_0 : i32, i32
  }
  func.func @transform_8(%arg0: i32) -> (i32, i32) {
    %c0_i32 = arith.constant 0 : i32
    %c0_i32_0 = arith.constant 0 : i32
    return %arg0, %c0_i32 : i32, i32
  }
  func.func @transform_9(%arg0: i32) -> (i32, i32) {
    %c0_i32 = arith.constant 0 : i32
    %c0_i32_0 = arith.constant 0 : i32
    return %arg0, %c0_i32 : i32, i32
  }
  func.func @transform_10(%arg0: i32) -> (i32, i32) {
    %c0_i32 = arith.constant 0 : i32
    %c0_i32_0 = arith.constant 0 : i32
    return %arg0, %c0_i32 : i32, i32
  }
}

</mosaic_0001>

<bundles_post_ra>
// kernel: tile.14
= control target key start
LH: loop header
LB: loop body
LE: loop exit
PB: predicated region body
PF: predicated region fallthrough
CT: control target
= control target key end

     0   :  { %s67_s10 = smov 28   ;;  %s68_s11 = smov 20   ;;  %vm3_vm0 = vcmask 31744   ;;  %vm9_vm1 = vcmask 261344   ;;  %vm15_vm2 = vcmask 228544   ;;  %vm21_vm3 = vcmask 195744   ;;  %s111_s0 = inlined_call_operand.vmem [shape: s32[8,4], index: 0, kind: input, shape index: {}]   ;;  %s112_s1 = inlined_call_operand.vmem [shape: s32[32], index: 1, kind: output, shape index: {}]  }
   0x1   :  { %v53_v0 = vld [vmem:[%s111_s0 + $0x7] sm:$0x1]   ;;  %v55_v1 = vld [vmem:[%s111_s0 + $0x5] sm:$0x1]   ;;  %v54_v2 = vld [vmem:[%s111_s0 + $0x6] sm:$0x1]  }
   0x2   :  { %7 = vrot.lane.b32.xlu0 %v53_v0, %s67_s10  ;;  %19 = vrot.lane.b32.xlu1 %v55_v1, %s68_s11  ;;  %v56_v3 = vld [vmem:[%s111_s0 + $0x4] sm:$0x1]   ;;  %v2_v4 = vld [vmem:[%s111_s0] sm:$0x1]   ;;  %s69_s18 = smov 24   ;;  %s70_s19 = smov 16  }
   0x3   :  { %4 = vst.msk [vmem:[#allocation0] sm:$0x1] %vm3_vm0, %v2_v4   ;;  %v57_v5 = vld [vmem:[%s111_s0 + $0x3] sm:$0x1]   ;;  %v58_v6 = vld [vmem:[%s111_s0 + $0x2] sm:$0x1]  }
   0x4   :  { %s71_s24 = smov 12   ;;  %s72_s25 = smov 8   ;;  %v59_v7 = vld [vmem:[%s111_s0 + $0x1] sm:$0x1]   ;;  %vm27_vm4 = vcmask 162944   ;;  %vm33_vm5 = vcmask 130144  }
   0x5   :  { %s73_s0 = smov 4   ;;  %vm39_vm6 = vcmask 97344   ;;  %vm45_vm7 = vcmask 64544  }
   0x6   :  { %13 = vrot.lane.b32.xlu0 %v54_v2, %s69_s18  ;;  %25 = vrot.lane.b32.xlu1 %v56_v3, %s70_s19 }
   0xa   :  { %31 = vrot.lane.b32.xlu0 %v57_v5, %s71_s24  ;;  %37 = vrot.lane.b32.xlu1 %v58_v6, %s72_s25 }
   0xe   :  { %43 = vrot.lane.b32.xlu0 %v59_v7, %s73_s0 }
  0x74   :  { %v8_v8 = vpop.permute.xlu0 %7   ;;  %v20_v9 = vpop.permute.xlu1 %19  }
  0x75   :  { %10 = vst.msk [vmem:[#allocation0] sm:$0x1] %vm9_vm1, %v8_v8  }
  0x78   :  { %v14_v10 = vpop.permute.xlu0 %13   ;;  %v26_v11 = vpop.permute.xlu1 %25  }
  0x79   :  { %16 = vst.msk [vmem:[#allocation0] sm:$0x1] %vm15_vm2, %v14_v10  }
  0x7a   :  { %22 = vst.msk [vmem:[#allocation0] sm:$0x1] %vm21_vm3, %v20_v9  }
  0x7b   :  { %28 = vst.msk [vmem:[#allocation0] sm:$0x1] %vm27_vm4, %v26_v11  }
  0x7c   :  { %v32_v12 = vpop.permute.xlu0 %31   ;;  %v38_v13 = vpop.permute.xlu1 %37  }
  0x7d   :  { %34 = vst.msk [vmem:[#allocation0] sm:$0x1] %vm33_vm5, %v32_v12  }
  0x7e   :  { %40 = vst.msk [vmem:[#allocation0] sm:$0x1] %vm39_vm6, %v38_v13  }
  0x80   :  { %v44_v14 = vpop.permute.xlu0 %43  }
  0x81   :  { %46 = vst.msk [vmem:[#allocation0] sm:$0x1] %vm45_vm7, %v44_v14  }
  0x88   :  { %v50_v15 = vld [vmem:[#allocation0] sm:$0x1] }
  0x89   :  { %52 = vst [vmem:[%s112_s1] sm:$0x1] %v50_v15 }

// kernel: parallel_roi_heads_inference.1
= control target key start
LH: loop header
LB: loop body
LE: loop exit
PB: predicated region body
PF: predicated region fallthrough
CT: control target
= control target key end

     0   :  { %s4074_s25 = smov 2   ;;  %s4076_s23 = smov 126   ;;  %s7217_s2 = inlined_call_operand.vmem [shape: bf16[256,128], index: 2, kind: input, shape index: {}]   ;;  %s7218_s0 = inlined_call_operand.vmem [shape: bf16[256,256], index: 0, kind: input, shape index: {}]   ;;  %s7219_s1 = inlined_call_operand.vmem [shape: f32[256,4], index: 1, kind: input, shape index: {}]   ;;  %s7220_s4 = inlined_call_operand.vmem [shape: bf16[128,128], index: 4, kind: input, shape index: {}]   ;;  %s7221_s3 = inlined_call_operand.vmem [shape: f32[1,128], index: 3, kind: input, shape index: {}]   ;;  %s7222_s6 = inlined_call_operand.vmem [shape: bf16[128,256], index: 6, kind: input, shape index: {}]   ;;  %s7223_s5 = inlined_call_operand.vmem [shape: f32[1,128], index: 5, kind: input, shape index: {}]   ;;  %s7224_s7 = inlined_call_operand.vmem [shape: f32[1,256], index: 7, kind: input, shape index: {}]   ;;  %s7225_s9 = inlined_call_operand.vmem [shape: f32[256,128], index: 9, kind: output, shape index: {1}]   ;;  %s7226_s10 = inlined_call_operand.vmem [shape: f32[256,128], index: 10, kind: output, shape index: {2}]   ;;  %s7227_s8 = inlined_call_operand.vmem [shape: f32[256,128], index: 8, kind: output, shape index: {0}]  }
   0x1   :  { %v3690_v0 = vld [vmem:[%s7217_s2 + $0x40] sm:$0xff]   ;;  %v3692_v2 = vld [vmem:[%s7217_s2 + $0x48] sm:$0xff]   ;;  %v3694_v4 = vld [vmem:[%s7217_s2 + $0x50] sm:$0xff]  }
   0x2   :  { %v3691_v1 = vld [vmem:[%s7217_s2] sm:$0xff]   ;;  %3475 = vmatprep.subr.bf16.mxu0 %v3690_v0  ;;  %v3693_v3 = vld [vmem:[%s7217_s2 + $0x8] sm:$0xff]   ;;  %v3695_v5 = vld [vmem:[%s7217_s2 + $0x10] sm:$0xff]  }
   0x3   :  { %3476 = vmatpush3.bf16.msra.mxu0 %v3691_v1  ;;  %v3696_v6 = vld [vmem:[%s7217_s2 + $0x58] sm:$0xff]   ;;  %v3698_v8 = vld [vmem:[%s7217_s2 + $0x60] sm:$0xff]   ;;  %v3700_v10 = vld [vmem:[%s7217_s2 + $0x68] sm:$0xff]  }
   0x4   :  { %3477 = vmatprep.subr.bf16.mxu0 %v3692_v2  ;;  %v3697_v7 = vld [vmem:[%s7217_s2 + $0x18] sm:$0xff]   ;;  %v3699_v9 = vld [vmem:[%s7217_s2 + $0x20] sm:$0xff]   ;;  %v3701_v12 = vld [vmem:[%s7217_s2 + $0x28] sm:$0xff]  }
   0x5   :  { %v3708_v11 = vld [vmem:[%s7218_s0 + $0x4] ss:$8 sps:$4 sm:$0xff]   ;;  %v3702_v13 = vld [vmem:[%s7217_s2 + $0x70] sm:$0xff]   ;;  %v3704_v16 = vld [vmem:[%s7217_s2 + $0x78] sm:$0xff]  }
   0x6   :  { %392 = vmatprep.mubr.bf16.mxu0 %v3708_v11  ;;  %v4181_v14 = vld [vmem:[%s7219_s1 + $0x8] sm:$0xff]  ;;  %v3703_v15 = vld [vmem:[%s7217_s2 + $0x30] sm:$0xff]   ;;  %v4199_v18 = vld [vmem:[%s7219_s1] sm:$0xff] }
   0x7   :  { %3478 = vmatpush3.bf16.msra.mxu0 %v3693_v3  ;;  %1941 = vrot.lane.b32.xlu1 %v4181_v14, %s4074_s25  ;;  %v4194_v17 = vld [vmem:[%s7219_s1 + $0x10] sm:$0xff]  ;;  %v3705_v19 = vld [vmem:[%s7217_s2 + $0x38] sm:$0xff]   ;;  %v4216_v21 = vld [vmem:[%s7219_s1 + $0x20] sm:$0xff] }
   0x8   :  { %3479 = vmatprep.subr.bf16.mxu0 %v3694_v4  ;;  %v4209_v20 = vld [vmem:[%s7219_s1 + $0x18] sm:$0xff]  ;;  %1939 = vrot.lane.b32.xlu0 %v4199_v18, %s4074_s25  ;;  %v3706_v22 = vld [vmem:[%s7218_s0] ss:$8 sps:$4 sm:$0xff]   ;;  %v4236_v25 = vld [vmem:[%s7219_s1 + $0x30] sm:$0xff] }
   0x9   :  { %v3709_v23 = vld [vmem:[%s7218_s0 + $0x14] ss:$8 sps:$4 sm:$0xff]   ;;  %v4229_v24 = vld [vmem:[%s7219_s1 + $0x28] sm:$0xff]  ;;  %v4250_v27 = vld [vmem:[%s7219_s1 + $0x40] sm:$0xff] }
   0xa   :  { %v4243_v26 = vld [vmem:[%s7219_s1 + $0x38] sm:$0xff]  ;;  %v3712_v29 = vld [vmem:[%s7218_s0 + $0x24] ss:$8 sps:$4 sm:$0xff]   ;;  %v4270_v31 = vld [vmem:[%s7219_s1 + $0x50] sm:$0xff] }
   0xb   :  { %3480 = vmatpush3.bf16.msra.mxu0 %v3695_v5  ;;  %1943 = vrot.lane.b32.xlu1 %v4194_v17, %s4074_s25  ;;  %v3711_v28 = vld [vmem:[%s7218_s0 + $0x10] ss:$8 sps:$4 sm:$0xff]   ;;  %v4263_v30 = vld [vmem:[%s7219_s1 + $0x48] sm:$0xff]  ;;  %v3745_v32 = vld [vmem:[%s7220_s4] sm:$0xff]  }
   0xc   :  { %3481 = vmatprep.subr.bf16.mxu0 %v3696_v6  ;;  %1947 = vrot.lane.b32.xlu0 %v4216_v21, %s4074_s25  ;;  %v4280_v33 = vld [vmem:[%s7219_s1 + $0x58] sm:$0xff]  ;;  %v4287_v34 = vld [vmem:[%s7219_s1 + $0x60] sm:$0xff]  ;;  %v4300_v37 = vld [vmem:[%s7219_s1 + $0x68] sm:$0xff] }
   0xd   :  { %3659 = vmatprep.subr.bf16.mxu1 %v3745_v32  ;;  %v3714_v35 = vld [vmem:[%s7218_s0 + $0x20] ss:$8 sps:$4 sm:$0xff]   ;;  %v3715_v36 = vld [vmem:[%s7218_s0 + $0x34] ss:$8 sps:$4 sm:$0xff]   ;;  %v3717_v44 = vld [vmem:[%s7218_s0 + $0x30] ss:$8 sps:$4 sm:$0xff]  }
   0xe   :  { %3667 = vmatpush3.bf16.msra.mxu1 %v3745_v32  ;;  %v3752_v38 = vld [vmem:[%s7220_s4 + $0x8] sm:$0xff]   ;;  %v4310_v39 = vld [vmem:[%s7219_s1 + $0x70] sm:$0xff]  ;;  %v4320_v41 = vld [vmem:[%s7219_s1 + $0x78] sm:$0xff] }
   0xf   :  { %3482 = vmatpush3.bf16.msra.mxu0 %v3697_v7  ;;  %1945 = vrot.lane.b32.xlu1 %v4209_v20, %s4074_s25  ;;  %v3756_v40 = vld [vmem:[%s7220_s4 + $0x10] sm:$0xff]   ;;  %v4327_v42 = vld [vmem:[%s7219_s1 + $0x80] sm:$0xff]  ;;  %v3757_v43 = vld [vmem:[%s7220_s4 + $0x18] sm:$0xff]  }
  0x10   :  { %3483 = vmatprep.subr.bf16.mxu0 %v3698_v8  ;;  %1951 = vrot.lane.b32.xlu0 %v4236_v25, %s4074_s25  ;;  %v3718_v45 = vld [vmem:[%s7218_s0 + $0x44] ss:$8 sps:$4 sm:$0xff]   ;;  %v4350_v47 = vld [vmem:[%s7219_s1 + $0x90] sm:$0xff]  ;;  %v4360_v49 = vld [vmem:[%s7219_s1 + $0x98] sm:$0xff] }
  0x11   :  { %3660 = vmatprep.subr.bf16.mxu1 %v3752_v38  ;;  %v4343_v46 = vld [vmem:[%s7219_s1 + $0x88] sm:$0xff]  ;;  %v3758_v48 = vld [vmem:[%s7220_s4 + $0x20] sm:$0xff]   ;;  %v3721_v53 = vld [vmem:[%s7218_s0 + $0x54] ss:$8 sps:$4 sm:$0xff]  }
  0x12   :  { %3668 = vmatpush3.bf16.msra.mxu1 %v3752_v38  ;;  %v4367_v50 = vld [vmem:[%s7219_s1 + $0xa0] sm:$0xff]  ;;  %v3759_v51 = vld [vmem:[%s7220_s4 + $0x28] sm:$0xff]   ;;  %v4390_v55 = vld [vmem:[%s7219_s1 + $0xb0] sm:$0xff] }
  0x13   :  { %3484 = vmatpush3.bf16.msra.mxu0 %v3699_v9  ;;  %1949 = vrot.lane.b32.xlu1 %v4229_v24, %s4074_s25  ;;  %v3720_v52 = vld [vmem:[%s7218_s0 + $0x40] ss:$8 sps:$4 sm:$0xff]   ;;  %v3760_v56 = vld [vmem:[%s7220_s4 + $0x30] sm:$0xff]   ;;  %v4400_v57 = vld [vmem:[%s7219_s1 + $0xb8] sm:$0xff] }
  0x14   :  { %3485 = vmatprep.subr.bf16.mxu0 %v3700_v10  ;;  %1955 = vrot.lane.b32.xlu0 %v4250_v27, %s4074_s25  ;;  %v4383_v54 = vld [vmem:[%s7219_s1 + $0xa8] sm:$0xff]  ;;  %v4407_v58 = vld [vmem:[%s7219_s1 + $0xc0] sm:$0xff]  ;;  %v3723_v59 = vld [vmem:[%s7218_s0 + $0x50] ss:$8 sps:$4 sm:$0xff]  }
  0x15   :  { %3661 = vmatprep.subr.bf16.mxu1 %v3756_v40  ;;  %v3724_v60 = vld [vmem:[%s7218_s0 + $0x64] ss:$8 sps:$4 sm:$0xff]   ;;  %v4427_v62 = vld [vmem:[%s7219_s1 + $0xd0] sm:$0xff]  ;;  %v4434_v63 = vld [vmem:[%s7219_s1 + $0xd8] sm:$0xff] }
  0x16   :  { %3669 = vmatpush3.bf16.msra.mxu1 %v3756_v40  ;;  %v4420_v61 = vld [vmem:[%s7219_s1 + $0xc8] sm:$0xff]  ;;  %v4441_v0 = vld [vmem:[%s7219_s1 + $0xe0] sm:$0xff]  ;;  %v3727_v2 = vld [vmem:[%s7218_s0 + $0x74] ss:$8 sps:$4 sm:$0xff]  }
  0x17   :  { %3486 = vmatpush3.bf16.msra.mxu0 %v3701_v12  ;;  %1953 = vrot.lane.b32.xlu1 %v4243_v26, %s4074_s25  ;;  %v3726_v1 = vld [vmem:[%s7218_s0 + $0x60] ss:$8 sps:$4 sm:$0xff]   ;;  %v4461_v4 = vld [vmem:[%s7219_s1 + $0xf0] sm:$0xff]  ;;  %v4468_v5 = vld [vmem:[%s7219_s1 + $0xf8] sm:$0xff] }
  0x18   :  { %3487 = vmatprep.subr.bf16.mxu0 %v3702_v13  ;;  %1959 = vrot.lane.b32.xlu0 %v4270_v31, %s4074_s25  ;;  %v4454_v3 = vld [vmem:[%s7219_s1 + $0xe8] sm:$0xff]  ;;  %v3729_v6 = vld [vmem:[%s7218_s0 + $0x70] ss:$8 sps:$4 sm:$0xff]   ;;  %v3733_v9 = vld [vmem:[%s7218_s0 + $0x94] ss:$8 sps:$4 sm:$0xff]  }
  0x19   :  { %3662 = vmatprep.subr.bf16.mxu1 %v3757_v43  ;;  %v3730_v7 = vld [vmem:[%s7218_s0 + $0x84] ss:$8 sps:$4 sm:$0xff]   ;;  %v3732_v8 = vld [vmem:[%s7218_s0 + $0x80] ss:$8 sps:$4 sm:$0xff]   ;;  %v3735_v10 = vld [vmem:[%s7218_s0 + $0x90] ss:$8 sps:$4 sm:$0xff]  }
  0x1a   :  { %3670 = vmatpush3.bf16.msra.mxu1 %v3757_v43  ;;  %v3736_v11 = vld [vmem:[%s7218_s0 + $0xa4] ss:$8 sps:$4 sm:$0xff]   ;;  %v3738_v12 = vld [vmem:[%s7218_s0 + $0xa0] ss:$8 sps:$4 sm:$0xff]   ;;  %v3739_v13 = vld [vmem:[%s7218_s0 + $0xb4] ss:$8 sps:$4 sm:$0xff]  }
  0x1b   :  { %3488 = vmatpush3.bf16.msra.mxu0 %v3703_v15  ;;  %1957 = vrot.lane.b32.xlu1 %v4263_v30, %s4074_s25  ;;  %v3741_v15 = vld [vmem:[%s7218_s0 + $0xb0] ss:$8 sps:$4 sm:$0xff]  }
  0x1c   :  { %3489 = vmatprep.subr.bf16.mxu0 %v3704_v16  ;;  %1963 = vrot.lane.b32.xlu0 %v4287_v34, %s4074_s25  ;;  %v3742_v16 = vld [vmem:[%s7218_s0 + $0xc4] ss:$8 sps:$4 sm:$0xff]  }
  0x1d   :  { %3663 = vmatprep.subr.bf16.mxu1 %v3758_v48 }
  0x1e   :  { %3671 = vmatpush3.bf16.msra.mxu1 %v3758_v48 }
  0x1f   :  { %3490 = vmatpush3.bf16.msra.mxu0 %v3705_v19  ;;  %1961 = vrot.lane.b32.xlu1 %v4280_v33, %s4074_s25  ;;  %v3761_v19 = vld [vmem:[%s7220_s4 + $0x38] sm:$0xff]  }
  0x20   :  { %3611 = vmatprep.subr.bf16.mxu0 %v3745_v32  ;;  %1967 = vrot.lane.b32.xlu0 %v4310_v39, %s4074_s25 }
  0x21   :  { %3664 = vmatprep.subr.bf16.mxu1 %v3759_v51 }
  0x22   :  { %393 = vmatmul.mubr.bf16.vlgmr.msra.gmra.mrb[0].mxu0 %v3706_v22  ;;  %3672 = vmatpush3.bf16.msra.mxu1 %v3759_v51  ;;  %v3744_v22 = vld [vmem:[%s7218_s0 + $0xc0] ss:$8 sps:$4 sm:$0xff]  }
  0x23   :  { %400 = vmatprep.mubr.bf16.mxu0 %v3709_v23  ;;  %3612 = vmatpush3.bf16.msra.mxu0 %v3745_v32  ;;  %v3746_v23 = vld [vmem:[%s7218_s0 + $0xd4] ss:$8 sps:$4 sm:$0xff]   ;;  %v3749_v32 = vld [vmem:[%s7218_s0 + $0xe4] ss:$8 sps:$4 sm:$0xff]  }
  0x24   :  { %3613 = vmatprep.subr.bf16.mxu0 %v3752_v38  ;;  %1965 = vrot.lane.b32.xlu1 %v4300_v37, %s4074_s25 }
  0x25   :  { %1971 = vrot.lane.b32.xlu0 %v4327_v42, %s4074_s25  ;;  %3665 = vmatprep.subr.bf16.mxu1 %v3760_v56 }
  0x26   :  { %3673 = vmatpush3.bf16.msra.mxu1 %v3760_v56 }
  0x27   :  { %3614 = vmatpush3.bf16.msra.mxu0 %v3752_v38  ;;  %3666 = vmatprep.subr.bf16.mxu1 %v3761_v19 }
  0x28   :  { %3615 = vmatprep.subr.bf16.mxu0 %v3756_v40  ;;  %1969 = vrot.lane.b32.xlu1 %v4320_v41, %s4074_s25 }
  0x29   :  { %1975 = vrot.lane.b32.xlu0 %v4350_v47, %s4074_s25 }
  0x2a   :  { %401 = vmatmul.mubr.bf16.gmra.mrb[4].mxu0 %v3711_v28  ;;  %3674 = vmatpush3.bf16.msra.mxu1 %v3761_v19  ;;  %v4075_v28 = vmov 2  }
  0x2b   :  { %408 = vmatprep.mubr.bf16.mxu0 %v3712_v29  ;;  %3616 = vmatpush3.bf16.msra.mxu0 %v3756_v40  ;;  %v3748_v29 = vld [vmem:[%s7218_s0 + $0xd0] ss:$8 sps:$4 sm:$0xff]  }
  0x2c   :  { %3617 = vmatprep.subr.bf16.mxu0 %v3757_v43  ;;  %1973 = vrot.lane.b32.xlu1 %v4343_v46, %s4074_s25 }
  0x2d   :  { %1979 = vrot.lane.b32.xlu0 %v4367_v50, %s4074_s25  ;;  %3683 = vset.pattern.permute.xlu1 %v4075_v28 }
  0x2e   :  { %3682 = vset.pattern.permute.xlu0 %v4075_v28 }
  0x2f   :  { %3618 = vmatpush3.bf16.msra.mxu0 %v3757_v43  ;;  %v3751_v43 = vld [vmem:[%s7218_s0 + $0xe0] ss:$8 sps:$4 sm:$0xff]  }
  0x30   :  { %3619 = vmatprep.subr.bf16.mxu0 %v3758_v48  ;;  %1977 = vrot.lane.b32.xlu1 %v4360_v49, %s4074_s25 }
  0x31   :  { %1983 = vrot.lane.b32.xlu0 %v4390_v55, %s4074_s25 }
  0x32   :  { %409 = vmatmul.mubr.bf16.gmra.mrb[8].mxu0 %v3714_v35 }
  0x33   :  { %416 = vmatprep.mubr.bf16.mxu0 %v3715_v36  ;;  %3620 = vmatpush3.bf16.msra.mxu0 %v3758_v48 }
  0x34   :  { %3621 = vmatprep.subr.bf16.mxu0 %v3759_v51  ;;  %1981 = vrot.lane.b32.xlu1 %v4383_v54, %s4074_s25 }
  0x35   :  { %1987 = vrot.lane.b32.xlu0 %v4407_v58, %s4074_s25 }
  0x37   :  { %3622 = vmatpush3.bf16.msra.mxu0 %v3759_v51 }
  0x38   :  { %3623 = vmatprep.subr.bf16.mxu0 %v3760_v56  ;;  %1985 = vrot.lane.b32.xlu1 %v4400_v57, %s4074_s25 }
  0x39   :  { %1991 = vrot.lane.b32.xlu0 %v4427_v62, %s4074_s25 }
  0x3a   :  { %417 = vmatmul.mubr.bf16.gmra.mrb[12].mxu0 %v3717_v44 }
  0x3b   :  { %424 = vmatprep.mubr.bf16.mxu0 %v3718_v45  ;;  %3624 = vmatpush3.bf16.msra.mxu0 %v3760_v56  ;;  %v3753_v45 = vld [vmem:[%s7218_s0 + $0xf4] ss:$8 sps:$4 sm:$0xff]  }
  0x3c   :  { %1989 = vrot.lane.b32.xlu1 %v4420_v61, %s4074_s25  ;;  %3625 = vmatprep.subr.bf16.mxu0 %v3761_v19 }
  0x3d   :  { %1995 = vrot.lane.b32.xlu0 %v4441_v0, %s4074_s25 }
  0x3f   :  { %3626 = vmatpush3.bf16.msra.mxu0 %v3761_v19 }
  0x40   :  { %1993 = vrot.lane.b32.xlu1 %v4434_v63, %s4074_s25 }
  0x41   :  { %1999 = vrot.lane.b32.xlu0 %v4461_v4, %s4074_s25 }
  0x42   :  { %425 = vmatmul.mubr.bf16.gmra.mrb[16].mxu0 %v3720_v52 }
  0x43   :  { %432 = vmatprep.mubr.bf16.mxu0 %v3721_v53 }
  0x44   :  { %1997 = vrot.lane.b32.xlu1 %v4454_v3, %s4074_s25 }
  0x48   :  { %2001 = vrot.lane.b32.xlu1 %v4468_v5, %s4074_s25 }
  0x4a   :  { %433 = vmatmul.mubr.bf16.gmra.mrb[20].mxu0 %v3723_v59 }
  0x4b   :  { %440 = vmatprep.mubr.bf16.mxu0 %v3724_v60 }
  0x52   :  { %441 = vmatmul.mubr.bf16.gmra.mrb[24].mxu0 %v3726_v1  ;;  %v3755_v1 = vld [vmem:[%s7218_s0 + $0xf0] ss:$8 sps:$4 sm:$0xff]  }
  0x53   :  { %448 = vmatprep.mubr.bf16.mxu0 %v3727_v2 }
  0x5a   :  { %449 = vmatmul.mubr.bf16.gmra.mrb[28].mxu0 %v3729_v6 }
  0x5b   :  { %456 = vmatprep.mubr.bf16.mxu0 %v3730_v7 }
  0x62   :  { %457 = vmatmul.mubr.bf16.gmra.mrb[32].mxu0 %v3732_v8 }
  0x63   :  { %464 = vmatprep.mubr.bf16.mxu0 %v3733_v9 }
  0x6a   :  { %465 = vmatmul.mubr.bf16.gmra.mrb[36].mxu0 %v3735_v10 }
  0x6b   :  { %472 = vmatprep.mubr.bf16.mxu0 %v3736_v11 }
  0x72   :  { %473 = vmatmul.mubr.bf16.gmra.mrb[40].mxu0 %v3738_v12 }
  0x73   :  { %480 = vmatprep.mubr.bf16.mxu0 %v3739_v13 }
  0x79   :  { %v1942_v35 = vpop.permute.xlu1 %1941 }
  0x7a   :  { %481 = vmatmul.mubr.bf16.gmra.mrb[44].mxu0 %v3741_v15  ;;  %v4520_v36 = vsub.f32 %v4181_v14, %v1942_v35  ;;  %v1940_v44 = vpop.permute.xlu0 %1939 }
  0x7b   :  { %488 = vmatprep.mubr.bf16.mxu0 %v3742_v16  ;;  %v4534_v14 = vsub.f32 %v4199_v18, %v1940_v44 }
  0x7c   :  { %v2068_v38 = vmul.f32 0.5, %v4520_v36 }
  0x7d   :  { %v1944_v40 = vpop.permute.xlu1 %1943  ;;  %v2067_v52 = vmul.f32 0.5, %v4534_v14 }
  0x7e   :  { %2133 = vrot.lane.b32.xlu1 %v2068_v38, %s4076_s23  ;;  %v4531_v48 = vsub.f32 %v4194_v17, %v1944_v40  ;;  %v1948_v56 = vpop.permute.xlu0 %1947 }
  0x7f   :  { %2131 = vrot.lane.b32.xlu0 %v2067_v52, %s4076_s23  ;;  %v4542_v59 = vsub.f32 %v4216_v21, %v1948_v56 }
  0x80   :  { %v2069_v17 = vmul.f32 0.5, %v4531_v48 }
  0x81   :  { %v1946_v51 = vpop.permute.xlu1 %1945  ;;  %v2071_v6 = vmul.f32 0.5, %v4542_v59 }
  0x82   :  { %489 = vmatmul.mubr.bf16.gmra.mrb[48].mxu0 %v3744_v22  ;;  %v4538_v53 = vsub.f32 %v4209_v20, %v1946_v51  ;;  %v1952_v20 = vpop.permute.xlu0 %1951 }
  0x83   :  { %496 = vmatprep.mubr.bf16.mxu0 %v3746_v23  ;;  %2135 = vrot.lane.b32.xlu0 %v2069_v17, %s4076_s23  ;;  %v4555_v21 = vsub.f32 %v4236_v25, %v1952_v20 }
  0x84   :  { %v2070_v60 = vmul.f32 0.5, %v4538_v53 }
  0x85   :  { %v1950_v18 = vpop.permute.xlu1 %1949  ;;  %v2073_v25 = vmul.f32 0.5, %v4555_v21 }
  0x86   :  { %v4550_v2 = vsub.f32 %v4229_v24, %v1950_v18  ;;  %2137 = vrot.lane.b32.xlu1 %v2070_v60, %s4076_s23  ;;  %v1956_v24 = vpop.permute.xlu0 %1955 }
  0x87   :  { %2139 = vrot.lane.b32.xlu0 %v2071_v6, %s4076_s23  ;;  %v4565_v10 = vsub.f32 %v4250_v27, %v1956_v24 }
  0x88   :  { %v2072_v7 = vmul.f32 0.5, %v4550_v2 }
  0x89   :  { %v1954_v8 = vpop.permute.xlu1 %1953  ;;  %v2075_v16 = vmul.f32 0.5, %v4565_v10 }
  0x8a   :  { %497 = vmatmul.mubr.bf16.gmra.mrb[52].mxu0 %v3748_v29  ;;  %v4560_v9 = vsub.f32 %v4243_v26, %v1954_v8  ;;  %2141 = vrot.lane.b32.xlu1 %v2072_v7, %s4076_s23  ;;  %v1960_v26 = vpop.permute.xlu0 %1959 }
  0x8b   :  { %504 = vmatprep.mubr.bf16.mxu0 %v3749_v32  ;;  %2143 = vrot.lane.b32.xlu0 %v2073_v25, %s4076_s23  ;;  %v4575_v15 = vsub.f32 %v4270_v31, %v1960_v26 }
  0x8c   :  { %v2074_v11 = vmul.f32 0.5, %v4560_v9 }
  0x8d   :  { %v1958_v12 = vpop.permute.xlu1 %1957  ;;  %v2077_v28 = vmul.f32 0.5, %v4575_v15 }
  0x8e   :  { %v4570_v13 = vsub.f32 %v4263_v30, %v1958_v12  ;;  %2145 = vrot.lane.b32.xlu1 %v2074_v11, %s4076_s23  ;;  %v1964_v30 = vpop.permute.xlu0 %1963 }
  0x8f   :  { %2147 = vrot.lane.b32.xlu0 %v2075_v16, %s4076_s23  ;;  %v4585_v23 = vsub.f32 %v4287_v34, %v1964_v30 }
  0x90   :  { %v2076_v27 = vmul.f32 0.5, %v4570_v13 }
  0x91   :  { %v1962_v19 = vpop.permute.xlu1 %1961  ;;  %v2079_v38 = vmul.f32 0.5, %v4585_v23 }
  0x92   :  { %505 = vmatmul.mubr.bf16.gmra.mrb[56].mxu0 %v3751_v43  ;;  %v4580_v22 = vsub.f32 %v4280_v33, %v1962_v19  ;;  %2149 = vrot.lane.b32.xlu1 %v2076_v27, %s4076_s23  ;;  %v1968_v33 = vpop.permute.xlu0 %1967 }
  0x93   :  { %512 = vmatprep.mubr.bf16.mxu0 %v3753_v45  ;;  %2151 = vrot.lane.b32.xlu0 %v2077_v28, %s4076_s23  ;;  %v4595_v35 = vsub.f32 %v4310_v39, %v1968_v33 }
  0x94   :  { %v2078_v31 = vmul.f32 0.5, %v4580_v22 }
  0x95   :  { %v2081_v45 = vmul.f32 0.5, %v4595_v35 }
  0x96   :  { %v1966_v29 = vpop.permute.xlu1 %1965  ;;  %2153 = vrot.lane.b32.xlu1 %v2078_v31, %s4076_s23 }
  0x97   :  { %v4590_v32 = vsub.f32 %v4300_v37, %v1966_v29  ;;  %v1972_v37 = vpop.permute.xlu0 %1971  ;;  %2155 = vrot.lane.b32.xlu0 %v2079_v38, %s4076_s23 }
  0x98   :  { %v4605_v44 = vsub.f32 %v4327_v42, %v1972_v37 }
  0x99   :  { %v2080_v34 = vmul.f32 0.5, %v4590_v32 }
  0x9a   :  { %513 = vmatmul.mubr.bf16.gmra.mrb[60].mxu0 %v3755_v1  ;;  %v1970_v40 = vpop.permute.xlu1 %1969  ;;  %v2083_v17 = vmul.f32 0.5, %v4605_v44 }
  0x9b   :  { %v4600_v43 = vsub.f32 %v4320_v41, %v1970_v40  ;;  %2157 = vrot.lane.b32.xlu1 %v2080_v34, %s4076_s23  ;;  %v1976_v41 = vpop.permute.xlu0 %1975  ;;  %2159 = vrot.lane.b32.xlu0 %v2081_v45, %s4076_s23 }
  0x9c   :  { %v4615_v56 = vsub.f32 %v4350_v47, %v1976_v41 }
  0x9d   :  { %v2082_v39 = vmul.f32 0.5, %v4600_v43 }
  0x9e   :  { %v1974_v51 = vpop.permute.xlu1 %1973  ;;  %v2085_v20 = vmul.f32 0.5, %v4615_v56 }
  0x9f   :  { %v4610_v52 = vsub.f32 %v4343_v46, %v1974_v51  ;;  %2161 = vrot.lane.b32.xlu1 %v2082_v39, %s4076_s23  ;;  %v1980_v46 = vpop.permute.xlu0 %1979  ;;  %2163 = vrot.lane.b32.xlu0 %v2083_v17, %s4076_s23 }
  0xa0   :  { %v4625_v1 = vsub.f32 %v4367_v50, %v1980_v46 }
  0xa1   :  { %v2084_v42 = vmul.f32 0.5, %v4610_v52 }
  0xa2   :  { %v1978_v60 = vpop.permute.xlu1 %1977  ;;  %v2087_v24 = vmul.f32 0.5, %v4625_v1 }
  0xa3   :  { %v4620_v18 = vsub.f32 %v4360_v49, %v1978_v60  ;;  %2165 = vrot.lane.b32.xlu1 %v2084_v42, %s4076_s23  ;;  %v1984_v49 = vpop.permute.xlu0 %1983  ;;  %2167 = vrot.lane.b32.xlu0 %v2085_v20, %s4076_s23 }
  0xa4   :  { %v4635_v8 = vsub.f32 %v4390_v55, %v1984_v49 }
  0xa5   :  { %v2086_v47 = vmul.f32 0.5, %v4620_v18 }
  0xa6   :  { %v1982_v6 = vpop.permute.xlu1 %1981  ;;  %v2089_v26 = vmul.f32 0.5, %v4635_v8 }
  0xa7   :  { %v4630_v7 = vsub.f32 %v4383_v54, %v1982_v6  ;;  %2169 = vrot.lane.b32.xlu1 %v2086_v47, %s4076_s23  ;;  %v1988_v54 = vpop.permute.xlu0 %1987  ;;  %2171 = vrot.lane.b32.xlu0 %v2087_v24, %s4076_s23 }
  0xa8   :  { %v4645_v12 = vsub.f32 %v4407_v58, %v1988_v54 }
  0xa9   :  { %v2088_v50 = vmul.f32 0.5, %v4630_v7 }
  0xaa   :  { %v1986_v25 = vpop.permute.xlu1 %1985  ;;  %v2091_v30 = vmul.f32 0.5, %v4645_v12 }
  0xab   :  { %v4640_v11 = vsub.f32 %v4400_v57, %v1986_v25  ;;  %2173 = vrot.lane.b32.xlu1 %v2088_v50, %s4076_s23  ;;  %v1992_v57 = vpop.permute.xlu0 %1991  ;;  %2175 = vrot.lane.b32.xlu0 %v2089_v26, %s4076_s23 }
  0xac   :  { %v4655_v19 = vsub.f32 %v4427_v62, %v1992_v57 }
  0xad   :  { %v2090_v55 = vmul.f32 0.5, %v4640_v11 }
  0xae   :  { %v1990_v16 = vpop.permute.xlu1 %1989  ;;  %v2093_v33 = vmul.f32 0.5, %v4655_v19 }
  0xaf   :  { %v4650_v27 = vsub.f32 %v4420_v61, %v1990_v16  ;;  %2177 = vrot.lane.b32.xlu1 %v2090_v55, %s4076_s23  ;;  %v1996_v61 = vpop.permute.xlu0 %1995  ;;  %2179 = vrot.lane.b32.xlu0 %v2091_v30, %s4076_s23 }
  0xb0   :  { %v4665_v29 = vsub.f32 %v4441_v0, %v1996_v61 }
  0xb1   :  { %v2092_v58 = vmul.f32 0.5, %v4650_v27 }
  0xb2   :  { %v1994_v28 = vpop.permute.xlu1 %1993  ;;  %v2095_v37 = vmul.f32 0.5, %v4665_v29 }
  0xb3   :  { %v4660_v31 = vsub.f32 %v4434_v63, %v1994_v28  ;;  %2181 = vrot.lane.b32.xlu1 %v2092_v58, %s4076_s23  ;;  %v2000_v63 = vpop.permute.xlu0 %1999  ;;  %2183 = vrot.lane.b32.xlu0 %v2093_v33, %s4076_s23 }
  0xb4   :  { %v4675_v40 = vsub.f32 %v4461_v4, %v2000_v63 }
  0xb5   :  { %v2094_v62 = vmul.f32 0.5, %v4660_v31 }
  0xb6   :  { %v1998_v38 = vpop.permute.xlu1 %1997 }
  0xb7   :  { %v4670_v34 = vsub.f32 %v4454_v3, %v1998_v38  ;;  %2185 = vrot.lane.b32.xlu1 %v2094_v62, %s4076_s23  ;;  %2187 = vrot.lane.b32.xlu0 %v2095_v37, %s4076_s23  ;;  %v2097_v3 = vmul.f32 0.5, %v4675_v40 }
  0xb9   :  { %v2096_v0 = vmul.f32 0.5, %v4670_v34 }
  0xba   :  { %v2002_v45 = vpop.permute.xlu1 %2001 }
  0xbb   :  { %v4680_v39 = vsub.f32 %v4468_v5, %v2002_v45  ;;  %2189 = vrot.lane.b32.xlu1 %v2096_v0, %s4076_s23  ;;  %2191 = vrot.lane.b32.xlu0 %v2097_v3, %s4076_s23  ;;  %v4709_v5 = vld [vmem:[%s7221_s3] ss:$0 sm:$0xff] }
  0xbd   :  { %v2098_v51 = vmul.f32 0.5, %v4680_v39 }
  0xbf   :  { %2193 = vrot.lane.b32.xlu1 %v2098_v51, %s4076_s23  ;;  %2269 = vperm.xlu0 %3682, %v4534_v14  }
  0xc3   :  { %2274 = vperm.xlu1 %3683, %v4520_v36   ;;  %2284 = vperm.xlu0 %3682, %v4538_v53  }
  0xc7   :  { %2279 = vperm.xlu1 %3683, %v4531_v48   ;;  %2294 = vperm.xlu0 %3682, %v4550_v2  }
  0xcb   :  { %2289 = vperm.xlu1 %3683, %v4542_v59   ;;  %2304 = vperm.xlu0 %3682, %v4560_v9  }
  0xcf   :  { %2299 = vperm.xlu1 %3683, %v4555_v21   ;;  %2314 = vperm.xlu0 %3682, %v4570_v13  }
  0xd3   :  { %2309 = vperm.xlu1 %3683, %v4565_v10   ;;  %2324 = vperm.xlu0 %3682, %v4580_v22  }
  0xd7   :  { %2319 = vperm.xlu1 %3683, %v4575_v15   ;;  %2334 = vperm.xlu0 %3682, %v4590_v32  }
  0xdb   :  { %2329 = vperm.xlu1 %3683, %v4585_v23   ;;  %2344 = vperm.xlu0 %3682, %v4600_v43  }
  0xdf   :  { %2339 = vperm.xlu1 %3683, %v4595_v35   ;;  %2354 = vperm.xlu0 %3682, %v4610_v52  }
  0xe3   :  { %2349 = vperm.xlu1 %3683, %v4605_v44   ;;  %2364 = vperm.xlu0 %3682, %v4620_v18  }
  0xe7   :  { %2359 = vperm.xlu1 %3683, %v4615_v56   ;;  %2374 = vperm.xlu0 %3682, %v4630_v7  }
  0xeb   :  { %2369 = vperm.xlu1 %3683, %v4625_v1   ;;  %2384 = vperm.xlu0 %3682, %v4640_v11  }
  0xef   :  { %2379 = vperm.xlu1 %3683, %v4635_v8   ;;  %2394 = vperm.xlu0 %3682, %v4650_v27  }
  0xf3   :  { %2389 = vperm.xlu1 %3683, %v4645_v12   ;;  %2404 = vperm.xlu0 %3682, %v4660_v31  }
  0xf5   :  { %v3491_v4 = vpop.f32.mrb[0].mxu0 }
  0xf6   :  { %v3492_v41 = vpop.f32.mrb[1].mxu0 }
  0xf7   :  { %v3493_v17 = vadd.f32 %v3492_v41, %v3491_v4  ;;  %v3494_v42 = vpop.f32.mrb[2].mxu0  ;;  %2399 = vperm.xlu1 %3683, %v4655_v19   ;;  %2414 = vperm.xlu0 %3682, %v4670_v34  }
  0xf8   :  { %v3495_v60 = vpop.f32.mrb[3].mxu0 }
  0xf9   :  { %v395_v46 = vadd.f32 %v3493_v17, %v4709_v5  ;;  %v3496_v20 = vadd.f32 %v3495_v60, %v3494_v42 }
  0xfb   :  { %v398_v47 = vadd.f32 %v3496_v20, %v4709_v5  ;;  %v521_v6 = vmax.f32 %v395_v46, 0.0  ;;  %2409 = vperm.xlu1 %3683, %v4665_v29   ;;  %2424 = vperm.xlu0 %3682, %v4680_v39  }
  0xfd   :  { %v522_v49 = vmax.f32 %v398_v47, 0.0  ;;  %v3497_v24 = vpop.f32.mrb[4].mxu0 }
  0xfe   :  { %v3498_v50 = vpop.f32.mrb[5].mxu0 }
  0xff   :  { %v3499_v25 = vadd.f32 %v3498_v50, %v3497_v24  ;;  %v3500_v54 = vpop.f32.mrb[6].mxu0  ;;  %v553_v26 = vpack.c.bf16 %v522_v49, %v521_v6  ;;  %2419 = vperm.xlu1 %3683, %v4675_v40   ;;  %v4077_v49 = vmov 3   ;;  %v3764_v24 = vld [vmem:[%s7222_s6 + $0x4] ss:$8 sps:$4 sm:$0xff]  }
 0x100   :  { %v3501_v55 = vpop.f32.mrb[7].mxu0  ;;  %3685 = vset.pattern.permute.xlu0 %v4077_v49  ;;  %957 = vmatprep.subr.bf16.mxu1 %v3764_v24 }
 0x101   :  { %v403_v16 = vadd.f32 %v3499_v25, %v4709_v5  ;;  %v3502_v57 = vadd.f32 %v3501_v55, %v3500_v54  ;;  %3627 = vmatprep.mubr.bf16.mxu0 %v553_v26  ;;  %2432 = vperm.xlu0 %3685, %v4520_v36   ;;  %v4742_v36 = vpop.permute.xlu1 %2133 }
 0x103   :  { %v406_v30 = vadd.f32 %v3502_v57, %v4709_v5  ;;  %v523_v58 = vmax.f32 %v403_v16, 0.0  ;;  %3684 = vset.pattern.permute.xlu1 %v4077_v49 }
 0x104   :  { %2428 = vperm.xlu1 %3684, %v4534_v14  }
 0x105   :  { %v524_v28 = vmax.f32 %v406_v30, 0.0  ;;  %v3503_v61 = vpop.f32.mrb[8].mxu0  ;;  %2444 = vperm.xlu0 %3685, %v4542_v59  }
 0x106   :  { %v3504_v33 = vpop.f32.mrb[9].mxu0 }
 0x107   :  { %v554_v62 = vpack.c.bf16 %v524_v28, %v523_v58  ;;  %v3505_v38 = vadd.f32 %v3504_v33, %v3503_v61  ;;  %v3506_v63 = vpop.f32.mrb[10].mxu0 }
 0x108   :  { %v3507_v37 = vpop.f32.mrb[11].mxu0  ;;  %2436 = vperm.xlu1 %3684, %v4531_v48  }
 0x109   :  { %v411_v0 = vadd.f32 %v3505_v38, %v4709_v5  ;;  %v3508_v45 = vadd.f32 %v3507_v37, %v3506_v63  ;;  %3628 = vmatmul.mubr.bf16.vlgmr.msra.gmra.mrb[64].mxu0 %v554_v62  ;;  %2452 = vperm.xlu0 %3685, %v4555_v21  }
 0x10b   :  { %v525_v3 = vmax.f32 %v411_v0, 0.0  ;;  %v414_v51 = vadd.f32 %v3508_v45, %v4709_v5 }
 0x10c   :  { %2440 = vperm.xlu1 %3684, %v4538_v53  }
 0x10d   :  { %v526_v4 = vmax.f32 %v414_v51, 0.0  ;;  %v3509_v41 = vpop.f32.mrb[12].mxu0  ;;  %2460 = vperm.xlu0 %3685, %v4565_v10   ;;  %v4749_v51 = vpop.permute.xlu1 %2137 }
 0x10e   :  { %v3510_v17 = vpop.f32.mrb[13].mxu0 }
 0x10f   :  { %v3511_v42 = vadd.f32 %v3510_v17, %v3509_v41  ;;  %v3512_v60 = vpop.f32.mrb[14].mxu0  ;;  %v555_v46 = vpack.c.bf16 %v526_v4, %v525_v3  ;;  %v4753_v4 = vpop.permute.xlu0 %2131 }
 0x110   :  { %v3513_v20 = vpop.f32.mrb[15].mxu0  ;;  %2448 = vperm.xlu1 %3684, %v4550_v2  }
 0x111   :  { %v419_v47 = vadd.f32 %v3511_v42, %v4709_v5  ;;  %v3514_v6 = vadd.f32 %v3513_v20, %v3512_v60  ;;  %3631 = vmatprep.mubr.bf16.mxu0 %v555_v46  ;;  %2468 = vperm.xlu0 %3685, %v4575_v15   ;;  %v4756_v46 = vpop.permute.xlu1 %2141 }
 0x113   :  { %v527_v50 = vmax.f32 %v419_v47, 0.0  ;;  %v422_v25 = vadd.f32 %v3514_v6, %v4709_v5  ;;  %v4761_v6 = vpop.permute.xlu0 %2135 }
 0x114   :  { %2456 = vperm.xlu1 %3684, %v4560_v9  }
 0x115   :  { %v528_v54 = vmax.f32 %v422_v25, 0.0  ;;  %v3515_v26 = vpop.f32.mrb[16].mxu0  ;;  %2476 = vperm.xlu0 %3685, %v4585_v23   ;;  %v4766_v25 = vpop.permute.xlu1 %2145 }
 0x116   :  { %v3516_v55 = vpop.f32.mrb[17].mxu0 }
 0x117   :  { %v3517_v16 = vadd.f32 %v3516_v55, %v3515_v26  ;;  %v3518_v57 = vpop.f32.mrb[18].mxu0  ;;  %v556_v30 = vpack.c.bf16 %v528_v54, %v527_v50 }
 0x118   :  { %v3519_v58 = vpop.f32.mrb[19].mxu0  ;;  %2464 = vperm.xlu1 %3684, %v4570_v13  }
 0x119   :  { %v427_v28 = vadd.f32 %v3517_v16, %v4709_v5  ;;  %v3520_v61 = vadd.f32 %v3519_v58, %v3518_v57  ;;  %3632 = vmatmul.mubr.bf16.gmra.mrb[68].mxu0 %v556_v30  ;;  %2484 = vperm.xlu0 %3685, %v4595_v35   ;;  %v4769_v16 = vpop.permute.xlu0 %2139  ;;  %v4774_v58 = vpop.permute.xlu1 %2149 }
 0x11b   :  { %v529_v14 = vmax.f32 %v427_v28, 0.0  ;;  %v430_v33 = vadd.f32 %v3520_v61, %v4709_v5 }
 0x11c   :  { %2472 = vperm.xlu1 %3684, %v4580_v22  }
 0x11d   :  { %v530_v62 = vmax.f32 %v430_v33, 0.0  ;;  %v3521_v38 = vpop.f32.mrb[20].mxu0  ;;  %2492 = vperm.xlu0 %3685, %v4605_v44  }
 0x11e   :  { %v3522_v63 = vpop.f32.mrb[21].mxu0 }
 0x11f   :  { %v3523_v48 = vadd.f32 %v3522_v63, %v3521_v38  ;;  %v3524_v37 = vpop.f32.mrb[22].mxu0  ;;  %v557_v0 = vpack.c.bf16 %v530_v62, %v529_v14  ;;  %v4778_v14 = vpop.permute.xlu0 %2143 }
 0x120   :  { %v3525_v59 = vpop.f32.mrb[23].mxu0  ;;  %2480 = vperm.xlu1 %3684, %v4590_v32  }
 0x121   :  { %v435_v45 = vadd.f32 %v3523_v48, %v4709_v5  ;;  %v3526_v3 = vadd.f32 %v3525_v59, %v3524_v37  ;;  %3635 = vmatprep.mubr.bf16.mxu0 %v557_v0  ;;  %2500 = vperm.xlu0 %3685, %v4615_v56  }
 0x123   :  { %v531_v53 = vmax.f32 %v435_v45, 0.0  ;;  %v438_v21 = vadd.f32 %v3526_v3, %v4709_v5  ;;  %v4787_v0 = vpop.permute.xlu0 %2147 }
 0x124   :  { %2488 = vperm.xlu1 %3684, %v4600_v43   ;;  %v4783_v43 = vpop.permute.xlu1 %2153 }
 0x125   :  { %v532_v41 = vmax.f32 %v438_v21, 0.0  ;;  %v3527_v2 = vpop.f32.mrb[24].mxu0  ;;  %2508 = vperm.xlu0 %3685, %v4625_v1  }
 0x126   :  { %v3528_v17 = vpop.f32.mrb[25].mxu0 }
 0x127   :  { %v3529_v42 = vadd.f32 %v3528_v17, %v3527_v2  ;;  %v3530_v10 = vpop.f32.mrb[26].mxu0  ;;  %v558_v60 = vpack.c.bf16 %v532_v41, %v531_v53  ;;  %v4795_v17 = vpop.permute.xlu0 %2151 }
 0x128   :  { %v3531_v20 = vpop.f32.mrb[27].mxu0  ;;  %2496 = vperm.xlu1 %3684, %v4610_v52   ;;  %v4790_v21 = vpop.permute.xlu1 %2157 }
 0x129   :  { %v443_v47 = vadd.f32 %v3529_v42, %v4709_v5  ;;  %v3532_v9 = vadd.f32 %v3531_v20, %v3530_v10  ;;  %3636 = vmatmul.mubr.bf16.gmra.mrb[72].mxu0 %v558_v60  ;;  %2516 = vperm.xlu0 %3685, %v4635_v8  }
 0x12b   :  { %v533_v15 = vmax.f32 %v443_v47, 0.0  ;;  %v446_v49 = vadd.f32 %v3532_v9, %v4709_v5 }
 0x12c   :  { %2504 = vperm.xlu1 %3684, %v4620_v18   ;;  %v4800_v20 = vpop.permute.xlu1 %2161 }
 0x12d   :  { %v534_v24 = vmax.f32 %v446_v49, 0.0  ;;  %v3533_v50 = vpop.f32.mrb[28].mxu0  ;;  %2524 = vperm.xlu0 %3685, %v4645_v12   ;;  %v3762_v12 = vld [vmem:[%s7222_s6] ss:$8 sps:$4 sm:$0xff]  }
 0x12e   :  { %v3534_v13 = vpop.f32.mrb[29].mxu0 }
 0x12f   :  { %v3535_v54 = vadd.f32 %v3534_v13, %v3533_v50  ;;  %v3536_v23 = vpop.f32.mrb[30].mxu0  ;;  %v559_v26 = vpack.c.bf16 %v534_v24, %v533_v15  ;;  %v3765_v13 = vld [vmem:[%s7222_s6 + $0x10] ss:$8 sps:$4 sm:$0xff]  }
 0x130   :  { %v3537_v55 = vpop.f32.mrb[31].mxu0  ;;  %2512 = vperm.xlu1 %3684, %v4630_v7  }
 0x131   :  { %v451_v57 = vadd.f32 %v3535_v54, %v4709_v5  ;;  %v3538_v22 = vadd.f32 %v3537_v55, %v3536_v23  ;;  %3639 = vmatprep.mubr.bf16.mxu0 %v559_v26  ;;  %2532 = vperm.xlu0 %3685, %v4655_v19   ;;  %v4809_v19 = vpop.permute.xlu0 %2155  ;;  %v4817_v23 = vpop.permute.xlu1 %2165 }
 0x133   :  { %v535_v35 = vmax.f32 %v451_v57, 0.0  ;;  %v454_v30 = vadd.f32 %v3538_v22, %v4709_v5  ;;  %v4042_v57 = vld [vmem:[%s7219_s1] sm:$0xff] }
 0x134   :  { %2520 = vperm.xlu1 %3684, %v4640_v11   ;;  %v3767_v11 = vld [vmem:[%s7222_s6 + $0x14] ss:$8 sps:$4 sm:$0xff]   ;;  %v4828_v22 = vadd.f32 %v4042_v57, %v4753_v4  ;;  %v3780_v57 = vld [vmem:[%s7222_s6 + $0x60] ss:$8 sps:$4 sm:$0xff]  }
 0x135   :  { %v536_v28 = vmax.f32 %v454_v30, 0.0  ;;  %v3539_v32 = vpop.f32.mrb[32].mxu0  ;;  %2540 = vperm.xlu0 %3685, %v4665_v29   ;;  %v3770_v29 = vld [vmem:[%s7222_s6 + $0x24] ss:$8 sps:$4 sm:$0xff]   ;;  %v4830_v30 = vpop.permute.xlu0 %2159 }
 0x136   :  { %v3540_v61 = vpop.f32.mrb[33].mxu0 }
 0x137   :  { %v3541_v33 = vadd.f32 %v3540_v61, %v3539_v32  ;;  %v3542_v44 = vpop.f32.mrb[34].mxu0  ;;  %v560_v62 = vpack.c.bf16 %v536_v28, %v535_v35  ;;  %v3773_v61 = vld [vmem:[%s7222_s6 + $0x34] ss:$8 sps:$4 sm:$0xff]  }
 0x138   :  { %v3543_v38 = vpop.f32.mrb[35].mxu0  ;;  %2528 = vperm.xlu1 %3684, %v4650_v27  }
 0x139   :  { %v3544_v63 = vadd.f32 %v3543_v38, %v3542_v44  ;;  %3640 = vmatmul.mubr.bf16.gmra.mrb[76].mxu0 %v560_v62  ;;  %v459_v48 = vadd.f32 %v3541_v33, %v4709_v5  ;;  %2548 = vperm.xlu0 %3685, %v4675_v40   ;;  %v4078_v33 = vmov 0   ;;  %v4043_v44 = vld [vmem:[%s7219_s1 + $0x18] sm:$0xff] }
 0x13a   :  { %v4844_v62 = vadd.f32 %v4043_v44, %v4749_v51  ;;  %v3776_v51 = vld [vmem:[%s7222_s6 + $0x44] ss:$8 sps:$4 sm:$0xff]   ;;  %v4051_v44 = vld [vmem:[%s7219_s1 + $0x58] sm:$0xff] }
 0x13b   :  { %v462_v56 = vadd.f32 %v3544_v63, %v4709_v5  ;;  %v537_v37 = vmax.f32 %v459_v48, 0.0  ;;  %v3771_v48 = vld [vmem:[%s7222_s6 + $0x30] ss:$8 sps:$4 sm:$0xff]  }
 0x13c   :  { %2536 = vperm.xlu1 %3684, %v4660_v31   ;;  %v3768_v31 = vld [vmem:[%s7222_s6 + $0x20] ss:$8 sps:$4 sm:$0xff]  }
 0x13d   :  { %v3545_v59 = vpop.f32.mrb[36].mxu0  ;;  %v538_v52 = vmax.f32 %v462_v56, 0.0  ;;  %3686 = vset.pattern.permute.xlu0 %v4078_v33 }
 0x13e   :  { %v3546_v45 = vpop.f32.mrb[37].mxu0  ;;  %2589 = vperm.xlu0 %3686, %v4828_v22  }
 0x13f   :  { %v3547_v3 = vadd.f32 %v3546_v45, %v3545_v59  ;;  %v3548_v1 = vpop.f32.mrb[38].mxu0  ;;  %v561_v53 = vpack.c.bf16 %v538_v52, %v537_v37  ;;  %v4044_v59 = vld [vmem:[%s7219_s1 + $0x8] sm:$0xff]  ;;  %v4864_v45 = vpop.permute.xlu0 %2163 }
 0x140   :  { %v3549_v41 = vpop.f32.mrb[39].mxu0  ;;  %2544 = vperm.xlu1 %3684, %v4670_v34   ;;  %v4847_v34 = vpop.permute.xlu1 %2169  ;;  %v4862_v52 = vadd.f32 %v4044_v59, %v4742_v36  ;;  %v3774_v36 = vld [vmem:[%s7222_s6 + $0x40] ss:$8 sps:$4 sm:$0xff]  }
 0x141   :  { %v467_v2 = vadd.f32 %v3547_v3, %v4709_v5  ;;  %v3550_v18 = vadd.f32 %v3549_v41, %v3548_v1  ;;  %3643 = vmatprep.mubr.bf16.mxu1 %v561_v53  ;;  %v4045_v3 = vld [vmem:[%s7219_s1 + $0x28] sm:$0xff] }
 0x142   :  { %2604 = vperm.xlu0 %3686, %v4844_v62  }
 0x143   :  { %v539_v8 = vmax.f32 %v467_v2, 0.0  ;;  %v470_v42 = vadd.f32 %v3550_v18, %v4709_v5 }
 0x144   :  { %2552 = vperm.xlu1 %3684, %v4680_v39   ;;  %v4870_v39 = vadd.f32 %v4045_v3, %v4756_v46  ;;  %v3779_v46 = vld [vmem:[%s7222_s6 + $0x54] ss:$8 sps:$4 sm:$0xff]   ;;  %v4053_v3 = vld [vmem:[%s7219_s1 + $0x68] sm:$0xff] }
 0x145   :  { %v540_v10 = vmax.f32 %v470_v42, 0.0  ;;  %v3551_v60 = vpop.f32.mrb[40].mxu0  ;;  %v4876_v42 = vpop.permute.xlu1 %2173 }
 0x146   :  { %v3552_v7 = vpop.f32.mrb[41].mxu0  ;;  %2614 = vperm.xlu0 %3686, %v4870_v39  }
 0x147   :  { %v3553_v47 = vadd.f32 %v3552_v7, %v3551_v60  ;;  %v3554_v9 = vpop.f32.mrb[42].mxu0  ;;  %v562_v15 = vpack.c.bf16 %v540_v10, %v539_v8  ;;  %v4046_v10 = vld [vmem:[%s7219_s1 + $0x10] sm:$0xff] }
 0x148   :  { %v3555_v49 = vpop.f32.mrb[43].mxu0  ;;  %3687 = vset.pattern.permute.xlu1 %v4078_v33  ;;  %v4886_v60 = vadd.f32 %v4046_v10, %v4761_v6  ;;  %v3777_v6 = vld [vmem:[%s7222_s6 + $0x50] ss:$8 sps:$4 sm:$0xff]  }
 0x149   :  { %v475_v24 = vadd.f32 %v3553_v47, %v4709_v5  ;;  %v3556_v50 = vadd.f32 %v3555_v49, %v3554_v9  ;;  %3644 = vmatmul.mubr.bf16.vlgmr.msra.gmra.mrb[0].mxu1 %v562_v15  ;;  %2594 = vperm.xlu1 %3687, %v4862_v52  }
 0x14a   :  { %958 = vmatpush1.bf16.msra.mxu1 %v3762_v12  ;;  %v4047_v12 = vld [vmem:[%s7219_s1 + $0x38] sm:$0xff] }
 0x14b   :  { %v541_v54 = vmax.f32 %v475_v24, 0.0  ;;  %v478_v27 = vadd.f32 %v3556_v50, %v4709_v5  ;;  %959 = vmatprep.subr.bf16.mxu1 %v3767_v11  ;;  %v4893_v47 = vadd.f32 %v4047_v12, %v4766_v25  ;;  %v4897_v11 = vpop.permute.xlu0 %2167  ;;  %v4048_v25 = vld [vmem:[%s7219_s1 + $0x20] sm:$0xff] }
 0x14c   :  { %v4907_v50 = vadd.f32 %v4048_v25, %v4769_v16 }
 0x14d   :  { %v542_v26 = vmax.f32 %v478_v27, 0.0  ;;  %v3557_v55 = vpop.f32.mrb[44].mxu0  ;;  %2599 = vperm.xlu1 %3687, %v4886_v60   ;;  %2624 = vperm.xlu0 %3686, %v4893_v47  }
 0x14e   :  { %v3558_v35 = vpop.f32.mrb[45].mxu0  ;;  %960 = vmatpush1.bf16.msra.mxu1 %v3765_v13  ;;  %v3782_v13 = vld [vmem:[%s7222_s6 + $0x64] ss:$8 sps:$4 sm:$0xff]  }
 0x14f   :  { %v3559_v28 = vadd.f32 %v3558_v35, %v3557_v55  ;;  %v3560_v32 = vpop.f32.mrb[46].mxu0  ;;  %v563_v40 = vpack.c.bf16 %v542_v26, %v541_v54  ;;  %961 = vmatprep.subr.bf16.mxu1 %v3770_v29  ;;  %v4049_v54 = vld [vmem:[%s7219_s1 + $0x48] sm:$0xff]  ;;  %v4919_v55 = vpop.permute.xlu1 %2177 }
 0x150   :  { %v3561_v4 = vpop.f32.mrb[47].mxu0  ;;  %v4917_v27 = vadd.f32 %v4049_v54, %v4774_v58  ;;  %v4050_v58 = vld [vmem:[%s7219_s1 + $0x30] sm:$0xff] }
 0x151   :  { %v483_v38 = vadd.f32 %v3559_v28, %v4709_v5  ;;  %v3562_v63 = vadd.f32 %v3561_v4, %v3560_v32  ;;  %3647 = vmatprep.mubr.bf16.mxu1 %v563_v40  ;;  %v4929_v32 = vadd.f32 %v4050_v58, %v4778_v14  ;;  %2609 = vperm.xlu1 %3687, %v4907_v50   ;;  %v3785_v4 = vld [vmem:[%s7222_s6 + $0x74] ss:$8 sps:$4 sm:$0xff]  }
 0x152   :  { %962 = vmatpush1.bf16.msra.mxu1 %v3768_v31  ;;  %2634 = vperm.xlu0 %3686, %v4917_v27  }
 0x153   :  { %v543_v56 = vmax.f32 %v483_v38, 0.0  ;;  %v486_v37 = vadd.f32 %v3562_v63, %v4709_v5  ;;  %963 = vmatprep.subr.bf16.mxu1 %v3773_v61  ;;  %v4931_v61 = vpop.permute.xlu0 %2171  ;;  %v4941_v38 = vadd.f32 %v4051_v44, %v4783_v43  ;;  %v4052_v43 = vld [vmem:[%s7219_s1 + $0x40] sm:$0xff] }
 0x154   :  { %v4955_v59 = vadd.f32 %v4052_v43, %v4787_v0 }
 0x155   :  { %v544_v1 = vmax.f32 %v486_v37, 0.0  ;;  %v3563_v53 = vpop.f32.mrb[48].mxu0  ;;  %2619 = vperm.xlu1 %3687, %v4929_v32  }
 0x156   :  { %v3564_v41 = vpop.f32.mrb[49].mxu0  ;;  %964 = vmatpush1.bf16.msra.mxu1 %v3771_v48  ;;  %v3783_v48 = vld [vmem:[%s7222_s6 + $0x70] ss:$8 sps:$4 sm:$0xff]   ;;  %2644 = vperm.xlu0 %3686, %v4941_v38  }
 0x157   :  { %v3565_v2 = vadd.f32 %v3564_v41, %v3563_v53  ;;  %v3566_v18 = vpop.f32.mrb[50].mxu0  ;;  %v564_v8 = vpack.c.bf16 %v544_v1, %v543_v56  ;;  %965 = vmatprep.subr.bf16.mxu1 %v3776_v51  ;;  %v4949_v51 = vpop.permute.xlu1 %2181  ;;  %v4962_v1 = vadd.f32 %v4053_v3, %v4790_v21 }
 0x158   :  { %v3567_v7 = vpop.f32.mrb[51].mxu0 }
 0x159   :  { %v491_v9 = vadd.f32 %v3565_v2, %v4709_v5  ;;  %v3568_v15 = vadd.f32 %v3567_v7, %v3566_v18  ;;  %3648 = vmatmul.mubr.bf16.gmra.mrb[4].mxu1 %v564_v8  ;;  %v4965_v2 = vpop.permute.xlu0 %2175  ;;  %2629 = vperm.xlu1 %3687, %v4955_v59   ;;  %v4055_v7 = vld [vmem:[%s7219_s1 + $0x78] sm:$0xff] }
 0x15a   :  { %966 = vmatpush1.bf16.msra.mxu1 %v3774_v36  ;;  %v4978_v12 = vadd.f32 %v4055_v7, %v4800_v20  ;;  %2654 = vperm.xlu0 %3686, %v4962_v1   ;;  %v4057_v20 = vld [vmem:[%s7219_s1 + $0x88] sm:$0xff]  ;;  %v4066_v7 = vld [vmem:[%s7219_s1 + $0xb0] sm:$0xff] }
 0x15b   :  { %v545_v49 = vmax.f32 %v491_v9, 0.0  ;;  %v494_v24 = vadd.f32 %v3568_v15, %v4709_v5  ;;  %967 = vmatprep.subr.bf16.mxu1 %v3779_v46  ;;  %v4054_v46 = vld [vmem:[%s7219_s1 + $0x50] sm:$0xff]  ;;  %v4994_v54 = vadd.f32 %v4057_v20, %v4817_v23  ;;  %v4059_v23 = vld [vmem:[%s7219_s1 + $0x98] sm:$0xff] }
 0x15c   :  { %v4971_v10 = vadd.f32 %v4054_v46, %v4795_v17 }
 0x15d   :  { %v546_v29 = vmax.f32 %v494_v24, 0.0  ;;  %v3569_v26 = vpop.f32.mrb[52].mxu0  ;;  %v4056_v24 = vld [vmem:[%s7219_s1 + $0x60] sm:$0xff] }
 0x15e   :  { %v3570_v16 = vpop.f32.mrb[53].mxu0  ;;  %968 = vmatpush1.bf16.msra.mxu1 %v3777_v6  ;;  %v2186_v6 = vpop.permute.xlu1 %2185  ;;  %v4987_v25 = vadd.f32 %v4056_v24, %v4809_v19  ;;  %2639 = vperm.xlu1 %3687, %v4971_v10  }
 0x15f   :  { %v3571_v35 = vadd.f32 %v3570_v16, %v3569_v26  ;;  %v3572_v31 = vpop.f32.mrb[54].mxu0  ;;  %v565_v28 = vpack.c.bf16 %v546_v29, %v545_v49  ;;  %969 = vmatprep.subr.bf16.mxu1 %v3782_v13  ;;  %v2180_v13 = vpop.permute.xlu0 %2179  ;;  %2664 = vperm.xlu0 %3686, %v4978_v12  }
 0x160   :  { %v3573_v40 = vpop.f32.mrb[55].mxu0 }
 0x161   :  { %v499_v63 = vadd.f32 %v3571_v35, %v4709_v5  ;;  %v3574_v14 = vadd.f32 %v3573_v40, %v3572_v31  ;;  %3651 = vmatprep.mubr.bf16.mxu1 %v565_v28  ;;  %v4058_v28 = vld [vmem:[%s7219_s1 + $0x70] sm:$0xff] }
 0x162   :  { %970 = vmatpush1.bf16.msra.mxu1 %v3780_v57  ;;  %v2190_v19 = vpop.permute.xlu1 %2189  ;;  %v5001_v58 = vadd.f32 %v4058_v28, %v4830_v30  ;;  %2649 = vperm.xlu1 %3687, %v4987_v25   ;;  %v4073_v28 = vld [vmem:[%s7219_s1 + $0xf0] sm:$0xff] }
 0x163   :  { %v547_v56 = vmax.f32 %v499_v63, 0.0  ;;  %v502_v37 = vadd.f32 %v3574_v14, %v4709_v5  ;;  %971 = vmatprep.subr.bf16.mxu1 %v3785_v4  ;;  %v5008_v4 = vadd.f32 %v4059_v23, %v4847_v34  ;;  %2674 = vperm.xlu0 %3686, %v4994_v54   ;;  %v2184_v14 = vpop.permute.xlu0 %2183  ;;  %v4061_v34 = vld [vmem:[%s7219_s1 + $0xa8] sm:$0xff] }
 0x164   :  { %v5024_v43 = vadd.f32 %v4061_v34, %v4876_v42  ;;  %v4063_v42 = vld [vmem:[%s7219_s1 + $0xb8] sm:$0xff] }
 0x165   :  { %v548_v53 = vmax.f32 %v502_v37, 0.0  ;;  %v3575_v41 = vpop.f32.mrb[56].mxu0 }
 0x166   :  { %v3576_v36 = vpop.f32.mrb[57].mxu0  ;;  %972 = vmatpush1.bf16.msra.mxu1 %v3783_v48  ;;  %2659 = vperm.xlu1 %3687, %v5001_v58  }
 0x167   :  { %v3577_v18 = vadd.f32 %v3576_v36, %v3575_v41  ;;  %v3578_v0 = vpop.f32.mrb[58].mxu0  ;;  %v566_v8 = vpack.c.bf16 %v548_v53, %v547_v56  ;;  %v4060_v56 = vld [vmem:[%s7219_s1 + $0x80] sm:$0xff]  ;;  %v2194_v53 = vpop.permute.xlu1 %2193  ;;  %2684 = vperm.xlu0 %3686, %v5008_v4   ;;  %v4062_v41 = vld [vmem:[%s7219_s1 + $0x90] sm:$0xff] }
 0x168   :  { %v3579_v21 = vpop.f32.mrb[59].mxu0  ;;  %v5017_v37 = vadd.f32 %v4060_v56, %v4864_v45  ;;  %v5031_v45 = vadd.f32 %v4062_v41, %v4897_v11  ;;  %v2188_v36 = vpop.permute.xlu0 %2187  ;;  %v4064_v11 = vld [vmem:[%s7219_s1 + $0xa0] sm:$0xff] }
 0x169   :  { %v507_v9 = vadd.f32 %v3577_v18, %v4709_v5  ;;  %v3580_v15 = vadd.f32 %v3579_v21, %v3578_v0  ;;  %3652 = vmatmul.mubr.bf16.gmra.mrb[8].mxu1 %v566_v8  ;;  %v5038_v18 = vadd.f32 %v4063_v42, %v4919_v55  ;;  %v5048_v8 = vadd.f32 %v4064_v11, %v4931_v61  ;;  %v4065_v55 = vld [vmem:[%s7219_s1 + $0xc8] sm:$0xff]  ;;  %v4067_v61 = vld [vmem:[%s7219_s1 + $0xd8] sm:$0xff] }
 0x16a   :  { %2669 = vperm.xlu1 %3687, %v5017_v37   ;;  %v5055_v46 = vadd.f32 %v4065_v55, %v4949_v51 }
 0x16b   :  { %v549_v49 = vmax.f32 %v507_v9, 0.0  ;;  %v510_v17 = vadd.f32 %v3580_v15, %v4709_v5  ;;  %2694 = vperm.xlu0 %3686, %v5024_v43   ;;  %v5042_v0 = vpop.permute.xlu1 %2274  ;;  %v5062_v9 = vadd.f32 %v4066_v7, %v4965_v2  ;;  %v5068_v15 = vadd.f32 %v4067_v61, %v2186_v6  ;;  %v4069_v2 = vld [vmem:[%s7219_s1 + $0xe8] sm:$0xff] }
 0x16c   :  { %v2192_v21 = vpop.permute.xlu0 %2191  ;;  %v5082_v20 = vadd.f32 %v4069_v2, %v2190_v19 }
 0x16d   :  { %v550_v29 = vmax.f32 %v510_v17, 0.0  ;;  %v3581_v26 = vpop.f32.mrb[60].mxu0 }
 0x16e   :  { %v3582_v16 = vpop.f32.mrb[61].mxu0  ;;  %2679 = vperm.xlu1 %3687, %v5031_v45  }
 0x16f   :  { %v3583_v57 = vadd.f32 %v3582_v16, %v3581_v26  ;;  %v3584_v35 = vpop.f32.mrb[62].mxu0  ;;  %v567_v31 = vpack.c.bf16 %v550_v29, %v549_v49  ;;  %2704 = vperm.xlu0 %3686, %v5038_v18   ;;  %v5070_v51 = vpop.permute.xlu1 %2279  ;;  %v4068_v49 = vld [vmem:[%s7219_s1 + $0xc0] sm:$0xff]  ;;  %v4070_v29 = vld [vmem:[%s7219_s1 + $0xd0] sm:$0xff] }
 0x170   :  { %v3585_v40 = vpop.f32.mrb[63].mxu0  ;;  %v2251_v17 = vadd.f32 %v4068_v49, %v2180_v13  ;;  %v5076_v24 = vpop.permute.xlu0 %2269  ;;  %v2253_v26 = vadd.f32 %v4070_v29, %v2184_v14  ;;  %v4071_v13 = vld [vmem:[%s7219_s1 + $0xf8] sm:$0xff] }
 0x171   :  { %v515_v44 = vadd.f32 %v3583_v57, %v4709_v5  ;;  %v3586_v63 = vadd.f32 %v3585_v40, %v3584_v35  ;;  %3655 = vmatprep.mubr.bf16.mxu1 %v567_v31  ;;  %v5093_v16 = vadd.f32 %v4071_v13, %v2194_v53  ;;  %v4072_v35 = vld [vmem:[%s7219_s1 + $0xe0] sm:$0xff]  ;;  %v5107_v40 = vadd.f32 %v4073_v28, %v2192_v21 }
 0x172   :  { %2689 = vperm.xlu1 %3687, %v5048_v8   ;;  %v2255_v31 = vadd.f32 %v4072_v35, %v2188_v36 }
 0x173   :  { %v551_v48 = vmax.f32 %v515_v44, 0.0  ;;  %v518_v30 = vadd.f32 %v3586_v63, %v4709_v5  ;;  %2714 = vperm.xlu0 %3686, %v5055_v46   ;;  %v5085_v6 = vpop.permute.xlu1 %2289  ;;  %7267 = vst [vmem:[#allocation2_spill] sm:$0xff] %v5093_v16  ;;  %7268 = vst [vmem:[#allocation3_spill] sm:$0xff] %v5107_v40  ;;  %v4079_v44 = vmov 1  }
 0x174   :  { %v5096_v57 = vpop.permute.xlu0 %2284 }
 0x175   :  { %v552_v3 = vmax.f32 %v518_v30, 0.0 }
 0x176   :  { %2699 = vperm.xlu1 %3687, %v5062_v9  }
 0x177   :  { %v568_v5 = vpack.c.bf16 %v552_v3, %v551_v48  ;;  %2724 = vperm.xlu0 %3686, %v5068_v15   ;;  %v5101_v19 = vpop.permute.xlu1 %2299 }
 0x178   :  { %v5109_v23 = vpop.permute.xlu0 %2294 }
 0x179   :  { %3656 = vmatmul.mubr.bf16.gmra.mrb[12].mxu1 %v568_v5 }
 0x17a   :  { %989 = vmatprep.mubr.bf16.mxu1 %v4078_v33  ;;  %2709 = vperm.xlu1 %3687, %v2251_v17  }
 0x17b   :  { %2734 = vperm.xlu0 %3686, %v5082_v20   ;;  %v5112_v63 = vpop.permute.xlu1 %2309 }
 0x17c   :  { %v5115_v14 = vpop.permute.xlu0 %2304 }
 0x17e   :  { %2719 = vperm.xlu1 %3687, %v2253_v26  }
 0x17f   :  { %2744 = vperm.xlu0 %3686, %v5093_v16   ;;  %v5118_v48 = vpop.permute.xlu1 %2319 }
 0x180   :  { %v5122_v30 = vpop.permute.xlu0 %2314 }
 0x182   :  { %2729 = vperm.xlu1 %3687, %v2255_v31  }
 0x183   :  { %3689 = vset.pattern.permute.xlu0 %v4079_v44 }
 0x184   :  { %2786 = vperm.xlu0 %3689, %v4862_v52   ;;  %v5126_v52 = vpop.permute.xlu1 %2329  ;;  %v5129_v56 = vpop.permute.xlu0 %2324 }
 0x186   :  { %2739 = vperm.xlu1 %3687, %v5107_v40  }
 0x188   :  { %2798 = vperm.xlu0 %3689, %v4907_v50   ;;  %v5132_v50 = vpop.permute.xlu1 %2339 }
 0x18a   :  { %3688 = vset.pattern.permute.xlu1 %v4079_v44 }
 0x18b   :  { %2782 = vperm.xlu1 %3688, %v4828_v22   ;;  %v5136_v22 = vpop.permute.xlu0 %2334 }
 0x18c   :  { %2806 = vperm.xlu0 %3689, %v4929_v32  }
 0x18f   :  { %2790 = vperm.xlu1 %3688, %v4886_v60   ;;  %v5140_v60 = vpop.permute.xlu1 %2349 }
 0x190   :  { %2814 = vperm.xlu0 %3689, %v4955_v59  }
 0x193   :  { %2794 = vperm.xlu1 %3688, %v4844_v62   ;;  %v5143_v62 = vpop.permute.xlu0 %2344  ;;  %v5146_v32 = vpop.permute.xlu1 %2359 }
 0x194   :  { %2822 = vperm.xlu0 %3689, %v4971_v10  }
 0x197   :  { %2802 = vperm.xlu1 %3688, %v4870_v39   ;;  %v5150_v39 = vpop.permute.xlu0 %2354 }
 0x198   :  { %2830 = vperm.xlu0 %3689, %v4987_v25  }
 0x19b   :  { %2810 = vperm.xlu1 %3688, %v4893_v47   ;;  %v5154_v47 = vpop.permute.xlu1 %2369 }
 0x19c   :  { %2838 = vperm.xlu0 %3689, %v5001_v58  }
 0x19f   :  { %2818 = vperm.xlu1 %3688, %v4917_v27   ;;  %v5157_v27 = vpop.permute.xlu0 %2364  ;;  %v5160_v59 = vpop.permute.xlu1 %2379 }
 0x1a0   :  { %2846 = vperm.xlu0 %3689, %v5017_v37   ;;  %7269 = vst [vmem:[#allocation4_spill] sm:$0xff] %v5160_v59  ;;  %v5188_v37 = vld [vmem:[%s7223_s5] ss:$0 sm:$0xff] }
 0x1a3   :  { %2826 = vperm.xlu1 %3688, %v4941_v38   ;;  %v5163_v38 = vpop.permute.xlu0 %2374 }
 0x1a4   :  { %2854 = vperm.xlu0 %3689, %v5031_v45  }
 0x1a7   :  { %2834 = vperm.xlu1 %3688, %v4962_v1   ;;  %v5166_v1 = vpop.permute.xlu1 %2389  ;;  %v5169_v10 = vpop.permute.xlu0 %2384 }
 0x1a8   :  { %2862 = vperm.xlu0 %3689, %v5048_v8   ;;  %7270 = vst [vmem:[#allocation5_spill] sm:$0xff] %v5166_v1  ;;  %7271 = vst [vmem:[#allocation6_spill] sm:$0xff] %v5169_v10 }
 0x1ab   :  { %2842 = vperm.xlu1 %3688, %v4978_v12   ;;  %v5171_v12 = vpop.permute.xlu1 %2399 }
 0x1ac   :  { %2870 = vperm.xlu0 %3689, %v5062_v9   ;;  %7272 = vst [vmem:[#allocation7_spill] sm:$0xff] %v5171_v12 }
 0x1af   :  { %2850 = vperm.xlu1 %3688, %v4994_v54   ;;  %v5175_v25 = vpop.permute.xlu1 %2409  ;;  %v5177_v54 = vpop.permute.xlu0 %2394 }
 0x1b0   :  { %2878 = vperm.xlu0 %3689, %v2251_v17   ;;  %7273 = vst [vmem:[#allocation8_spill] sm:$0xff] %v5175_v25  ;;  %7274 = vst [vmem:[#allocation9_spill] sm:$0xff] %v5177_v54 }
 0x1b3   :  { %2858 = vperm.xlu1 %3688, %v5008_v4   ;;  %v5180_v58 = vpop.permute.xlu1 %2419  ;;  %v5183_v4 = vpop.permute.xlu0 %2404 }
 0x1b4   :  { %2886 = vperm.xlu0 %3689, %v2253_v26   ;;  %7275 = vst [vmem:[#allocation10_spill] sm:$0xff] %v5180_v58  ;;  %7276 = vst [vmem:[#allocation11_spill] sm:$0xff] %v5183_v4 }
 0x1b7   :  { %2866 = vperm.xlu1 %3688, %v5024_v43   ;;  %v5190_v34 = vpop.permute.xlu0 %2414  ;;  %v5198_v21 = vpop.permute.xlu1 %2428 }
 0x1b8   :  { %2894 = vperm.xlu0 %3689, %v2255_v31   ;;  %7277 = vst [vmem:[#allocation12_spill] sm:$0xff] %v5190_v34 }
 0x1bb   :  { %2874 = vperm.xlu1 %3688, %v5038_v18   ;;  %v5196_v8 = vpop.permute.xlu0 %2424 }
 0x1bc   :  { %7278 = vst [vmem:[#allocation13_spill] sm:$0xff] %v5196_v8 }
 0x1bf   :  { %2882 = vperm.xlu1 %3688, %v5055_v46   ;;  %v5201_v61 = vpop.permute.xlu0 %2432 }
 0x1c3   :  { %2890 = vperm.xlu1 %3688, %v5068_v15   ;;  %v5203_v15 = vpop.permute.xlu1 %2436 }
 0x1c7   :  { %2898 = vperm.xlu1 %3688, %v5082_v20   ;;  %v5206_v20 = vpop.permute.xlu0 %2444  ;;  %v5209_v13 = vpop.permute.xlu1 %2440 }
 0x1dc   :  { %v3629_v43 = vpop.f32.mrb[64].mxu0 }
 0x1dd   :  { %v683_v3 = vadd.f32 %v3629_v43, %v5188_v37  ;;  %v674_v53 = vpop.f32.mrb[65].mxu0 }
 0x1de   :  { %v675_v5 = vadd.f32 %v5188_v37, %v674_v53  ;;  %v3630_v41 = vpop.f32.mrb[66].mxu0 }
 0x1df   :  { %v686_v45 = vadd.f32 %v3630_v41, %v5188_v37  ;;  %v677_v36 = vpop.f32.mrb[67].mxu0  ;;  %v803_v18 = vmax.f32 %v683_v3, 0.0  ;;  %v5214_v41 = vpop.permute.xlu0 %2452 }
 0x1e0   :  { %v678_v42 = vadd.f32 %v5188_v37, %v677_v36  ;;  %v801_v55 = vmax.f32 %v675_v5, 0.0  ;;  %v5216_v36 = vpop.permute.xlu1 %2448 }
 0x1e1   :  { %v804_v11 = vmax.f32 %v686_v45, 0.0 }
 0x1e2   :  { %v802_v46 = vmax.f32 %v678_v42, 0.0 }
 0x1e3   :  { %v834_v7 = vpack.c.bf16 %v804_v11, %v803_v18  ;;  %v5219_v42 = vpop.permute.xlu0 %2460 }
 0x1e4   :  { %v833_v9 = vpack.c.bf16 %v802_v46, %v801_v55  ;;  %v5221_v18 = vpop.permute.xlu1 %2456 }
 0x1e6   :  { %990 = vmatmul.mubr.bf16.vlgmr.msra.gmra.mrb[16].mxu1 %v833_v9 }
 0x1e7   :  { %999 = vmatprep.mubr.bf16.mxu1 %v4078_v33 }
 0x1ec   :  { %v3633_v49 = vpop.f32.mrb[68].mxu0 }
 0x1ed   :  { %v699_v17 = vadd.f32 %v3633_v49, %v5188_v37  ;;  %v690_v2 = vpop.f32.mrb[69].mxu0 }
 0x1ee   :  { %v691_v29 = vadd.f32 %v5188_v37, %v690_v2  ;;  %v3634_v26 = vpop.f32.mrb[70].mxu0  ;;  %1000 = vmatmul.mubr.bf16.gmra.mrb[20].mxu1 %v834_v7  ;;  %v5227_v2 = vpop.permute.xlu0 %2468 }
 0x1ef   :  { %v702_v35 = vadd.f32 %v3634_v26, %v5188_v37  ;;  %v693_v31 = vpop.f32.mrb[71].mxu0  ;;  %1009 = vmatprep.mubr.bf16.mxu1 %v4078_v33  ;;  %v807_v44 = vmax.f32 %v699_v17, 0.0  ;;  %v5230_v26 = vpop.permute.xlu1 %2464 }
 0x1f0   :  { %v694_v28 = vadd.f32 %v5188_v37, %v693_v31  ;;  %v805_v3 = vmax.f32 %v691_v29, 0.0 }
 0x1f1   :  { %v808_v43 = vmax.f32 %v702_v35, 0.0 }
 0x1f2   :  { %v806_v53 = vmax.f32 %v694_v28, 0.0 }
 0x1f3   :  { %v836_v5 = vpack.c.bf16 %v808_v43, %v807_v44 }
 0x1f4   :  { %v835_v45 = vpack.c.bf16 %v806_v53, %v805_v3  ;;  %v5232_v53 = vpop.permute.xlu0 %2476 }
 0x1f6   :  { %1010 = vmatmul.mubr.bf16.gmra.mrb[24].mxu1 %v835_v45 }
 0x1f7   :  { %1019 = vmatprep.mubr.bf16.mxu1 %v4078_v33 }
 0x1f8   :  { %v5237_v45 = vpop.permute.xlu0 %2484 }
 0x1fc   :  { %v3637_v11 = vpop.f32.mrb[72].mxu0 }
 0x1fd   :  { %v715_v55 = vadd.f32 %v3637_v11, %v5188_v37  ;;  %v706_v46 = vpop.f32.mrb[73].mxu0 }
 0x1fe   :  { %v707_v7 = vadd.f32 %v5188_v37, %v706_v46  ;;  %v3638_v9 = vpop.f32.mrb[74].mxu0  ;;  %1020 = vmatmul.mubr.bf16.gmra.mrb[28].mxu1 %v836_v5  ;;  %v5234_v5 = vpop.permute.xlu1 %2472 }
 0x1ff   :  { %v718_v49 = vadd.f32 %v3638_v9, %v5188_v37  ;;  %v709_v17 = vpop.f32.mrb[75].mxu0  ;;  %1029 = vmatprep.mubr.bf16.mxu1 %v4078_v33  ;;  %v811_v35 = vmax.f32 %v715_v55, 0.0 }
 0x200   :  { %v710_v29 = vadd.f32 %v5188_v37, %v709_v17  ;;  %v809_v28 = vmax.f32 %v707_v7, 0.0 }
 0x201   :  { %v812_v31 = vmax.f32 %v718_v49, 0.0 }
 0x202   :  { %v810_v44 = vmax.f32 %v710_v29, 0.0  ;;  %v5239_v46 = vpop.permute.xlu1 %2480 }
 0x203   :  { %v838_v43 = vpack.c.bf16 %v812_v31, %v811_v35 }
 0x204   :  { %v837_v3 = vpack.c.bf16 %v810_v44, %v809_v28  ;;  %v5246_v44 = vpop.permute.xlu0 %2492 }
 0x206   :  { %1030 = vmatmul.mubr.bf16.gmra.mrb[32].mxu1 %v837_v3  ;;  %v5248_v8 = vpop.permute.xlu1 %2488 }
 0x207   :  { %1039 = vmatprep.mubr.bf16.mxu1 %v4078_v33 }
 0x20c   :  { %v3641_v11 = vpop.f32.mrb[76].mxu0 }
 0x20d   :  { %v731_v9 = vadd.f32 %v3641_v11, %v5188_v37  ;;  %v722_v55 = vpop.f32.mrb[77].mxu0 }
 0x20e   :  { %v723_v7 = vadd.f32 %v5188_v37, %v722_v55  ;;  %v3642_v49 = vpop.f32.mrb[78].mxu0  ;;  %1040 = vmatmul.mubr.bf16.gmra.mrb[36].mxu1 %v838_v43  ;;  %v5251_v43 = vpop.permute.xlu0 %2500 }
 0x20f   :  { %v734_v17 = vadd.f32 %v3642_v49, %v5188_v37  ;;  %v725_v29 = vpop.f32.mrb[79].mxu0  ;;  %1049 = vmatprep.mubr.bf16.mxu1 %v4078_v33  ;;  %v815_v31 = vmax.f32 %v731_v9, 0.0  ;;  %v5253_v55 = vpop.permute.xlu1 %2496 }
 0x210   :  { %v726_v35 = vadd.f32 %v5188_v37, %v725_v29  ;;  %v813_v3 = vmax.f32 %v723_v7, 0.0 }
 0x211   :  { %v816_v28 = vmax.f32 %v734_v17, 0.0 }
 0x212   :  { %v814_v58 = vmax.f32 %v726_v35, 0.0  ;;  %v5256_v17 = vpop.permute.xlu0 %2508 }
 0x213   :  { %v840_v11 = vpack.c.bf16 %v816_v28, %v815_v31  ;;  %v5259_v16 = vpop.permute.xlu1 %2504 }
 0x214   :  { %v839_v40 = vpack.c.bf16 %v814_v58, %v813_v3 }
 0x216   :  { %1050 = vmatmul.mubr.bf16.gmra.mrb[40].mxu1 %v839_v40  ;;  %v5264_v4 = vpop.permute.xlu0 %2516 }
 0x217   :  { %1059 = vmatprep.mubr.bf16.mxu1 %v4078_v33 }
 0x21c   :  { %v3645_v49 = vpop.f32.mrb[0].mxu1 }
 0x21d   :  { %v747_v29 = vadd.f32 %v3645_v49, %v5188_v37  ;;  %v738_v9 = vpop.f32.mrb[1].mxu1 }
 0x21e   :  { %v739_v7 = vadd.f32 %v5188_v37, %v738_v9  ;;  %v3646_v35 = vpop.f32.mrb[2].mxu1  ;;  %1060 = vmatmul.mubr.bf16.gmra.mrb[44].mxu1 %v840_v11  ;;  %v5266_v9 = vpop.permute.xlu1 %2512 }
 0x21f   :  { %v750_v40 = vadd.f32 %v3646_v35, %v5188_v37  ;;  %v741_v58 = vpop.f32.mrb[3].mxu1  ;;  %1069 = vmatprep.mubr.bf16.mxu1 %v4078_v33  ;;  %v819_v28 = vmax.f32 %v747_v29, 0.0  ;;  %v5269_v11 = vpop.permute.xlu0 %2524 }
 0x220   :  { %v742_v31 = vadd.f32 %v5188_v37, %v741_v58  ;;  %v817_v34 = vmax.f32 %v739_v7, 0.0  ;;  %7279 = vst [vmem:[#allocation14_spill] sm:$0xff] %v5269_v11 }
 0x221   :  { %v820_v3 = vmax.f32 %v750_v40, 0.0 }
 0x222   :  { %v818_v49 = vmax.f32 %v742_v31, 0.0  ;;  %v5271_v35 = vpop.permute.xlu1 %2520 }
 0x223   :  { %v842_v25 = vpack.c.bf16 %v820_v3, %v819_v28  ;;  %7280 = vst [vmem:[#allocation15_spill] sm:$0xff] %v5271_v35 }
 0x224   :  { %v841_v54 = vpack.c.bf16 %v818_v49, %v817_v34 }
 0x226   :  { %1070 = vmatmul.mubr.bf16.gmra.mrb[48].mxu1 %v841_v54  ;;  %v5277_v54 = vpop.permute.xlu0 %2532  ;;  %v5280_v3 = vpop.permute.xlu1 %2528 }
 0x227   :  { %1079 = vmatprep.mubr.bf16.mxu1 %v4078_v33  ;;  %7281 = vst [vmem:[#allocation16_spill] sm:$0xff] %v5277_v54 }
 0x22c   :  { %v3649_v12 = vpop.f32.mrb[4].mxu1 }
 0x22d   :  { %v763_v58 = vadd.f32 %v3649_v12, %v5188_v37  ;;  %v754_v29 = vpop.f32.mrb[5].mxu1 }
 0x22e   :  { %v755_v7 = vadd.f32 %v5188_v37, %v754_v29  ;;  %v3650_v40 = vpop.f32.mrb[6].mxu1  ;;  %1080 = vmatmul.mubr.bf16.gmra.mrb[52].mxu1 %v842_v25  ;;  %v5282_v29 = vpop.permute.xlu0 %2540 }
 0x22f   :  { %v766_v31 = vadd.f32 %v3650_v40, %v5188_v37  ;;  %v757_v34 = vpop.f32.mrb[7].mxu1  ;;  %1089 = vmatprep.mubr.bf16.mxu1 %v4078_v33  ;;  %v823_v49 = vmax.f32 %v763_v58, 0.0  ;;  %7282 = vst [vmem:[#allocation17_spill] sm:$0xff] %v5282_v29  ;;  %v5284_v25 = vpop.permute.xlu1 %2536 }
 0x230   :  { %v758_v28 = vadd.f32 %v5188_v37, %v757_v34  ;;  %v821_v35 = vmax.f32 %v755_v7, 0.0  ;;  %7283 = vst [vmem:[#allocation18_spill] sm:$0xff] %v5284_v25 }
 0x231   :  { %v824_v10 = vmax.f32 %v766_v31, 0.0 }
 0x232   :  { %v822_v12 = vmax.f32 %v758_v28, 0.0  ;;  %v5287_v40 = vpop.permute.xlu0 %2548 }
 0x233   :  { %v844_v1 = vpack.c.bf16 %v824_v10, %v823_v49  ;;  %7284 = vst [vmem:[#allocation19_spill] sm:$0xff] %v5287_v40  ;;  %v5289_v59 = vpop.permute.xlu1 %2544 }
 0x234   :  { %v843_v11 = vpack.c.bf16 %v822_v12, %v821_v35  ;;  %7285 = vst [vmem:[#allocation20_spill] sm:$0xff] %v5289_v59 }
 0x236   :  { %1090 = vmatmul.mubr.bf16.gmra.mrb[56].mxu1 %v843_v11  ;;  %v5296_v12 = vpop.permute.xlu0 %2589 }
 0x237   :  { %1099 = vmatprep.mubr.bf16.mxu1 %v4078_v33  ;;  %7286 = vst [vmem:[#allocation21_spill] sm:$0xff] %v5296_v12  ;;  %v5298_v29 = vpop.permute.xlu1 %2552 }
 0x238   :  { %7287 = vst [vmem:[#allocation22_spill] sm:$0xff] %v5298_v29 }
 0x23c   :  { %v3653_v54 = vpop.f32.mrb[8].mxu1 }
 0x23d   :  { %v779_v34 = vadd.f32 %v3653_v54, %v5188_v37  ;;  %v770_v58 = vpop.f32.mrb[9].mxu1 }
 0x23e   :  { %v771_v7 = vadd.f32 %v5188_v37, %v770_v58  ;;  %v3654_v31 = vpop.f32.mrb[10].mxu1  ;;  %1100 = vmatmul.mubr.bf16.gmra.mrb[60].mxu1 %v844_v1  ;;  %v5301_v1 = vpop.permute.xlu0 %2604 }
 0x23f   :  { %v782_v10 = vadd.f32 %v3654_v31, %v5188_v37  ;;  %v773_v35 = vpop.f32.mrb[11].mxu1  ;;  %1109 = vmatprep.mubr.bf16.mxu1 %v4078_v33  ;;  %v827_v28 = vmax.f32 %v779_v34, 0.0  ;;  %7288 = vst [vmem:[#allocation23_spill] sm:$0xff] %v5301_v1  ;;  %v5303_v58 = vpop.permute.xlu1 %2594 }
 0x240   :  { %v774_v11 = vadd.f32 %v5188_v37, %v773_v35  ;;  %v825_v40 = vmax.f32 %v771_v7, 0.0  ;;  %7289 = vst [vmem:[#allocation24_spill] sm:$0xff] %v5303_v58 }
 0x241   :  { %v828_v49 = vmax.f32 %v782_v10, 0.0 }
 0x242   :  { %v826_v59 = vmax.f32 %v774_v11, 0.0  ;;  %v5306_v10 = vpop.permute.xlu0 %2614 }
 0x243   :  { %v846_v54 = vpack.c.bf16 %v828_v49, %v827_v28  ;;  %7290 = vst [vmem:[#allocation25_spill] sm:$0xff] %v5306_v10  ;;  %v5309_v29 = vpop.permute.xlu1 %2599 }
 0x244   :  { %v845_v25 = vpack.c.bf16 %v826_v59, %v825_v40  ;;  %7291 = vst [vmem:[#allocation26_spill] sm:$0xff] %v5309_v29 }
 0x246   :  { %1110 = vmatmul.mubr.bf16.gmra.mrb[64].mxu1 %v845_v25 }
 0x247   :  { %1119 = vmatprep.mubr.bf16.mxu1 %v4078_v33  ;;  %v5314_v10 = vpop.permute.xlu1 %2609 }
 0x24c   :  { %v3657_v31 = vpop.f32.mrb[12].mxu1 }
 0x24d   :  { %v795_v35 = vadd.f32 %v3657_v31, %v5188_v37  ;;  %v786_v34 = vpop.f32.mrb[13].mxu1 }
 0x24e   :  { %v787_v7 = vadd.f32 %v5188_v37, %v786_v34  ;;  %v3658_v11 = vpop.f32.mrb[14].mxu1  ;;  %1120 = vmatmul.mubr.bf16.gmra.mrb[68].mxu1 %v846_v54  ;;  %v5316_v34 = vpop.permute.xlu0 %2624 }
 0x24f   :  { %v798_v59 = vadd.f32 %v3658_v11, %v5188_v37  ;;  %v789_v25 = vpop.f32.mrb[15].mxu1  ;;  %1129 = vmatprep.mubr.bf16.mxu1 %v4078_v33  ;;  %v831_v28 = vmax.f32 %v795_v35, 0.0  ;;  %v5319_v54 = vpop.permute.xlu1 %2619 }
 0x250   :  { %v790_v40 = vadd.f32 %v5188_v37, %v789_v25  ;;  %v829_v1 = vmax.f32 %v787_v7, 0.0 }
 0x251   :  { %v832_v49 = vmax.f32 %v798_v59, 0.0 }
 0x252   :  { %v830_v31 = vmax.f32 %v790_v40, 0.0  ;;  %v5321_v11 = vpop.permute.xlu0 %2634 }
 0x253   :  { %v848_v58 = vpack.c.bf16 %v832_v49, %v831_v28  ;;  %v5323_v29 = vpop.permute.xlu1 %2629 }
 0x254   :  { %v847_v12 = vpack.c.bf16 %v830_v31, %v829_v1 }
 0x256   :  { %1130 = vmatmul.mubr.bf16.gmra.mrb[72].mxu1 %v847_v12  ;;  %v5325_v37 = vpop.permute.xlu0 %2644 }
 0x257   :  { %1139 = vmatprep.mubr.bf16.mxu1 %v4078_v33  ;;  %v5327_v35 = vpop.permute.xlu1 %2639 }
 0x258   :  { %7292 = vst [vmem:[#allocation27_spill] sm:$0xff] %v5327_v35 }
 0x25a   :  { %v5329_v7 = vpop.permute.xlu0 %2654 }
 0x25b   :  { %v5331_v1 = vpop.permute.xlu1 %2649 }
 0x25c   :  { %7293 = vst [vmem:[#allocation28_spill] sm:$0xff] %v5331_v1 }
 0x25e   :  { %1140 = vmatmul.mubr.bf16.gmra.mrb[76].mxu1 %v848_v58  ;;  %v5333_v59 = vpop.permute.xlu0 %2664 }
 0x25f   :  { %7294 = vst [vmem:[#allocation29_spill] sm:$0xff] %v5333_v59  ;;  %v5335_v12 = vpop.permute.xlu1 %2659 }
 0x260   :  { %7295 = vst [vmem:[#allocation30_spill] sm:$0xff] %v5335_v12 }
 0x262   :  { %v5337_v33 = vpop.permute.xlu0 %2674 }
 0x263   :  { %7296 = vst [vmem:[#allocation31_spill] sm:$0xff] %v5337_v33  ;;  %v5339_v25 = vpop.permute.xlu1 %2669 }
 0x264   :  { %7297 = vst [vmem:[#allocation32_spill] sm:$0xff] %v5339_v25 }
 0x266   :  { %v5341_v40 = vpop.permute.xlu0 %2684 }
 0x267   :  { %7298 = vst [vmem:[#allocation33_spill] sm:$0xff] %v5341_v40  ;;  %v5343_v58 = vpop.permute.xlu1 %2679  ;;  %v867_v40 = vlaneseq }
 0x268   :  { %7299 = vst [vmem:[#allocation34_spill] sm:$0xff] %v5343_v58 }
 0x26a   :  { %v5345_v28 = vpop.permute.xlu0 %2694 }
 0x26b   :  { %7300 = vst [vmem:[#allocation35_spill] sm:$0xff] %v5345_v28  ;;  %v5347_v49 = vpop.permute.xlu1 %2689 }
 0x26c   :  { %7301 = vst [vmem:[#allocation36_spill] sm:$0xff] %v5347_v49  ;;  %v5367_v49 = vand.u32 127, %v867_v40 }
 0x26e   :  { %v5349_v31 = vpop.permute.xlu0 %2704  ;;  %vm1152_vm0 = vcmp.ge.s32.totalorder %v5367_v49, 16  ;;  %vm1153_vm1 = vcmp.lt.s32.totalorder %v5367_v49, 32  ;;  %vm1155_vm3 = vcmp.ge.s32.totalorder %v5367_v49, 32  ;;  %vm1156_vm4 = vcmp.lt.s32.totalorder %v5367_v49, 48 }
 0x26f   :  { %7302 = vst [vmem:[#allocation37_spill] sm:$0xff] %v5349_v31  ;;  %v5351_v35 = vpop.permute.xlu1 %2699  ;;  %vm5377_vm2 = vmand %vm1152_vm0, %vm1153_vm1  ;;  %vm1159_vm6 = vcmp.lt.s32.totalorder %v5367_v49, 5  ;;  %vm1161_vm7 = vcmp.ge.s32.totalorder %v5367_v49, 8  ;;  %vm1162_vm8 = vcmp.lt.s32.totalorder %v5367_v49, 12 }
 0x270   :  { %7303 = vst [vmem:[#allocation38_spill] sm:$0xff] %v5351_v35  ;;  %vm5594_vm5 = vmand %vm1155_vm3, %vm1156_vm4 }
 0x271   :  { %vm5690_vm9 = vmand %vm1161_vm7, %vm1162_vm8 }
 0x272   :  { %v5353_v1 = vpop.permute.xlu0 %2714  ;;  %vm6627_vm10 = vmor %vm1159_vm6, %vm5690_vm9 }
 0x273   :  { %7304 = vst [vmem:[#allocation39_spill] sm:$0xff] %v5353_v1  ;;  %v5355_v59 = vpop.permute.xlu1 %2709 }
 0x274   :  { %7305 = vst [vmem:[#allocation40_spill] sm:$0xff] %v5355_v59 }
 0x276   :  { %v5357_v12 = vpop.permute.xlu0 %2724 }
 0x277   :  { %7306 = vst [vmem:[#allocation41_spill] sm:$0xff] %v5357_v12  ;;  %v5359_v33 = vpop.permute.xlu1 %2719 }
 0x278   :  { %7307 = vst [vmem:[#allocation42_spill] sm:$0xff] %v5359_v33 }
 0x27a   :  { %v5361_v25 = vpop.permute.xlu0 %2734 }
 0x27b   :  { %7308 = vst [vmem:[#allocation43_spill] sm:$0xff] %v5361_v25  ;;  %v5363_v58 = vpop.permute.xlu1 %2729 }
 0x27c   :  { %7309 = vst [vmem:[#allocation44_spill] sm:$0xff] %v5363_v58  ;;  %v5399_v58 = vsel %vm5377_vm2, %v5096_v57, %v5209_v13  ;;  %v5423_v57 = vsel %vm5377_vm2, %v5115_v14, %v5221_v18  ;;  %v5447_v14 = vsel %vm5377_vm2, %v5118_v48, %v5227_v2  ;;  %v5467_v48 = vsel %vm5377_vm2, %v5136_v22, %v5239_v46  ;;  %v7334_v18 = vld [vmem:[#allocation9_spill] sm:$0xff] }
 0x27d   :  { %v5491_v22 = vsel %vm5377_vm2, %v5150_v39, %v5253_v55  ;;  %v5511_v39 = vsel %vm5377_vm2, %v5157_v27, %v5259_v16  ;;  %v7328_v16 = vld [vmem:[#allocation15_spill] sm:$0xff]  ;;  %v7329_v27 = vld [vmem:[#allocation6_spill] sm:$0xff]  ;;  %v5548_v2 = vsel %vm5377_vm2, %v7334_v18, %v5280_v3  ;;  %v7356_v55 = vld [vmem:[#allocation36_spill] sm:$0xff] }
 0x27e   :  { %v5365_v28 = vpop.permute.xlu0 %2744  ;;  %7318 = vst [vmem:[#allocation51_spill] sm:$0xff] %v5491_v22  ;;  %7321 = vst [vmem:[#allocation54_spill] sm:$0xff] %v5511_v39 }
 0x27f   :  { %7310 = vst [vmem:[#allocation45_spill] sm:$0xff] %v5365_v28  ;;  %v5369_v31 = vpop.permute.xlu1 %2739  ;;  %v5387_v28 = vsel %vm5377_vm2, %v5076_v24, %v5198_v21  ;;  %v5411_v24 = vsel %vm5377_vm2, %v5085_v6, %v5206_v20  ;;  %v5435_v6 = vsel %vm5377_vm2, %v5112_v63, %v5219_v42  ;;  %v868_v63 = vshrl.u32 %v867_v40, 7  ;;  %v7326_v20 = vld [vmem:[#allocation5_spill] sm:$0xff]  ;;  %7335 = vst [vmem:[#allocation6_spill] sm:$0xff] %v5548_v2  ;;  %v7350_v2 = vld [vmem:[#allocation32_spill] sm:$0xff] }
 0x280   :  { %7311 = vst [vmem:[#allocation46_spill] sm:$0xff] %v5369_v31  ;;  %v5393_v31 = vsel %vm5377_vm2, %v5070_v51, %v5203_v15  ;;  %v5417_v51 = vsel %vm5377_vm2, %v5109_v23, %v5216_v36  ;;  %v5441_v23 = vsel %vm5377_vm2, %v5122_v30, %v5230_v26  ;;  %v5461_v30 = vsel %vm5377_vm2, %v5129_v56, %v5234_v5  ;;  %v7325_v15 = vld [vmem:[#allocation14_spill] sm:$0xff]  ;;  %v7332_v36 = vld [vmem:[#allocation7_spill] sm:$0xff] }
 0x281   :  { %v5485_v56 = vsel %vm5377_vm2, %v5143_v62, %v5248_v8  ;;  %v7323_v8 = vld [vmem:[#allocation4_spill] sm:$0xff]  ;;  %v5529_v13 = vsel %vm5377_vm2, %v7326_v20, %v7325_v15  ;;  %v7336_v26 = vld [vmem:[#allocation18_spill] sm:$0xff]  ;;  %v873_v40 = vsub.s32 1, %v868_v63  ;;  %v2751_v20 = vsel %vm5377_vm2, %v5314_v10, 0.0  ;;  %v7346_v15 = vld [vmem:[#allocation27_spill] sm:$0xff] }
 0x282   :  { %v5371_v35 = vpop.permute.xlu0 %2786  ;;  %7317 = vst [vmem:[#allocation50_spill] sm:$0xff] %v5485_v56  ;;  %7327 = vst [vmem:[#allocation14_spill] sm:$0xff] %v5529_v13  ;;  %v7365_v56 = vsel %vm5377_vm2, %v5319_v54, 0.0 }
 0x283   :  { %v5381_v25 = vpop.permute.xlu1 %2782 }
 0x284   :  { %7314 = vst [vmem:[#allocation47_spill] sm:$0xff] %v5381_v25  ;;  %v5405_v25 = vsel %vm5377_vm2, %v5042_v0, %v5201_v61  ;;  %v5429_v0 = vsel %vm5377_vm2, %v5101_v19, %v5214_v41  ;;  %v5453_v19 = vsel %vm5377_vm2, %v5126_v52, %v5232_v53  ;;  %v5473_v52 = vsel %vm5377_vm2, %v5132_v50, %v5237_v45  ;;  %v7337_v53 = vld [vmem:[#allocation11_spill] sm:$0xff]  ;;  %v7339_v45 = vld [vmem:[#allocation21_spill] sm:$0xff] }
 0x285   :  { %7315 = vst [vmem:[#allocation48_spill] sm:$0xff] %v5473_v52  ;;  %v5479_v61 = vsel %vm5377_vm2, %v5140_v60, %v5246_v44  ;;  %v5497_v50 = vsel %vm5377_vm2, %v5146_v32, %v5251_v43  ;;  %v5503_v60 = vsel %vm5377_vm2, %v5154_v47, %v5256_v17  ;;  %v5517_v32 = vsel %vm5377_vm2, %v5163_v38, %v5266_v9  ;;  %v7331_v38 = vld [vmem:[#allocation16_spill] sm:$0xff]  ;;  %v865_v44 = vld [vmem:[%s7224_s7] sm:$0x3]  ;;  %v7341_v17 = vld [vmem:[#allocation23_spill] sm:$0xff] }
 0x286   :  { %v5375_v12 = vpop.permute.xlu0 %2798  ;;  %7316 = vst [vmem:[#allocation49_spill] sm:$0xff] %v5479_v61  ;;  %7319 = vst [vmem:[#allocation52_spill] sm:$0xff] %v5497_v50  ;;  %v5523_v47 = vsel %vm5377_vm2, %v7323_v8, %v5264_v4  ;;  %v5535_v41 = vsel %vm5377_vm2, %v7329_v27, %v7328_v16  ;;  %v5541_v42 = vsel %vm5377_vm2, %v7332_v36, %v7331_v38  ;;  %v869_v4 = vsub.s32 0, %v868_v63  ;;  %v7340_v43 = vld [vmem:[#allocation24_spill] sm:$0xff]  ;;  %v7342_v8 = vld [vmem:[#allocation26_spill] sm:$0xff] }
 0x287   :  { %7320 = vst [vmem:[#allocation53_spill] sm:$0xff] %v5503_v60  ;;  %v5505_v62 = vpop.permute.xlu1 %2790  ;;  %7322 = vst [vmem:[#allocation55_spill] sm:$0xff] %v5517_v32  ;;  %v5554_v5 = vsel %vm5377_vm2, %v7337_v53, %v7336_v26  ;;  %v7343_v16 = vld [vmem:[#allocation25_spill] sm:$0xff]  ;;  %v4080_v27 = vmov 0.0   ;;  %v7347_v63 = vld [vmem:[#allocation28_spill] sm:$0xff]  ;;  %v5621_v36 = vrot.slane %v865_v44, %v873_v40 }
 0x288   :  { %7324 = vst [vmem:[#allocation4_spill] sm:$0xff] %v5523_v47  ;;  %7330 = vst [vmem:[#allocation5_spill] sm:$0xff] %v5535_v41  ;;  %v5600_v53 = vrot.slane %v865_v44, %v869_v4  ;;  %v2262_v10 = vsel %vm5377_vm2, 0.2, %v4080_v27  ;;  %v2263_v9 = vsel %vm5594_vm5, 0.2, %v4080_v27 }
 0x289   :  { %7333 = vst [vmem:[#allocation15_spill] sm:$0xff] %v5541_v42  ;;  %7338 = vst [vmem:[#allocation16_spill] sm:$0xff] %v5554_v5  ;;  %v7349_v5 = vld [vmem:[#allocation30_spill] sm:$0xff]  ;;  %v5643_v13 = vadd.f32 %v2263_v9, %v2262_v10  ;;  %v2913_v47 = vsel %vm5594_vm5, %v5375_v12, 0.0  ;;  %v2911_v12 = vsel %vm5594_vm5, %v5505_v62, 0.0 }
 0x28a   :  { %v5455_v21 = vpop.permute.xlu0 %2806  ;;  %v7353_v32 = vld [vmem:[#allocation34_spill] sm:$0xff]  ;;  %v2259_v59 = vsel %vm5377_vm2, 0.1, %v4080_v27  ;;  %v2260_v9 = vsel %vm5594_vm5, 0.1, %v4080_v27  ;;  %v5720_v38 = vadd.f32 %v2913_v47, %v2751_v20 }
 0x28b   :  { %v5598_v26 = vpop.permute.xlu1 %2794  ;;  %v7361_v22 = vld [vmem:[#allocation47_spill] sm:$0xff] }
 0x28e   :  { %v5569_v3 = vpop.permute.xlu0 %2814 }
 0x28f   :  { %v5663_v4 = vpop.permute.xlu1 %2802 }
 0x292   :  { %v5641_v42 = vpop.permute.xlu0 %2822 }
 0x2b9   :  { %v991_v60 = vpop.f32.mrb[16].mxu1 }
 0x2ba   :  { %v5650_v46 = vadd.f32 %v991_v60, %v5600_v53  ;;  %v993_v50 = vpop.f32.mrb[17].mxu1 }
 0x2bb   :  { %v994_v60 = vadd.f32 %v993_v50, %v5621_v36  ;;  %v995_v40 = vpop.f32.mrb[18].mxu1  ;;  %v2910_v50 = vsel %vm5594_vm5, %v5371_v35, 0.0  ;;  %v2909_v35 = vsel %vm5594_vm5, %v7361_v22, 0.0 }
 0x2bc   :  { %v5673_v61 = vadd.f32 %v995_v40, %v5600_v53  ;;  %v997_v10 = vpop.f32.mrb[19].mxu1  ;;  %v1167_v39 = vsel %vm1159_vm6, %v5650_v46, -1e+30  ;;  %v1265_v27 = vsel %vm5690_vm9, %v5650_v46, -1e+30 }
 0x2bd   :  { %v3069_v1 = vmul.f32 %v5643_v13, %v994_v60  ;;  %v998_v44 = vadd.f32 %v997_v10, %v5621_v36  ;;  %1199 = vmax.xlane.f32.xlu0 %v1167_v39  ;;  %v2915_v39 = vsel %vm5594_vm5, %v5455_v21, 0.0  ;;  %v2831_v60 = vpop.permute.xlu0 %2830  ;;  %v7363_v21 = vsel %vm5377_vm2, %v7340_v43, 0.0 }
 0x2be   :  { %v1266_v10 = vsel %vm5690_vm9, %v5673_v61, -1e+30  ;;  %v5718_v52 = vadd.f32 %v2910_v50, %v7363_v21  ;;  %v5735_v43 = vadd.f32 %v2915_v39, %v7365_v56  ;;  %v7366_v21 = vsel %vm5377_vm2, %v7342_v8, 0.0 }
 0x2bf   :  { %v3101_v22 = vmin.f32 %v3069_v1, 4.1351666  ;;  %v3070_v41 = vmul.f32 %v5643_v13, %v998_v44  ;;  %1299 = vmax.xlane.f32.xlu1 %v1266_v10  ;;  %v7364_v1 = vsel %vm5377_vm2, %v7339_v45, 0.0  ;;  %v2811_v10 = vpop.permute.xlu1 %2810  ;;  %v5741_v62 = vadd.f32 %v2911_v12, %v7366_v21 }
 0x2c0   :  { %v5729_v44 = vadd.f32 %v2909_v35, %v7364_v1  ;;  %v2917_v45 = vsel %vm5594_vm5, %v5569_v3, 0.0  ;;  %v5746_v35 = vadd.f32 %v2260_v9, %v2259_v59 }
 0x2c1   :  { %v3133_v50 = vmul.f32 1.442695, %v3101_v22  ;;  %v3102_v47 = vmin.f32 %v3070_v41, 4.1351666  ;;  %v1001_v20 = vpop.f32.mrb[20].mxu1  ;;  %1297 = vmax.xlane.f32.xlu0 %v1265_v27  ;;  %v2912_v41 = vsel %vm5594_vm5, %v5598_v26, 0.0  ;;  %v2839_v1 = vpop.permute.xlu0 %2838 }
 0x2c2   :  { %v5749_v54 = vadd.f32 %v1001_v20, %v5600_v53  ;;  %v1003_v56 = vpop.f32.mrb[21].mxu1  ;;  %v2919_v22 = vsel %vm5594_vm5, %v5641_v42, 0.0  ;;  %v1168_v26 = vsel %vm1159_vm6, %v5673_v61, -1e+30  ;;  %v2914_v27 = vsel %vm5594_vm5, %v5663_v4, 0.0 }
 0x2c3   :  { %3786 = vpow2.f32 %v3133_v50  ;;  %v3135_v39 = vmul.f32 1.442695, %v3102_v47  ;;  %v1004_v8 = vadd.f32 %v1003_v56, %v5621_v36  ;;  %v1005_v12 = vpop.f32.mrb[22].mxu1  ;;  %v2916_v47 = vsel %vm5594_vm5, %v2811_v10, 0.0 }
 0x2c4   :  { %7367 = vst [vmem:[#allocation7_spill] sm:$0xff] %v5749_v54  ;;  %v5759_v59 = vadd.f32 %v1005_v12, %v5600_v53  ;;  %v1007_v3 = vpop.f32.mrb[23].mxu1  ;;  %v1169_v9 = vsel %vm1159_vm6, %v5749_v54, -1e+30  ;;  %v7369_v20 = vsel %vm5377_vm2, %v5323_v29, 0.0  ;;  %v2921_v4 = vsel %vm5594_vm5, %v2831_v60, 0.0  ;;  %v2819_v12 = vpop.permute.xlu1 %2818 }
 0x2c5   :  { %3788 = vpow2.f32 %v3135_v39  ;;  %v3071_v42 = vmul.f32 %v5643_v13, %v1004_v8  ;;  %v1008_v50 = vadd.f32 %v1007_v3, %v5621_v36  ;;  %1203 = vmax.xlane.f32.xlu1 %v1169_v9  ;;  %1201 = vmax.xlane.f32.xlu0 %v1168_v26  ;;  %v5778_v21 = vadd.f32 %v2917_v45, %v7369_v20 }
 0x2c6   :  { %7368 = vst [vmem:[#allocation9_spill] sm:$0xff] %v5759_v59  ;;  %v2973_v56 = vmul.f32 %v5746_v35, %v5650_v46  ;;  %v7370_v39 = vsel %vm5377_vm2, %v7341_v17, 0.0  ;;  %v2974_v10 = vmul.f32 %v5746_v35, %v5673_v61  ;;  %v7371_v60 = vsel %vm5377_vm2, %v7343_v16, 0.0 }
 0x2c7   :  { %v5788_v8 = vadd.f32 %v2912_v41, %v7370_v39  ;;  %v3103_v3 = vmin.f32 %v3071_v42, 4.1351666  ;;  %v3072_v29 = vmul.f32 %v5643_v13, %v1008_v50  ;;  %v5797_v45 = vadd.f32 %v2914_v27, %v7371_v60 }
 0x2c8   :  { %v7372_v9 = vsel %vm5377_vm2, %v7346_v15, 0.0  ;;  %v1170_v41 = vsel %vm1159_vm6, %v5759_v59, -1e+30  ;;  %v1267_v26 = vsel %vm5690_vm9, %v5749_v54, -1e+30  ;;  %v7373_v16 = vsel %vm5377_vm2, %v5316_v34, 0.0 }
 0x2c9   :  { %v5803_v17 = vadd.f32 %v2919_v22, %v7372_v9  ;;  %v5815_v27 = vadd.f32 %v2916_v47, %v7373_v16  ;;  %v7374_v15 = vsel %vm5377_vm2, %v7347_v63, 0.0  ;;  %v3137_v42 = vmul.f32 1.442695, %v3103_v3  ;;  %v1011_v20 = vpop.f32.mrb[24].mxu1  ;;  %1205 = vmax.xlane.f32.xlu1 %v1170_v41  ;;  %1301 = vmax.xlane.f32.xlu0 %v1267_v26  ;;  %v5831_v63 = vpop.permute.xlu0 %2846 }
 0x2ca   :  { %v5821_v22 = vadd.f32 %v2921_v4, %v7374_v15  ;;  %v3104_v50 = vmin.f32 %v3072_v29, 4.1351666  ;;  %v2918_v39 = vsel %vm5594_vm5, %v2819_v12, 0.0  ;;  %v2923_v60 = vsel %vm5594_vm5, %v2839_v1, 0.0  ;;  %v1013_v9 = vpop.f32.mrb[25].mxu1 }
 0x2cb   :  { %v3005_v34 = vmul.f32 %v2973_v56, %v5387_v28  ;;  %v5829_v47 = vadd.f32 %v1011_v20, %v5600_v53  ;;  %v3006_v4 = vmul.f32 %v2974_v10, %v5405_v25  ;;  %3790 = vpow2.f32 %v3137_v42  ;;  %v1015_v41 = vpop.f32.mrb[26].mxu1 }
 0x2cc   :  { %v3139_v3 = vmul.f32 1.442695, %v3104_v50  ;;  %v1014_v29 = vadd.f32 %v1013_v9, %v5621_v36  ;;  %v2975_v12 = vmul.f32 %v5746_v35, %v5749_v54  ;;  %v5838_v1 = vadd.f32 %v1015_v41, %v5600_v53  ;;  %v1017_v56 = vpop.f32.mrb[27].mxu1 }
 0x2cd   :  { %v1268_v26 = vsel %vm5690_vm9, %v5759_v59, -1e+30  ;;  %v1171_v10 = vsel %vm1159_vm6, %v5829_v47, -1e+30  ;;  %v3787_v16 = vpop.eup %3786  ;;  %v2976_v15 = vmul.f32 %v5746_v35, %v5759_v59  ;;  %v1018_v50 = vadd.f32 %v1017_v56, %v5621_v36 }
 0x2ce   :  { %3792 = vpow2.f32 %v3139_v3  ;;  %v3073_v42 = vmul.f32 %v5643_v13, %v1014_v29  ;;  %1303 = vmax.xlane.f32.xlu1 %v1268_v26  ;;  %1207 = vmax.xlane.f32.xlu0 %v1171_v10  ;;  %v7375_v20 = vsel %vm5377_vm2, %v5321_v11, 0.0  ;;  %v7376_v41 = vsel %vm5377_vm2, %v7349_v5, 0.0 }
 0x2cf   :  { %v5854_v9 = vadd.f32 %v2918_v39, %v7375_v20  ;;  %v5860_v54 = vadd.f32 %v2923_v60, %v7376_v41  ;;  %v2925_v3 = vsel %vm5594_vm5, %v5831_v63, 0.0  ;;  %v3197_v29 = vmul.f32 %v3787_v16, %v5387_v28  ;;  %v3789_v56 = vpop.eup %3788  ;;  %v5880_v41 = vpop.permute.xlu1 %2826 }
 0x2d0   :  { %v3037_v26 = vadd.f32 %v3005_v34, %v5729_v44  ;;  %v3038_v10 = vadd.f32 %v3006_v4, %v5718_v52  ;;  %v3105_v11 = vmin.f32 %v3073_v42, 4.1351666  ;;  %v3074_v39 = vmul.f32 %v5643_v13, %v1018_v50 }
 0x2d1   :  { %v3229_v20 = vmul.f32 0.5, %v3197_v29  ;;  %v3198_v59 = vmul.f32 %v3789_v56, %v5405_v25  ;;  %v1172_v5 = vsel %vm1159_vm6, %v5838_v1, -1e+30  ;;  %v1269_v60 = vsel %vm5690_vm9, %v5829_v47, -1e+30  ;;  %v1021_v63 = vpop.f32.mrb[28].mxu1 }
 0x2d2   :  { %v3007_v28 = vmul.f32 %v2975_v12, %v5393_v31  ;;  %v3008_v44 = vmul.f32 %v2976_v15, %v5399_v58  ;;  %v3141_v34 = vmul.f32 1.442695, %v3105_v11  ;;  %v3106_v52 = vmin.f32 %v3074_v39, 4.1351666  ;;  %1209 = vmax.xlane.f32.xlu1 %v1172_v5  ;;  %1305 = vmax.xlane.f32.xlu0 %v1269_v60  ;;  %v1023_v50 = vpop.f32.mrb[29].mxu1 }
 0x2d3   :  { %v3261_v4 = vsub.f32 %v3037_v26, %v3229_v20  ;;  %v3325_v16 = vadd.f32 %v3229_v20, %v3037_v26  ;;  %v3230_v25 = vmul.f32 0.5, %v3198_v59  ;;  %v2977_v42 = vmul.f32 %v5746_v35, %v5829_v47  ;;  %v1025_v56 = vpop.f32.mrb[30].mxu1 }
 0x2d4   :  { %3794 = vpow2.f32 %v3141_v34  ;;  %v3143_v29 = vmul.f32 1.442695, %v3106_v52  ;;  %v5883_v12 = vadd.f32 %v1021_v63, %v5600_v53  ;;  %v1024_v15 = vadd.f32 %v1023_v50, %v5621_v36  ;;  %v1027_v39 = vpop.f32.mrb[31].mxu1 }
 0x2d5   :  { %3293 = vst [vmem:[%s7225_s9] sm:$0xff] %v3261_v4  ;;  %3357 = vst [vmem:[%s7226_s10] sm:$0xff] %v3325_v16  ;;  %v3262_v59 = vsub.f32 %v3038_v10, %v3230_v25  ;;  %v3326_v26 = vadd.f32 %v3230_v25, %v3038_v10  ;;  %v5893_v11 = vadd.f32 %v1025_v56, %v5600_v53  ;;  %v1270_v20 = vsel %vm5690_vm9, %v5838_v1, -1e+30  ;;  %v3791_v5 = vpop.eup %3790 }
 0x2d6   :  { %v2978_v60 = vmul.f32 %v5746_v35, %v5838_v1  ;;  %3796 = vpow2.f32 %v3143_v29  ;;  %v3075_v34 = vmul.f32 %v5643_v13, %v1024_v15  ;;  %v1028_v52 = vadd.f32 %v1027_v39, %v5621_v36  ;;  %1307 = vmax.xlane.f32.xlu1 %v1270_v20 }
 0x2d7   :  { %v2920_v10 = vsel %vm5594_vm5, %v5880_v41, 0.0  ;;  %v7377_v63 = vsel %vm5377_vm2, %v7350_v2, 0.0  ;;  %3294 = vst [vmem:[%s7225_s9 + $0x8] sm:$0xff] %v3262_v59  ;;  %3358 = vst [vmem:[%s7226_s10 + $0x8] sm:$0xff] %v3326_v26  ;;  %v3199_v16 = vmul.f32 %v3791_v5, %v5393_v31  ;;  %v1173_v25 = vsel %vm1159_vm6, %v5883_v12, -1e+30 }
 0x2d8   :  { %v5909_v4 = vadd.f32 %v2925_v3, %v7377_v63  ;;  %v3793_v50 = vpop.eup %3792  ;;  %v3039_v41 = vadd.f32 %v3007_v28, %v5741_v62  ;;  %v3040_v2 = vadd.f32 %v3008_v44, %v5788_v8  ;;  %v3107_v3 = vmin.f32 %v3075_v34, 4.1351666  ;;  %1211 = vmax.xlane.f32.xlu0 %v1173_v25  ;;  %v5935_v34 = vpop.permute.xlu0 %2854 }
 0x2d9   :  { %v3076_v29 = vmul.f32 %v5643_v13, %v1028_v52  ;;  %v3231_v15 = vmul.f32 0.5, %v3199_v16  ;;  %v3200_v56 = vmul.f32 %v3793_v50, %v5399_v58  ;;  %v3009_v59 = vmul.f32 %v2977_v42, %v5411_v24  ;;  %v1031_v44 = vpop.f32.mrb[32].mxu1 }
 0x2da   :  { %v1174_v31 = vsel %vm1159_vm6, %v5893_v11, -1e+30  ;;  %v3010_v26 = vmul.f32 %v2978_v60, %v5417_v51  ;;  %v2979_v62 = vmul.f32 %v5746_v35, %v5883_v12  ;;  %v3145_v28 = vmul.f32 1.442695, %v3107_v3  ;;  %v1033_v42 = vpop.f32.mrb[33].mxu1 }
 0x2db   :  { %v3108_v8 = vmin.f32 %v3076_v29, 4.1351666  ;;  %1213 = vmax.xlane.f32.xlu1 %v1174_v31  ;;  %v3263_v39 = vsub.f32 %v3039_v41, %v3231_v15  ;;  %v3327_v20 = vadd.f32 %v3231_v15, %v3039_v41  ;;  %v3232_v5 = vmul.f32 0.5, %v3200_v56  ;;  %v1035_v16 = vpop.f32.mrb[34].mxu1 }
 0x2dc   :  { %v1271_v58 = vsel %vm5690_vm9, %v5883_v12, -1e+30  ;;  %3798 = vpow2.f32 %v3145_v28  ;;  %v5938_v60 = vadd.f32 %v1031_v44, %v5600_v53  ;;  %v1034_v63 = vadd.f32 %v1033_v42, %v5621_v36  ;;  %v1037_v3 = vpop.f32.mrb[35].mxu1 }
 0x2dd   :  { %v3147_v52 = vmul.f32 1.442695, %v3108_v8  ;;  %1309 = vmax.xlane.f32.xlu0 %v1271_v58  ;;  %3295 = vst [vmem:[%s7225_s9 + $0x10] sm:$0xff] %v3263_v39  ;;  %3359 = vst [vmem:[%s7226_s10 + $0x10] sm:$0xff] %v3327_v20  ;;  %v3264_v25 = vsub.f32 %v3040_v2, %v3232_v5  ;;  %v3328_v50 = vadd.f32 %v3232_v5, %v3040_v2  ;;  %v1272_v29 = vsel %vm5690_vm9, %v5893_v11, -1e+30 }
 0x2de   :  { %v5948_v41 = vadd.f32 %v1035_v16, %v5600_v53  ;;  %v3795_v15 = vpop.eup %3794  ;;  %v2980_v56 = vmul.f32 %v5746_v35, %v5893_v11  ;;  %v3077_v31 = vmul.f32 %v5643_v13, %v1034_v63  ;;  %v1038_v28 = vadd.f32 %v1037_v3, %v5621_v36 }
 0x2df   :  { %3800 = vpow2.f32 %v3147_v52  ;;  %1311 = vmax.xlane.f32.xlu1 %v1272_v29  ;;  %v7378_v2 = vsel %vm5377_vm2, %v5325_v37, 0.0  ;;  %v2927_v44 = vsel %vm5594_vm5, %v5935_v34, 0.0  ;;  %3296 = vst [vmem:[%s7225_s9 + $0x18] sm:$0xff] %v3264_v25  ;;  %3360 = vst [vmem:[%s7226_s10 + $0x18] sm:$0xff] %v3328_v50  ;;  %v3201_v39 = vmul.f32 %v3795_v15, %v5411_v24  ;;  %v5990_v29 = vpop.permute.xlu1 %2834 }
 0x2e0   :  { %v5961_v8 = vadd.f32 %v2920_v10, %v7378_v2  ;;  %v1175_v37 = vsel %vm1159_vm6, %v5938_v60, -1e+30  ;;  %v3797_v10 = vpop.eup %3796  ;;  %v3041_v20 = vadd.f32 %v3009_v59, %v5720_v38  ;;  %v3042_v5 = vadd.f32 %v3010_v26, %v5797_v45 }
 0x2e1   :  { %v3109_v58 = vmin.f32 %v3077_v31, 4.1351666  ;;  %v3078_v42 = vmul.f32 %v5643_v13, %v1038_v28  ;;  %1215 = vmax.xlane.f32.xlu0 %v1175_v37  ;;  %v3233_v34 = vmul.f32 0.5, %v3201_v39  ;;  %v3202_v52 = vmul.f32 %v3797_v10, %v5417_v51  ;;  %v1041_v26 = vpop.f32.mrb[36].mxu1 }
 0x2e2   :  { %v3011_v63 = vmul.f32 %v2979_v62, %v5429_v0  ;;  %v1176_v24 = vsel %vm1159_vm6, %v5948_v41, -1e+30  ;;  %v3012_v16 = vmul.f32 %v2980_v56, %v5423_v57  ;;  %v2981_v38 = vmul.f32 %v5746_v35, %v5938_v60  ;;  %v1043_v62 = vpop.f32.mrb[37].mxu1 }
 0x2e3   :  { %v3149_v59 = vmul.f32 1.442695, %v3109_v58  ;;  %v3110_v45 = vmin.f32 %v3078_v42, 4.1351666  ;;  %1217 = vmax.xlane.f32.xlu1 %v1176_v24  ;;  %v3265_v25 = vsub.f32 %v3041_v20, %v3233_v34  ;;  %v3329_v50 = vadd.f32 %v3233_v34, %v3041_v20  ;;  %v1045_v28 = vpop.f32.mrb[38].mxu1 }
 0x2e4   :  { %v3234_v3 = vmul.f32 0.5, %v3202_v52  ;;  %v1273_v51 = vsel %vm5690_vm9, %v5938_v60, -1e+30  ;;  %v5993_v56 = vadd.f32 %v1041_v26, %v5600_v53  ;;  %v1044_v31 = vadd.f32 %v1043_v62, %v5621_v36  ;;  %v1047_v10 = vpop.f32.mrb[39].mxu1 }
 0x2e5   :  { %3802 = vpow2.f32 %v3149_v59  ;;  %v3151_v15 = vmul.f32 1.442695, %v3110_v45  ;;  %1313 = vmax.xlane.f32.xlu0 %v1273_v51  ;;  %3297 = vst [vmem:[%s7225_s9 + $0x20] sm:$0xff] %v3265_v25  ;;  %3361 = vst [vmem:[%s7226_s10 + $0x20] sm:$0xff] %v3329_v50  ;;  %v6003_v37 = vadd.f32 %v1045_v28, %v5600_v53  ;;  %v1274_v20 = vsel %vm5690_vm9, %v5948_v41, -1e+30 }
 0x2e6   :  { %v3266_v2 = vsub.f32 %v3042_v5, %v3234_v3  ;;  %v3330_v39 = vadd.f32 %v3234_v3, %v3042_v5  ;;  %v3799_v58 = vpop.eup %3798  ;;  %v2982_v42 = vmul.f32 %v5746_v35, %v5948_v41  ;;  %v3079_v34 = vmul.f32 %v5643_v13, %v1044_v31 }
 0x2e7   :  { %3804 = vpow2.f32 %v3151_v15  ;;  %v1048_v52 = vadd.f32 %v1047_v10, %v5621_v36  ;;  %1315 = vmax.xlane.f32.xlu1 %v1274_v20  ;;  %v2922_v5 = vsel %vm5594_vm5, %v5990_v29, 0.0  ;;  %v7379_v24 = vsel %vm5377_vm2, %v7353_v32, 0.0 }
 0x2e8   :  { %v6019_v59 = vadd.f32 %v2927_v44, %v7379_v24  ;;  %3298 = vst [vmem:[%s7225_s9 + $0x28] sm:$0xff] %v3266_v2  ;;  %3362 = vst [vmem:[%s7226_s10 + $0x28] sm:$0xff] %v3330_v39  ;;  %v3203_v45 = vmul.f32 %v3799_v58, %v5429_v0  ;;  %v1177_v26 = vsel %vm1159_vm6, %v5993_v56, -1e+30  ;;  %v3043_v50 = vadd.f32 %v3011_v63, %v5735_v43  ;;  %v6045_v39 = vpop.permute.xlu0 %2862 }
 0x2e9   :  { %v3801_v25 = vpop.eup %3800  ;;  %v3044_v32 = vadd.f32 %v3012_v16, %v5815_v27  ;;  %v3111_v44 = vmin.f32 %v3079_v34, 4.1351666  ;;  %v3080_v3 = vmul.f32 %v5643_v13, %v1048_v52  ;;  %1219 = vmax.xlane.f32.xlu0 %v1177_v26  ;;  %v3013_v29 = vmul.f32 %v2981_v38, %v5435_v6  ;;  %v1051_v16 = vpop.f32.mrb[40].mxu1 }
 0x2ea   :  { %v3235_v51 = vmul.f32 0.5, %v3203_v45  ;;  %v3204_v62 = vmul.f32 %v3801_v25, %v5423_v57  ;;  %v1178_v0 = vsel %vm1159_vm6, %v6003_v37, -1e+30  ;;  %v3014_v15 = vmul.f32 %v2982_v42, %v5441_v23  ;;  %v1053_v38 = vpop.f32.mrb[41].mxu1 }
 0x2eb   :  { %v2983_v43 = vmul.f32 %v5746_v35, %v5993_v56  ;;  %v3153_v63 = vmul.f32 1.442695, %v3111_v44  ;;  %v3112_v27 = vmin.f32 %v3080_v3, 4.1351666  ;;  %1221 = vmax.xlane.f32.xlu1 %v1178_v0  ;;  %v1275_v57 = vsel %vm5690_vm9, %v5993_v56, -1e+30 }
 0x2ec   :  { %v3267_v31 = vsub.f32 %v3043_v50, %v3235_v51  ;;  %v3331_v28 = vadd.f32 %v3235_v51, %v3043_v50  ;;  %v3236_v2 = vmul.f32 0.5, %v3204_v62  ;;  %v6048_v20 = vadd.f32 %v1051_v16, %v5600_v53  ;;  %v1055_v42 = vpop.f32.mrb[42].mxu1 }
 0x2ed   :  { %3806 = vpow2.f32 %v3153_v63  ;;  %v3155_v10 = vmul.f32 1.442695, %v3112_v27  ;;  %1317 = vmax.xlane.f32.xlu0 %v1275_v57  ;;  %v1054_v58 = vadd.f32 %v1053_v38, %v5621_v36  ;;  %v6058_v24 = vadd.f32 %v1055_v42, %v5600_v53  ;;  %v1057_v45 = vpop.f32.mrb[43].mxu1  ;;  %v6100_v42 = vpop.permute.xlu1 %2842 }
 0x2ee   :  { %3299 = vst [vmem:[%s7225_s9 + $0x30] sm:$0xff] %v3267_v31  ;;  %3363 = vst [vmem:[%s7226_s10 + $0x30] sm:$0xff] %v3331_v28  ;;  %v3268_v34 = vsub.f32 %v3044_v32, %v3236_v2  ;;  %v3332_v52 = vadd.f32 %v3236_v2, %v3044_v32  ;;  %v1276_v26 = vsel %vm5690_vm9, %v6003_v37, -1e+30  ;;  %v2984_v50 = vmul.f32 %v5746_v35, %v6003_v37 }
 0x2ef   :  { %v3803_v25 = vpop.eup %3802  ;;  %3808 = vpow2.f32 %v3155_v10  ;;  %v3081_v44 = vmul.f32 %v5643_v13, %v1054_v58  ;;  %v1058_v3 = vadd.f32 %v1057_v45, %v5621_v36  ;;  %1319 = vmax.xlane.f32.xlu1 %v1276_v26  ;;  %v7380_v32 = vsel %vm5377_vm2, %v5329_v7, 0.0 }
 0x2f0   :  { %v6071_v51 = vadd.f32 %v2922_v5, %v7380_v32  ;;  %v2929_v62 = vsel %vm5594_vm5, %v6045_v39, 0.0  ;;  %3300 = vst [vmem:[%s7225_s9 + $0x38] sm:$0xff] %v3268_v34  ;;  %3364 = vst [vmem:[%s7226_s10 + $0x38] sm:$0xff] %v3332_v52  ;;  %v3205_v0 = vmul.f32 %v3803_v25, %v5435_v6  ;;  %v1179_v7 = vsel %vm1159_vm6, %v6048_v20, -1e+30 }
 0x2f1   :  { %v3805_v5 = vpop.eup %3804  ;;  %v3045_v63 = vadd.f32 %v3013_v29, %v5778_v21  ;;  %v3046_v27 = vadd.f32 %v3014_v15, %v5854_v9  ;;  %v3113_v16 = vmin.f32 %v3081_v44, 4.1351666  ;;  %v3082_v31 = vmul.f32 %v5643_v13, %v1058_v3  ;;  %1223 = vmax.xlane.f32.xlu0 %v1179_v7  ;;  %v1061_v15 = vpop.f32.mrb[44].mxu1 }
 0x2f2   :  { %v3237_v28 = vmul.f32 0.5, %v3205_v0  ;;  %v3206_v2 = vmul.f32 %v3805_v5, %v5441_v23  ;;  %v3015_v57 = vmul.f32 %v2983_v43, %v5447_v14  ;;  %v1180_v6 = vsel %vm1159_vm6, %v6058_v24, -1e+30  ;;  %v1063_v43 = vpop.f32.mrb[45].mxu1 }
 0x2f3   :  { %v3016_v38 = vmul.f32 %v2984_v50, %v5461_v30  ;;  %v2985_v21 = vmul.f32 %v5746_v35, %v6048_v20  ;;  %v3157_v29 = vmul.f32 1.442695, %v3113_v16  ;;  %v3114_v9 = vmin.f32 %v3082_v31, 4.1351666  ;;  %1225 = vmax.xlane.f32.xlu1 %v1180_v6  ;;  %v1065_v26 = vpop.f32.mrb[46].mxu1 }
 0x2f4   :  { %v3269_v39 = vsub.f32 %v3045_v63, %v3237_v28  ;;  %v3333_v10 = vadd.f32 %v3237_v28, %v3045_v63  ;;  %v3238_v58 = vmul.f32 0.5, %v3206_v2  ;;  %v1277_v23 = vsel %vm5690_vm9, %v6048_v20, -1e+30  ;;  %v1067_v3 = vpop.f32.mrb[47].mxu1 }
 0x2f5   :  { %3810 = vpow2.f32 %v3157_v29  ;;  %v3159_v34 = vmul.f32 1.442695, %v3114_v9  ;;  %v6103_v52 = vadd.f32 %v1061_v15, %v5600_v53  ;;  %1321 = vmax.xlane.f32.xlu0 %v1277_v23  ;;  %v1064_v45 = vadd.f32 %v1063_v43, %v5621_v36 }
 0x2f6   :  { %3301 = vst [vmem:[%s7225_s9 + $0x40] sm:$0xff] %v3269_v39  ;;  %3365 = vst [vmem:[%s7226_s10 + $0x40] sm:$0xff] %v3333_v10  ;;  %v3270_v25 = vsub.f32 %v3046_v27, %v3238_v58  ;;  %v3334_v50 = vadd.f32 %v3238_v58, %v3046_v27  ;;  %v6113_v44 = vadd.f32 %v1065_v26, %v5600_v53  ;;  %v1278_v32 = vsel %vm5690_vm9, %v6058_v24, -1e+30 }
 0x2f7   :  { %v3807_v0 = vpop.eup %3806  ;;  %v2986_v7 = vmul.f32 %v5746_v35, %v6058_v24  ;;  %3812 = vpow2.f32 %v3159_v34  ;;  %v3083_v5 = vmul.f32 %v5643_v13, %v1064_v45  ;;  %v1068_v63 = vadd.f32 %v1067_v3, %v5621_v36  ;;  %1323 = vmax.xlane.f32.xlu1 %v1278_v32  ;;  %v6155_v34 = vpop.permute.xlu1 %2850 }
 0x2f8   :  { %v2924_v27 = vsel %vm5594_vm5, %v6100_v42, 0.0  ;;  %v7381_v16 = vsel %vm5377_vm2, %v7356_v55, 0.0  ;;  %3302 = vst [vmem:[%s7225_s9 + $0x48] sm:$0xff] %v3270_v25  ;;  %3366 = vst [vmem:[%s7226_s10 + $0x48] sm:$0xff] %v3334_v50  ;;  %v3207_v28 = vmul.f32 %v3807_v0, %v5447_v14  ;;  %v1181_v2 = vsel %vm1159_vm6, %v6103_v52, -1e+30 }
 0x2f9   :  { %v6129_v31 = vadd.f32 %v2929_v62, %v7381_v16  ;;  %v3809_v6 = vpop.eup %3808  ;;  %v3047_v29 = vadd.f32 %v3015_v57, %v5803_v17  ;;  %v3048_v55 = vadd.f32 %v3016_v38, %v5961_v8  ;;  %v3115_v62 = vmin.f32 %v3083_v5, 4.1351666  ;;  %1227 = vmax.xlane.f32.xlu0 %v1181_v2  ;;  %v1071_v38 = vpop.f32.mrb[48].mxu1 }
 0x2fa   :  { %v3084_v9 = vmul.f32 %v5643_v13, %v1068_v63  ;;  %v3239_v15 = vmul.f32 0.5, %v3207_v28  ;;  %v3208_v39 = vmul.f32 %v3809_v6, %v5461_v30  ;;  %v3017_v10 = vmul.f32 %v2985_v21, %v5453_v19  ;;  %v1073_v21 = vpop.f32.mrb[49].mxu1  ;;  %v7382_v6 = vld [vmem:[#allocation29_spill] sm:$0xff] }
 0x2fb   :  { %v1182_v14 = vsel %vm1159_vm6, %v6113_v44, -1e+30  ;;  %v3018_v58 = vmul.f32 %v2986_v7, %v5467_v48  ;;  %v2987_v17 = vmul.f32 %v5746_v35, %v6103_v52  ;;  %v3161_v57 = vmul.f32 1.442695, %v3115_v62  ;;  %v1075_v50 = vpop.f32.mrb[50].mxu1 }
 0x2fc   :  { %v3116_v8 = vmin.f32 %v3084_v9, 4.1351666  ;;  %1229 = vmax.xlane.f32.xlu1 %v1182_v14  ;;  %v3271_v23 = vsub.f32 %v3047_v29, %v3239_v15  ;;  %v3335_v43 = vadd.f32 %v3239_v15, %v3047_v29  ;;  %v3240_v42 = vmul.f32 0.5, %v3208_v39  ;;  %v1077_v7 = vpop.f32.mrb[51].mxu1 }
 0x2fd   :  { %v1279_v30 = vsel %vm5690_vm9, %v6103_v52, -1e+30  ;;  %3814 = vpow2.f32 %v3161_v57  ;;  %v6158_v26 = vadd.f32 %v1071_v38, %v5600_v53  ;;  %v1074_v25 = vadd.f32 %v1073_v21, %v5621_v36 }
 0x2fe   :  { %v3163_v45 = vmul.f32 1.442695, %v3116_v8  ;;  %1325 = vmax.xlane.f32.xlu0 %v1279_v30  ;;  %3303 = vst [vmem:[%s7225_s9 + $0x50] sm:$0xff] %v3271_v23  ;;  %3367 = vst [vmem:[%s7226_s10 + $0x50] sm:$0xff] %v3335_v43  ;;  %v3272_v3 = vsub.f32 %v3048_v55, %v3240_v42  ;;  %v3336_v32 = vadd.f32 %v3240_v42, %v3048_v55  ;;  %v1280_v5 = vsel %vm5690_vm9, %v6113_v44, -1e+30 }
 0x2ff   :  { %v6168_v0 = vadd.f32 %v1075_v50, %v5600_v53  ;;  %v3811_v63 = vpop.eup %3810  ;;  %v2988_v16 = vmul.f32 %v5746_v35, %v6113_v44  ;;  %v3085_v28 = vmul.f32 %v5643_v13, %v1074_v25  ;;  %v1078_v2 = vadd.f32 %v1077_v7, %v5621_v36  ;;  %v7384_v43 = vld [vmem:[#allocation48_spill] sm:$0xff]  ;;  %v7385_v30 = vld [vmem:[#allocation50_spill] sm:$0xff]  ;;  %v6208_v50 = vpop.permute.xlu1 %2858 }
 0x300   :  { %3816 = vpow2.f32 %v3163_v45  ;;  %1327 = vmax.xlane.f32.xlu1 %v1280_v5  ;;  %v7383_v29 = vsel %vm5377_vm2, %v7382_v6, 0.0  ;;  %v2926_v62 = vsel %vm5594_vm5, %v6155_v34, 0.0  ;;  %3304 = vst [vmem:[%s7225_s9 + $0x58] sm:$0xff] %v3272_v3  ;;  %3368 = vst [vmem:[%s7226_s10 + $0x58] sm:$0xff] %v3336_v32  ;;  %v3209_v9 = vmul.f32 %v3811_v63, %v5453_v19 }
 0x301   :  { %v2956_v55 = vadd.f32 %v2924_v27, %v7383_v29  ;;  %v1183_v15 = vsel %vm1159_vm6, %v6158_v26, -1e+30  ;;  %v3813_v39 = vpop.eup %3812  ;;  %v3049_v27 = vadd.f32 %v3017_v10, %v5821_v22  ;;  %v3050_v14 = vadd.f32 %v3018_v58, %v6071_v51  ;;  %v1081_v58 = vpop.f32.mrb[52].mxu1 }
 0x302   :  { %v3117_v57 = vmin.f32 %v3085_v28, 4.1351666  ;;  %v3086_v8 = vmul.f32 %v5643_v13, %v1078_v2  ;;  %1231 = vmax.xlane.f32.xlu0 %v1183_v15  ;;  %v3241_v38 = vmul.f32 0.5, %v3209_v9  ;;  %v3210_v23 = vmul.f32 %v3813_v39, %v5467_v48 }
 0x303   :  { %v3019_v42 = vmul.f32 %v2987_v17, %v7384_v43  ;;  %v1184_v19 = vsel %vm1159_vm6, %v6168_v0, -1e+30  ;;  %v3020_v21 = vmul.f32 %v2988_v16, %v7385_v30  ;;  %v2989_v22 = vmul.f32 %v5746_v35, %v6158_v26  ;;  %v1083_v17 = vpop.f32.mrb[53].mxu1 }
 0x304   :  { %v3165_v10 = vmul.f32 1.442695, %v3117_v57  ;;  %v3118_v51 = vmin.f32 %v3086_v8, 4.1351666  ;;  %1233 = vmax.xlane.f32.xlu1 %v1184_v19  ;;  %v3273_v34 = vsub.f32 %v3049_v27, %v3241_v38  ;;  %v3337_v45 = vadd.f32 %v3241_v38, %v3049_v27  ;;  %v1085_v5 = vpop.f32.mrb[54].mxu1  ;;  %v7386_v27 = vld [vmem:[#allocation31_spill] sm:$0xff] }
 0x305   :  { %v3242_v25 = vmul.f32 0.5, %v3210_v23  ;;  %v1281_v48 = vsel %vm5690_vm9, %v6158_v26, -1e+30  ;;  %v6211_v32 = vadd.f32 %v1081_v58, %v5600_v53  ;;  %v1084_v7 = vadd.f32 %v1083_v17, %v5621_v36  ;;  %v1087_v2 = vpop.f32.mrb[55].mxu1  ;;  %v7389_v17 = vld [vmem:[#allocation51_spill] sm:$0xff] }
 0x306   :  { %3818 = vpow2.f32 %v3165_v10  ;;  %v3167_v3 = vmul.f32 1.442695, %v3118_v51  ;;  %1329 = vmax.xlane.f32.xlu0 %v1281_v48  ;;  %3305 = vst [vmem:[%s7225_s9 + $0x60] sm:$0xff] %v3273_v34  ;;  %3369 = vst [vmem:[%s7226_s10 + $0x60] sm:$0xff] %v3337_v45  ;;  %v6221_v28 = vadd.f32 %v1085_v5, %v5600_v53  ;;  %v1282_v6 = vsel %vm5690_vm9, %v6168_v0, -1e+30 }
 0x307   :  { %v3274_v63 = vsub.f32 %v3050_v14, %v3242_v25  ;;  %v3338_v16 = vadd.f32 %v3242_v25, %v3050_v14  ;;  %v3815_v29 = vpop.eup %3814  ;;  %v2990_v9 = vmul.f32 %v5746_v35, %v6168_v0  ;;  %v3087_v15 = vmul.f32 %v5643_v13, %v1084_v7  ;;  %v7388_v25 = vld [vmem:[#allocation49_spill] sm:$0xff] }
 0x308   :  { %3820 = vpow2.f32 %v3167_v3  ;;  %v1088_v39 = vadd.f32 %v1087_v2, %v5621_v36  ;;  %1331 = vmax.xlane.f32.xlu1 %v1282_v6  ;;  %v7387_v14 = vsel %vm5377_vm2, %v7386_v27, 0.0  ;;  %v2928_v8 = vsel %vm5594_vm5, %v6208_v50, 0.0 }
 0x309   :  { %v2958_v57 = vadd.f32 %v2926_v62, %v7387_v14  ;;  %3306 = vst [vmem:[%s7225_s9 + $0x68] sm:$0xff] %v3274_v63  ;;  %3370 = vst [vmem:[%s7226_s10 + $0x68] sm:$0xff] %v3338_v16  ;;  %v3211_v38 = vmul.f32 %v3815_v29, %v7384_v43  ;;  %v1185_v23 = vsel %vm1159_vm6, %v6211_v32, -1e+30  ;;  %v3051_v62 = vadd.f32 %v3019_v42, %v5860_v54  ;;  %v1091_v42 = vpop.f32.mrb[56].mxu1  ;;  %v6260_v63 = vpop.permute.xlu0 %2870 }
 0x30a   :  { %v3817_v19 = vpop.eup %3816  ;;  %v3052_v10 = vadd.f32 %v3020_v21, %v2956_v55  ;;  %v3119_v51 = vmin.f32 %v3087_v15, 4.1351666  ;;  %v3088_v58 = vmul.f32 %v5643_v13, %v1088_v39  ;;  %1235 = vmax.xlane.f32.xlu0 %v1185_v23  ;;  %v3021_v48 = vmul.f32 %v2989_v22, %v7388_v25  ;;  %v1093_v22 = vpop.f32.mrb[57].mxu1 }
 0x30b   :  { %v3243_v34 = vmul.f32 0.5, %v3211_v38  ;;  %v3212_v45 = vmul.f32 %v3817_v19, %v7385_v30  ;;  %v1186_v43 = vsel %vm1159_vm6, %v6221_v28, -1e+30  ;;  %v3022_v50 = vmul.f32 %v2990_v9, %v7389_v17  ;;  %v1095_v29 = vpop.f32.mrb[58].mxu1 }
 0x30c   :  { %v2991_v3 = vmul.f32 %v5746_v35, %v6211_v32  ;;  %v3169_v54 = vmul.f32 1.442695, %v3119_v51  ;;  %v3120_v55 = vmin.f32 %v3088_v58, 4.1351666  ;;  %1237 = vmax.xlane.f32.xlu1 %v1186_v43  ;;  %v1283_v30 = vsel %vm5690_vm9, %v6211_v32, -1e+30 }
 0x30d   :  { %v3275_v21 = vsub.f32 %v3051_v62, %v3243_v34  ;;  %v3339_v7 = vadd.f32 %v3243_v34, %v3051_v62  ;;  %v3244_v5 = vmul.f32 0.5, %v3212_v45  ;;  %v6263_v2 = vadd.f32 %v1091_v42, %v5600_v53  ;;  %v1097_v27 = vpop.f32.mrb[59].mxu1 }
 0x30e   :  { %3822 = vpow2.f32 %v3169_v54  ;;  %v3171_v16 = vmul.f32 1.442695, %v3120_v55  ;;  %1333 = vmax.xlane.f32.xlu0 %v1283_v30  ;;  %v1094_v6 = vadd.f32 %v1093_v22, %v5621_v36  ;;  %v6273_v39 = vadd.f32 %v1095_v29, %v5600_v53  ;;  %v7392_v30 = vld [vmem:[#allocation52_spill] sm:$0xff] }
 0x30f   :  { %3307 = vst [vmem:[%s7225_s9 + $0x70] sm:$0xff] %v3275_v21  ;;  %3371 = vst [vmem:[%s7226_s10 + $0x70] sm:$0xff] %v3339_v7  ;;  %v3276_v9 = vsub.f32 %v3052_v10, %v3244_v5  ;;  %v3340_v15 = vadd.f32 %v3244_v5, %v3052_v10  ;;  %v1284_v14 = vsel %vm5690_vm9, %v6221_v28, -1e+30  ;;  %v2992_v23 = vmul.f32 %v5746_v35, %v6221_v28  ;;  %v7390_v10 = vld [vmem:[#allocation33_spill] sm:$0xff] }
 0x310   :  { %v3819_v38 = vpop.eup %3818  ;;  %3824 = vpow2.f32 %v3171_v16  ;;  %v3089_v19 = vmul.f32 %v5643_v13, %v1094_v6  ;;  %v1098_v62 = vadd.f32 %v1097_v27, %v5621_v36  ;;  %1335 = vmax.xlane.f32.xlu1 %v1284_v14  ;;  %v7391_v51 = vsel %vm5377_vm2, %v7390_v10, 0.0 }
 0x311   :  { %v2960_v58 = vadd.f32 %v2928_v8, %v7391_v51  ;;  %v2931_v34 = vsel %vm5594_vm5, %v6260_v63, 0.0  ;;  %3308 = vst [vmem:[%s7225_s9 + $0x78] sm:$0xff] %v3276_v9  ;;  %3372 = vst [vmem:[%s7226_s10 + $0x78] sm:$0xff] %v3340_v15  ;;  %v3213_v45 = vmul.f32 %v3819_v38, %v7388_v25  ;;  %v1187_v43 = vsel %vm1159_vm6, %v6263_v2, -1e+30  ;;  %v7393_v63 = vld [vmem:[#allocation54_spill] sm:$0xff]  ;;  %v6312_v15 = vpop.permute.xlu1 %2866 }
 0x312   :  { %v3821_v54 = vpop.eup %3820  ;;  %v3053_v8 = vadd.f32 %v3021_v48, %v5909_v4  ;;  %v3054_v55 = vadd.f32 %v3022_v50, %v2958_v57  ;;  %v3121_v42 = vmin.f32 %v3089_v19, 4.1351666  ;;  %v3090_v21 = vmul.f32 %v5643_v13, %v1098_v62  ;;  %1239 = vmax.xlane.f32.xlu0 %v1187_v43  ;;  %v1101_v48 = vpop.f32.mrb[60].mxu1 }
 0x313   :  { %v3245_v7 = vmul.f32 0.5, %v3213_v45  ;;  %v3214_v5 = vmul.f32 %v3821_v54, %v7389_v17  ;;  %v3023_v22 = vmul.f32 %v2991_v3, %v7392_v30  ;;  %v1188_v25 = vsel %vm1159_vm6, %v6273_v39, -1e+30  ;;  %v1103_v3 = vpop.f32.mrb[61].mxu1 }
 0x314   :  { %v3024_v16 = vmul.f32 %v2992_v23, %v7393_v63  ;;  %v2993_v6 = vmul.f32 %v5746_v35, %v6263_v2  ;;  %v3173_v4 = vmul.f32 1.442695, %v3121_v42  ;;  %v3122_v57 = vmin.f32 %v3090_v21, 4.1351666  ;;  %1241 = vmax.xlane.f32.xlu1 %v1188_v25  ;;  %v1105_v23 = vpop.f32.mrb[62].mxu1  ;;  %v7394_v21 = vld [vmem:[#allocation38_spill] sm:$0xff] }
 0x315   :  { %v3277_v50 = vsub.f32 %v3053_v8, %v3245_v7  ;;  %v3341_v29 = vadd.f32 %v3245_v7, %v3053_v8  ;;  %v3246_v9 = vmul.f32 0.5, %v3214_v5  ;;  %v1285_v17 = vsel %vm5690_vm9, %v6263_v2, -1e+30  ;;  %v1107_v51 = vpop.f32.mrb[63].mxu1 }
 0x316   :  { %3826 = vpow2.f32 %v3173_v4  ;;  %v3175_v27 = vmul.f32 1.442695, %v3122_v57  ;;  %v6315_v14 = vadd.f32 %v1101_v48, %v5600_v53  ;;  %1337 = vmax.xlane.f32.xlu0 %v1285_v17  ;;  %v1104_v38 = vadd.f32 %v1103_v3, %v5621_v36  ;;  %v7396_v3 = vld [vmem:[#allocation53_spill] sm:$0xff] }
 0x317   :  { %3309 = vst [vmem:[%s7225_s9 + $0x80] sm:$0xff] %v3277_v50  ;;  %3373 = vst [vmem:[%s7226_s10 + $0x80] sm:$0xff] %v3341_v29  ;;  %v3278_v19 = vsub.f32 %v3054_v55, %v3246_v9  ;;  %v3342_v62 = vadd.f32 %v3246_v9, %v3054_v55  ;;  %v6325_v10 = vadd.f32 %v1105_v23, %v5600_v53  ;;  %v1286_v45 = vsel %vm5690_vm9, %v6273_v39, -1e+30 }
 0x318   :  { %v3823_v43 = vpop.eup %3822  ;;  %v2994_v54 = vmul.f32 %v5746_v35, %v6273_v39  ;;  %3828 = vpow2.f32 %v3175_v27  ;;  %v3091_v8 = vmul.f32 %v5643_v13, %v1104_v38  ;;  %v1108_v42 = vadd.f32 %v1107_v51, %v5621_v36  ;;  %1339 = vmax.xlane.f32.xlu1 %v1286_v45  ;;  %v7397_v27 = vld [vmem:[#allocation55_spill] sm:$0xff]  ;;  %v6366_v51 = vpop.permute.xlu0 %2878 }
 0x319   :  { %v2930_v55 = vsel %vm5594_vm5, %v6312_v15, 0.0  ;;  %v7395_v7 = vsel %vm5377_vm2, %v7394_v21, 0.0  ;;  %3310 = vst [vmem:[%s7225_s9 + $0x88] sm:$0xff] %v3278_v19  ;;  %3374 = vst [vmem:[%s7226_s10 + $0x88] sm:$0xff] %v3342_v62  ;;  %v3215_v25 = vmul.f32 %v3823_v43, %v7392_v30  ;;  %v1189_v4 = vsel %vm1159_vm6, %v6315_v14, -1e+30 }
 0x31a   :  { %v6341_v5 = vadd.f32 %v2931_v34, %v7395_v7  ;;  %v3825_v57 = vpop.eup %3824  ;;  %v3055_v48 = vadd.f32 %v3023_v22, %v6019_v59  ;;  %v3056_v50 = vadd.f32 %v3024_v16, %v2960_v58  ;;  %v3123_v34 = vmin.f32 %v3091_v8, 4.1351666  ;;  %1243 = vmax.xlane.f32.xlu0 %v1189_v4  ;;  %v1111_v22 = vpop.f32.mrb[64].mxu1 }
 0x31b   :  { %v3092_v29 = vmul.f32 %v5643_v13, %v1108_v42  ;;  %v3247_v9 = vmul.f32 0.5, %v3215_v25  ;;  %v3216_v17 = vmul.f32 %v3825_v57, %v7393_v63  ;;  %v3025_v15 = vmul.f32 %v2993_v6, %v7396_v3  ;;  %v1113_v6 = vpop.f32.mrb[65].mxu1  ;;  %v2875_v42 = vpop.permute.xlu1 %2874 }
 0x31c   :  { %v1190_v30 = vsel %vm1159_vm6, %v6325_v10, -1e+30  ;;  %v3026_v38 = vmul.f32 %v2994_v54, %v7397_v27  ;;  %v2995_v23 = vmul.f32 %v5746_v35, %v6315_v14  ;;  %v3177_v59 = vmul.f32 1.442695, %v3123_v34  ;;  %v1115_v8 = vpop.f32.mrb[66].mxu1 }
 0x31d   :  { %v3124_v58 = vmin.f32 %v3092_v29, 4.1351666  ;;  %1245 = vmax.xlane.f32.xlu1 %v1190_v30  ;;  %v3279_v16 = vsub.f32 %v3055_v48, %v3247_v9  ;;  %v3343_v19 = vadd.f32 %v3247_v9, %v3055_v48  ;;  %v3248_v62 = vmul.f32 0.5, %v3216_v17  ;;  %v1117_v4 = vpop.f32.mrb[67].mxu1 }
 0x31e   :  { %v1287_v63 = vsel %vm5690_vm9, %v6315_v14, -1e+30  ;;  %3830 = vpow2.f32 %v3177_v59  ;;  %v6369_v43 = vadd.f32 %v1111_v22, %v5600_v53  ;;  %v1114_v54 = vadd.f32 %v1113_v6, %v5621_v36 }
 0x31f   :  { %v3179_v45 = vmul.f32 1.442695, %v3124_v58  ;;  %1341 = vmax.xlane.f32.xlu0 %v1287_v63  ;;  %3311 = vst [vmem:[%s7225_s9 + $0x90] sm:$0xff] %v3279_v16  ;;  %3375 = vst [vmem:[%s7226_s10 + $0x90] sm:$0xff] %v3343_v19  ;;  %v3280_v21 = vsub.f32 %v3056_v50, %v3248_v62  ;;  %v3344_v7 = vadd.f32 %v3248_v62, %v3056_v50  ;;  %v1288_v57 = vsel %vm5690_vm9, %v6325_v10, -1e+30 }
 0x320   :  { %v6379_v25 = vadd.f32 %v1115_v8, %v5600_v53  ;;  %v3827_v48 = vpop.eup %3826  ;;  %v2996_v34 = vmul.f32 %v5746_v35, %v6325_v10  ;;  %v3093_v29 = vmul.f32 %v5643_v13, %v1114_v54  ;;  %v1118_v9 = vadd.f32 %v1117_v4, %v5621_v36  ;;  %v7398_v50 = vld [vmem:[#allocation35_spill] sm:$0xff]  ;;  %v7400_v54 = vld [vmem:[#allocation4_spill] sm:$0xff] }
 0x321   :  { %3832 = vpow2.f32 %v3179_v45  ;;  %1343 = vmax.xlane.f32.xlu1 %v1288_v57  ;;  %v7399_v17 = vsel %vm5377_vm2, %v7398_v50, 0.0  ;;  %v2933_v59 = vsel %vm5594_vm5, %v6366_v51, 0.0  ;;  %3312 = vst [vmem:[%s7225_s9 + $0x98] sm:$0xff] %v3280_v21  ;;  %3376 = vst [vmem:[%s7226_s10 + $0x98] sm:$0xff] %v3344_v7  ;;  %v3217_v58 = vmul.f32 %v3827_v48, %v7396_v3  ;;  %v7401_v21 = vld [vmem:[#allocation5_spill] sm:$0xff]  ;;  %v1121_v57 = vpop.f32.mrb[68].mxu1  ;;  %v6422_v50 = vpop.permute.xlu1 %2882 }
 0x322   :  { %v2962_v30 = vadd.f32 %v2930_v55, %v7399_v17  ;;  %v1191_v22 = vsel %vm1159_vm6, %v6369_v43, -1e+30  ;;  %v3829_v16 = vpop.eup %3828  ;;  %v2932_v55 = vsel %vm5594_vm5, %v2875_v42, 0.0  ;;  %v3057_v19 = vadd.f32 %v3025_v15, %v6129_v31 }
 0x323   :  { %v3125_v62 = vmin.f32 %v3093_v29, 4.1351666  ;;  %v3094_v63 = vmul.f32 %v5643_v13, %v1118_v9  ;;  %1247 = vmax.xlane.f32.xlu0 %v1191_v22  ;;  %v3249_v6 = vmul.f32 0.5, %v3217_v58  ;;  %v3218_v45 = vmul.f32 %v3829_v16, %v7397_v27  ;;  %v1123_v27 = vpop.f32.mrb[69].mxu1 }
 0x324   :  { %v3058_v51 = vadd.f32 %v3026_v38, %v2962_v30  ;;  %v1192_v3 = vsel %vm1159_vm6, %v6379_v25, -1e+30  ;;  %v3027_v8 = vmul.f32 %v2995_v23, %v7400_v54  ;;  %v3028_v7 = vmul.f32 %v2996_v34, %v7401_v21  ;;  %v1125_v34 = vpop.f32.mrb[70].mxu1 }
 0x325   :  { %v3181_v4 = vmul.f32 1.442695, %v3125_v62  ;;  %v3126_v42 = vmin.f32 %v3094_v63, 4.1351666  ;;  %1249 = vmax.xlane.f32.xlu1 %v1192_v3  ;;  %v3281_v31 = vsub.f32 %v3057_v19, %v3249_v6  ;;  %v3345_v15 = vadd.f32 %v3249_v6, %v3057_v19  ;;  %v1127_v22 = vpop.f32.mrb[71].mxu1 }
 0x326   :  { %v3250_v48 = vmul.f32 0.5, %v3218_v45  ;;  %v1289_v38 = vsel %vm5690_vm9, %v6369_v43, -1e+30  ;;  %v6419_v9 = vadd.f32 %v1121_v57, %v5600_v53  ;;  %v1124_v23 = vadd.f32 %v1123_v27, %v5621_v36 }
 0x327   :  { %3834 = vpow2.f32 %v3181_v4  ;;  %v3183_v29 = vmul.f32 1.442695, %v3126_v42  ;;  %1345 = vmax.xlane.f32.xlu0 %v1289_v38  ;;  %3313 = vst [vmem:[%s7225_s9 + $0xa0] sm:$0xff] %v3281_v31  ;;  %3377 = vst [vmem:[%s7226_s10 + $0xa0] sm:$0xff] %v3345_v15  ;;  %v6431_v58 = vadd.f32 %v1125_v34, %v5600_v53  ;;  %v1290_v16 = vsel %vm5690_vm9, %v6379_v25, -1e+30 }
 0x328   :  { %v3282_v17 = vsub.f32 %v3058_v51, %v3250_v48  ;;  %v3346_v30 = vadd.f32 %v3250_v48, %v3058_v51  ;;  %v3831_v19 = vpop.eup %3830  ;;  %v2997_v62 = vmul.f32 %v5746_v35, %v6369_v43  ;;  %v3095_v63 = vmul.f32 %v5643_v13, %v1124_v23  ;;  %v7402_v51 = vld [vmem:[#allocation37_spill] sm:$0xff]  ;;  %v7404_v4 = vld [vmem:[#allocation40_spill] sm:$0xff] }
 0x329   :  { %3836 = vpow2.f32 %v3183_v29  ;;  %v1128_v6 = vadd.f32 %v1127_v22, %v5621_v36  ;;  %1347 = vmax.xlane.f32.xlu1 %v1290_v16  ;;  %v7403_v45 = vsel %vm5377_vm2, %v7402_v51, 0.0  ;;  %v7405_v42 = vsel %vm5377_vm2, %v7404_v4, 0.0  ;;  %v6479_v4 = vpop.permute.xlu1 %2890 }
 0x32a   :  { %v2964_v3 = vadd.f32 %v2932_v55, %v7403_v45  ;;  %v2965_v57 = vadd.f32 %v2933_v59, %v7405_v42  ;;  %3314 = vst [vmem:[%s7225_s9 + $0xa8] sm:$0xff] %v3282_v17  ;;  %3378 = vst [vmem:[%s7226_s10 + $0xa8] sm:$0xff] %v3346_v30  ;;  %v3219_v31 = vmul.f32 %v3831_v19, %v7400_v54  ;;  %v1193_v15 = vsel %vm1159_vm6, %v6419_v9, -1e+30  ;;  %v7406_v17 = vld [vmem:[#allocation14_spill] sm:$0xff] }
 0x32b   :  { %v3833_v55 = vpop.eup %3832  ;;  %v2934_v48 = vsel %vm5594_vm5, %v6422_v50, 0.0  ;;  %v3059_v59 = vadd.f32 %v3027_v8, %v6341_v5  ;;  %v3127_v38 = vmin.f32 %v3095_v63, 4.1351666  ;;  %v3096_v27 = vmul.f32 %v5643_v13, %v1128_v6  ;;  %1251 = vmax.xlane.f32.xlu0 %v1193_v15  ;;  %v1131_v5 = vpop.f32.mrb[72].mxu1 }
 0x32c   :  { %v3251_v29 = vmul.f32 0.5, %v3219_v31  ;;  %v3060_v23 = vadd.f32 %v3028_v7, %v2964_v3  ;;  %v3220_v34 = vmul.f32 %v3833_v55, %v7401_v21  ;;  %v1194_v54 = vsel %vm1159_vm6, %v6431_v58, -1e+30  ;;  %v1133_v7 = vpop.f32.mrb[73].mxu1  ;;  %v6473_v6 = vpop.permute.xlu0 %2886 }
 0x32d   :  { %v3029_v30 = vmul.f32 %v2997_v62, %v7406_v17  ;;  %v2998_v22 = vmul.f32 %v5746_v35, %v6379_v25  ;;  %v3185_v50 = vmul.f32 1.442695, %v3127_v38  ;;  %v3128_v16 = vmin.f32 %v3096_v27, 4.1351666  ;;  %1253 = vmax.xlane.f32.xlu1 %v1194_v54  ;;  %v1135_v3 = vpop.f32.mrb[74].mxu1  ;;  %v7407_v27 = vld [vmem:[#allocation6_spill] sm:$0xff] }
 0x32e   :  { %v3283_v8 = vsub.f32 %v3059_v59, %v3251_v29  ;;  %v3347_v19 = vadd.f32 %v3251_v29, %v3059_v59  ;;  %v3252_v63 = vmul.f32 0.5, %v3220_v34  ;;  %v1291_v21 = vsel %vm5690_vm9, %v6419_v9, -1e+30  ;;  %v1137_v55 = vpop.f32.mrb[75].mxu1 }
 0x32f   :  { %3838 = vpow2.f32 %v3185_v50  ;;  %v3187_v51 = vmul.f32 1.442695, %v3128_v16  ;;  %v6476_v62 = vadd.f32 %v1131_v5, %v5600_v53  ;;  %1349 = vmax.xlane.f32.xlu0 %v1291_v21  ;;  %v1134_v45 = vadd.f32 %v1133_v7, %v5621_v36 }
 0x330   :  { %3315 = vst [vmem:[%s7225_s9 + $0xb0] sm:$0xff] %v3283_v8  ;;  %3379 = vst [vmem:[%s7226_s10 + $0xb0] sm:$0xff] %v3347_v19  ;;  %v3284_v42 = vsub.f32 %v3060_v23, %v3252_v63  ;;  %v3348_v31 = vadd.f32 %v3252_v63, %v3060_v23  ;;  %v6488_v15 = vadd.f32 %v1135_v3, %v5600_v53  ;;  %v1292_v59 = vsel %vm5690_vm9, %v6431_v58, -1e+30  ;;  %v7408_v23 = vld [vmem:[#allocation39_spill] sm:$0xff] }
 0x331   :  { %v3835_v38 = vpop.eup %3834  ;;  %v3030_v29 = vmul.f32 %v2998_v22, %v7407_v27  ;;  %3840 = vpow2.f32 %v3187_v51  ;;  %v3097_v34 = vmul.f32 %v5643_v13, %v1134_v45  ;;  %v1138_v54 = vadd.f32 %v1137_v55, %v5621_v36  ;;  %1351 = vmax.xlane.f32.xlu1 %v1292_v59  ;;  %v1141_v55 = vpop.f32.mrb[76].mxu1 }
 0x332   :  { %v7409_v50 = vsel %vm5377_vm2, %v7408_v23, 0.0  ;;  %v2935_v5 = vsel %vm5594_vm5, %v6473_v6, 0.0  ;;  %3316 = vst [vmem:[%s7225_s9 + $0xb8] sm:$0xff] %v3284_v42  ;;  %3380 = vst [vmem:[%s7226_s10 + $0xb8] sm:$0xff] %v3348_v31  ;;  %v3221_v22 = vmul.f32 %v3835_v38, %v7406_v17  ;;  %v1195_v8 = vsel %vm1159_vm6, %v6476_v62, -1e+30 }
 0x333   :  { %v2966_v16 = vadd.f32 %v2934_v48, %v7409_v50  ;;  %v3837_v19 = vpop.eup %3836  ;;  %v2936_v48 = vsel %vm5594_vm5, %v6479_v4, 0.0  ;;  %v2999_v63 = vmul.f32 %v5746_v35, %v6419_v9  ;;  %v3129_v21 = vmin.f32 %v3097_v34, 4.1351666  ;;  %1255 = vmax.xlane.f32.xlu0 %v1195_v8 }
 0x334   :  { %v3098_v7 = vmul.f32 %v5643_v13, %v1138_v54  ;;  %v3061_v6 = vadd.f32 %v3029_v30, %v2965_v57  ;;  %v3253_v51 = vmul.f32 0.5, %v3221_v22  ;;  %v3222_v17 = vmul.f32 %v3837_v19, %v7407_v27  ;;  %v6528_v30 = vpop.f32.mrb[77].mxu1  ;;  %v7410_v27 = vld [vmem:[#allocation15_spill] sm:$0xff] }
 0x335   :  { %v1196_v45 = vsel %vm1159_vm6, %v6488_v15, -1e+30  ;;  %v3062_v3 = vadd.f32 %v3030_v29, %v2966_v16  ;;  %v3000_v42 = vmul.f32 %v5746_v35, %v6431_v58  ;;  %v3189_v4 = vmul.f32 1.442695, %v3129_v21  ;;  %v1145_v50 = vpop.f32.mrb[78].mxu1 }
 0x336   :  { %v3130_v31 = vmin.f32 %v3098_v7, 4.1351666  ;;  %1257 = vmax.xlane.f32.xlu1 %v1196_v45  ;;  %v3285_v59 = vsub.f32 %v3061_v6, %v3253_v51  ;;  %v3349_v38 = vadd.f32 %v3253_v51, %v3061_v6  ;;  %v3254_v34 = vmul.f32 0.5, %v3222_v17  ;;  %v6543_v19 = vpop.f32.mrb[79].mxu1  ;;  %v7411_v7 = vld [vmem:[#allocation42_spill] sm:$0xff]  ;;  %v7413_v17 = vld [vmem:[#allocation16_spill] sm:$0xff] }
 0x337   :  { %v1293_v57 = vsel %vm5690_vm9, %v6476_v62, -1e+30  ;;  %v3031_v54 = vmul.f32 %v2999_v63, %v7410_v27  ;;  %3842 = vpow2.f32 %v3189_v4  ;;  %v6532_v23 = vadd.f32 %v1141_v55, %v5600_v53 }
 0x338   :  { %v3191_v29 = vmul.f32 1.442695, %v3130_v31  ;;  %1353 = vmax.xlane.f32.xlu0 %v1293_v57  ;;  %3317 = vst [vmem:[%s7225_s9 + $0xc0] sm:$0xff] %v3285_v59  ;;  %3381 = vst [vmem:[%s7226_s10 + $0xc0] sm:$0xff] %v3349_v38  ;;  %v3286_v16 = vsub.f32 %v3062_v3, %v3254_v34  ;;  %v3350_v22 = vadd.f32 %v3254_v34, %v3062_v3  ;;  %v1294_v63 = vsel %vm5690_vm9, %v6488_v15, -1e+30  ;;  %v2895_v59 = vpop.permute.xlu0 %2894 }
 0x339   :  { %v6541_v8 = vadd.f32 %v1145_v50, %v5600_v53  ;;  %v3839_v21 = vpop.eup %3838  ;;  %v7412_v6 = vsel %vm5377_vm2, %v7411_v7, 0.0  ;;  %v3032_v45 = vmul.f32 %v3000_v42, %v7413_v17  ;;  %v1197_v53 = vsel %vm1159_vm6, %v6532_v23, -1e+30  ;;  %v7417_v7 = vld [vmem:[#allocation8_spill] sm:$0xff] }
 0x33a   :  { %v2967_v51 = vadd.f32 %v2935_v5, %v7412_v6  ;;  %3844 = vpow2.f32 %v3191_v29  ;;  %1355 = vmax.xlane.f32.xlu1 %v1294_v63  ;;  %3318 = vst [vmem:[%s7225_s9 + $0xc8] sm:$0xff] %v3286_v16  ;;  %3382 = vst [vmem:[%s7226_s10 + $0xc8] sm:$0xff] %v3350_v22  ;;  %v3223_v3 = vmul.f32 %v3839_v21, %v7410_v27  ;;  %v7414_v5 = vld [vmem:[#allocation41_spill] sm:$0xff]  ;;  %v2899_v16 = vpop.permute.xlu1 %2898  ;;  %v1295_v63 = vsel %vm5690_vm9, %v6532_v23, -1e+30 }
 0x33b   :  { %v3841_v4 = vpop.eup %3840  ;;  %v7415_v42 = vsel %vm5377_vm2, %v7414_v5, 0.0  ;;  %v3001_v57 = vmul.f32 %v5746_v35, %v6476_v62  ;;  %v1198_v29 = vsel %vm1159_vm6, %v6541_v8, -1e+30  ;;  %v3002_v50 = vmul.f32 %v5746_v35, %v6488_v15  ;;  %v7416_v21 = vld [vmem:[#allocation17_spill] sm:$0xff] }
 0x33c   :  { %v2968_v31 = vadd.f32 %v2936_v48, %v7415_v42  ;;  %v3063_v55 = vadd.f32 %v3031_v54, %v2967_v51  ;;  %1259 = vmax.xlane.f32.xlu0 %v1197_v53  ;;  %v3255_v38 = vmul.f32 0.5, %v3223_v3  ;;  %v3224_v34 = vmul.f32 %v3841_v4, %v7413_v17  ;;  %v7418_v51 = vld [vmem:[#allocation44_spill] sm:$0xff] }
 0x33d   :  { %v2583_v6 = vsel %vm5377_vm2, %v7417_v7, %v7416_v21  ;;  %v2775_v17 = vsel %vm5377_vm2, %v7418_v51, 0.0  ;;  %v1296_v5 = vsel %vm5690_vm9, %v6541_v8, -1e+30 }
 0x33e   :  { %v3064_v27 = vadd.f32 %v3032_v45, %v2968_v31  ;;  %1261 = vmax.xlane.f32.xlu1 %v1198_v29  ;;  %v3287_v48 = vsub.f32 %v3063_v55, %v3255_v38  ;;  %v3351_v54 = vadd.f32 %v3255_v38, %v3063_v55  ;;  %v3256_v22 = vmul.f32 0.5, %v3224_v34  ;;  %v7419_v31 = vld [vmem:[#allocation20_spill] sm:$0xff]  ;;  %v7421_v38 = vld [vmem:[#allocation43_spill] sm:$0xff] }
 0x33f   :  { %v2937_v45 = vsel %vm5594_vm5, %v2895_v59, 0.0  ;;  %v3033_v4 = vmul.f32 %v3001_v57, %v2583_v6  ;;  %v7420_v55 = vld [vmem:[#allocation12_spill] sm:$0xff]  ;;  %v2776_v34 = vsel %vm5377_vm2, %v7421_v38, 0.0  ;;  %v2938_v29 = vsel %vm5594_vm5, %v2899_v16, 0.0 }
 0x340   :  { %1357 = vmax.xlane.f32.xlu0 %v1295_v63  ;;  %3319 = vst [vmem:[%s7225_s9 + $0xd0] sm:$0xff] %v3287_v48  ;;  %3383 = vst [vmem:[%s7226_s10 + $0xd0] sm:$0xff] %v3351_v54  ;;  %v3288_v53 = vsub.f32 %v3064_v27, %v3256_v22  ;;  %v3352_v3 = vadd.f32 %v3256_v22, %v3064_v27  ;;  %v2584_v59 = vsel %vm5377_vm2, %v7420_v55, %v7419_v31 }
 0x341   :  { %v3843_v42 = vpop.eup %3842  ;;  %v2969_v27 = vadd.f32 %v2937_v45, %v2775_v17  ;;  %v3034_v48 = vmul.f32 %v3002_v50, %v2584_v59  ;;  %v2970_v22 = vadd.f32 %v2938_v29, %v2776_v34 }
 0x342   :  { %1359 = vmax.xlane.f32.xlu1 %v1296_v5  ;;  %3320 = vst [vmem:[%s7225_s9 + $0xd8] sm:$0xff] %v3288_v53  ;;  %3384 = vst [vmem:[%s7226_s10 + $0xd8] sm:$0xff] %v3352_v3  ;;  %v3225_v57 = vmul.f32 %v3843_v42, %v2583_v6 }
 0x343   :  { %v3065_v63 = vadd.f32 %v3033_v4, %v2969_v27  ;;  %v3066_v16 = vadd.f32 %v3034_v48, %v2970_v22  ;;  %v7424_v22 = vld [vmem:[#allocation7_spill] sm:$0xff] }
 0x344   :  { %v3845_v54 = vpop.eup %3844  ;;  %v3257_v21 = vmul.f32 0.5, %v3225_v57 }
 0x345   :  { %v3226_v7 = vmul.f32 %v3845_v54, %v2584_v59 }
 0x346   :  { %v3289_v51 = vsub.f32 %v3065_v63, %v3257_v21  ;;  %v3353_v31 = vadd.f32 %v3257_v21, %v3065_v63 }
 0x347   :  { %v3258_v5 = vmul.f32 0.5, %v3226_v7 }
 0x348   :  { %3321 = vst [vmem:[%s7225_s9 + $0xe0] sm:$0xff] %v3289_v51  ;;  %3385 = vst [vmem:[%s7226_s10 + $0xe0] sm:$0xff] %v3353_v31 }
 0x349   :  { %v3290_v17 = vsub.f32 %v3066_v16, %v3258_v5  ;;  %v3354_v6 = vadd.f32 %v3258_v5, %v3066_v16  ;;  %v7425_v16 = vld [vmem:[#allocation9_spill] sm:$0xff] }
 0x34a   :  { %v1200_v50 = vpop.xlane.xlu0 %1199 }
 0x34b   :  { %3322 = vst [vmem:[%s7225_s9 + $0xe8] sm:$0xff] %v3290_v17  ;;  %3386 = vst [vmem:[%s7226_s10 + $0xe8] sm:$0xff] %v3354_v6 }
 0x34c   :  { %v1300_v45 = vpop.xlane.xlu1 %1299 }
 0x34e   :  { %v1298_v53 = vpop.xlane.xlu0 %1297 }
 0x34f   :  { %v1361_v4 = vsel %vm1159_vm6, %v1200_v50, %v1298_v53 }
 0x350   :  { %v1393_v42 = vsub.f32 %v5650_v46, %v1361_v4 }
 0x352   :  { %v1427_v55 = vsel %vm6627_vm10, %v1393_v42, -1e+30  ;;  %v1204_v59 = vpop.xlane.xlu1 %1203  ;;  %v1202_v38 = vpop.xlane.xlu0 %1201 }
 0x353   :  { %v1459_v34 = vmul.f32 1.442695, %v1427_v55  ;;  %v1362_v40 = vsel %vm1159_vm6, %v1202_v38, %v1300_v45 }
 0x354   :  { %v1394_v29 = vsub.f32 %v5673_v61, %v1362_v40 }
 0x355   :  { %3846 = vpow2.f32 %v1459_v34 }
 0x356   :  { %v1428_v27 = vsel %vm6627_vm10, %v1394_v29, -1e+30  ;;  %v1206_v57 = vpop.xlane.xlu1 %1205  ;;  %v1302_v48 = vpop.xlane.xlu0 %1301 }
 0x357   :  { %v1461_v54 = vmul.f32 1.442695, %v1428_v27  ;;  %v1363_v46 = vsel %vm1159_vm6, %v1204_v59, %v1302_v48 }
 0x358   :  { %v1395_v63 = vsub.f32 %v7424_v22, %v1363_v46 }
 0x359   :  { %3848 = vpow2.f32 %v1461_v54 }
 0x35a   :  { %v1429_v21 = vsel %vm6627_vm10, %v1395_v63, -1e+30 }
 0x35b   :  { %v1304_v7 = vpop.xlane.xlu1 %1303  ;;  %v1208_v51 = vpop.xlane.xlu0 %1207  ;;  %v1463_v31 = vmul.f32 1.442695, %v1429_v21 }
 0x35c   :  { %v1364_v61 = vsel %vm1159_vm6, %v1206_v57, %v1304_v7 }
 0x35d   :  { %v1396_v5 = vsub.f32 %v7425_v16, %v1364_v61  ;;  %3850 = vpow2.f32 %v1463_v31 }
 0x35f   :  { %v1430_v17 = vsel %vm6627_vm10, %v1396_v5, -1e+30  ;;  %v1210_v6 = vpop.xlane.xlu1 %1209  ;;  %v1306_v50 = vpop.xlane.xlu0 %1305 }
 0x360   :  { %v6651_v45 = vpop.eup %3846  ;;  %v1465_v53 = vmul.f32 1.442695, %v1430_v17  ;;  %v1365_v4 = vsel %vm1159_vm6, %v1208_v51, %v1306_v50 }
 0x361   :  { %v1397_v42 = vsub.f32 %v5829_v47, %v1365_v4  ;;  %1619 = vadd.xlane.f32.xlu0 %v6651_v45  ;;  %v1523_v29 = vsel %vm1159_vm6, %v6651_v45, 0.0 }
 0x362   :  { %3852 = vpow2.f32 %v1465_v53 }
 0x363   :  { %v1431_v55 = vsel %vm6627_vm10, %v1397_v42, -1e+30  ;;  %v1308_v59 = vpop.xlane.xlu1 %1307  ;;  %v6659_v38 = vpop.eup %3848 }
 0x364   :  { %v1467_v34 = vmul.f32 1.442695, %v1431_v55  ;;  %v1366_v40 = vsel %vm1159_vm6, %v1210_v6, %v1308_v59  ;;  %1621 = vadd.xlane.f32.xlu1 %v6659_v38  ;;  %v1524_v22 = vsel %vm1159_vm6, %v6659_v38, 0.0 }
 0x365   :  { %v1398_v27 = vsub.f32 %v5838_v1, %v1366_v40  ;;  %v1212_v47 = vpop.xlane.xlu0 %1211  ;;  %1555 = vadd.xlane.f32.xlu0 %v1523_v29 }
 0x366   :  { %3854 = vpow2.f32 %v1467_v34 }
 0x367   :  { %v1432_v57 = vsel %vm6627_vm10, %v1398_v27, -1e+30  ;;  %v6670_v54 = vpop.eup %3850 }
 0x368   :  { %v1214_v48 = vpop.xlane.xlu1 %1213  ;;  %v1469_v46 = vmul.f32 1.442695, %v1432_v57  ;;  %1557 = vadd.xlane.f32.xlu1 %v1524_v22  ;;  %v1525_v61 = vsel %vm1159_vm6, %v6670_v54, 0.0 }
 0x369   :  { %1623 = vadd.xlane.f32.xlu0 %v6670_v54 }
 0x36a   :  { %v1310_v63 = vpop.xlane.xlu0 %1309  ;;  %3856 = vpow2.f32 %v1469_v46 }
 0x36b   :  { %v1367_v1 = vsel %vm1159_vm6, %v1212_v47, %v1310_v63 }
 0x36c   :  { %v1399_v21 = vsub.f32 %v5883_v12, %v1367_v1  ;;  %v1312_v7 = vpop.xlane.xlu1 %1311  ;;  %v6679_v51 = vpop.eup %3852 }
 0x36d   :  { %v1368_v31 = vsel %vm1159_vm6, %v1214_v48, %v1312_v7  ;;  %1625 = vadd.xlane.f32.xlu1 %v6679_v51  ;;  %1559 = vadd.xlane.f32.xlu0 %v1525_v61  ;;  %v1526_v42 = vsel %vm1159_vm6, %v6679_v51, 0.0 }
 0x36e   :  { %v1433_v16 = vsel %vm6627_vm10, %v1399_v21, -1e+30  ;;  %v1400_v5 = vsub.f32 %v5893_v11, %v1368_v31  ;;  %v1216_v17 = vpop.xlane.xlu0 %1215 }
 0x36f   :  { %v1471_v12 = vmul.f32 1.442695, %v1433_v16 }
 0x370   :  { %v1434_v6 = vsel %vm6627_vm10, %v1400_v5, -1e+30  ;;  %v1218_v50 = vpop.xlane.xlu1 %1217  ;;  %v6692_v53 = vpop.eup %3854 }
 0x371   :  { %3858 = vpow2.f32 %v1471_v12  ;;  %v1473_v4 = vmul.f32 1.442695, %v1434_v6  ;;  %1561 = vadd.xlane.f32.xlu1 %v1526_v42  ;;  %1627 = vadd.xlane.f32.xlu0 %v6692_v53  ;;  %v1527_v27 = vsel %vm1159_vm6, %v6692_v53, 0.0 }
 0x372   :  { %v1314_v55 = vpop.xlane.xlu0 %1313 }
 0x373   :  { %3860 = vpow2.f32 %v1473_v4  ;;  %v1369_v11 = vsel %vm1159_vm6, %v1216_v17, %v1314_v55 }
 0x374   :  { %v1401_v59 = vsub.f32 %v5938_v60, %v1369_v11  ;;  %v1316_v34 = vpop.xlane.xlu1 %1315  ;;  %v6701_v40 = vpop.eup %3856 }
 0x375   :  { %v1370_v29 = vsel %vm1159_vm6, %v1218_v50, %v1316_v34  ;;  %1629 = vadd.xlane.f32.xlu1 %v6701_v40  ;;  %1563 = vadd.xlane.f32.xlu0 %v1527_v27  ;;  %v1528_v1 = vsel %vm1159_vm6, %v6701_v40, 0.0 }
 0x376   :  { %v1435_v47 = vsel %vm6627_vm10, %v1401_v59, -1e+30  ;;  %v1402_v57 = vsub.f32 %v5948_v41, %v1370_v29  ;;  %v1220_v48 = vpop.xlane.xlu0 %1219 }
 0x377   :  { %v1475_v60 = vmul.f32 1.442695, %v1435_v47 }
 0x378   :  { %v1436_v46 = vsel %vm6627_vm10, %v1402_v57, -1e+30  ;;  %v1222_v22 = vpop.xlane.xlu1 %1221 }
 0x379   :  { %3862 = vpow2.f32 %v1475_v60  ;;  %v1477_v63 = vmul.f32 1.442695, %v1436_v46  ;;  %1565 = vadd.xlane.f32.xlu1 %v1528_v1 }
 0x37a   :  { %v1318_v21 = vpop.xlane.xlu0 %1317 }
 0x37b   :  { %v6717_v7 = vpop.eup %3858  ;;  %3864 = vpow2.f32 %v1477_v63  ;;  %v1371_v41 = vsel %vm1159_vm6, %v1220_v48, %v1318_v21 }
 0x37c   :  { %v1403_v31 = vsub.f32 %v5993_v56, %v1371_v41  ;;  %1631 = vadd.xlane.f32.xlu0 %v6717_v7  ;;  %v1320_v61 = vpop.xlane.xlu1 %1319  ;;  %v1529_v56 = vsel %vm1159_vm6, %v6717_v7, 0.0 }
 0x37d   :  { %v6723_v16 = vpop.eup %3860  ;;  %v1372_v5 = vsel %vm1159_vm6, %v1222_v22, %v1320_v61 }
 0x37e   :  { %v1437_v17 = vsel %vm6627_vm10, %v1403_v31, -1e+30  ;;  %v1404_v12 = vsub.f32 %v6003_v37, %v1372_v5  ;;  %v1224_v6 = vpop.xlane.xlu0 %1223  ;;  %1633 = vadd.xlane.f32.xlu1 %v6723_v16  ;;  %v1530_v11 = vsel %vm1159_vm6, %v6723_v16, 0.0 }
 0x37f   :  { %v1479_v50 = vmul.f32 1.442695, %v1437_v17 }
 0x380   :  { %v1438_v4 = vsel %vm6627_vm10, %v1404_v12, -1e+30  ;;  %1567 = vadd.xlane.f32.xlu0 %v1529_v56  ;;  %v1226_v42 = vpop.xlane.xlu1 %1225 }
 0x381   :  { %3866 = vpow2.f32 %v1479_v50  ;;  %v1481_v55 = vmul.f32 1.442695, %v1438_v4 }
 0x382   :  { %v1322_v37 = vpop.xlane.xlu0 %1321  ;;  %1569 = vadd.xlane.f32.xlu1 %v1530_v11 }
 0x383   :  { %v6739_v59 = vpop.eup %3862  ;;  %3868 = vpow2.f32 %v1481_v55  ;;  %v1373_v34 = vsel %vm1159_vm6, %v1224_v6, %v1322_v37 }
 0x384   :  { %v1405_v29 = vsub.f32 %v6048_v20, %v1373_v34  ;;  %1635 = vadd.xlane.f32.xlu0 %v6739_v59  ;;  %v1324_v27 = vpop.xlane.xlu1 %1323  ;;  %v1531_v20 = vsel %vm1159_vm6, %v6739_v59, 0.0 }
 0x385   :  { %v6745_v47 = vpop.eup %3864  ;;  %v1374_v57 = vsel %vm1159_vm6, %v1226_v42, %v1324_v27 }
 0x386   :  { %v1439_v48 = vsel %vm6627_vm10, %v1405_v29, -1e+30  ;;  %v1406_v60 = vsub.f32 %v6058_v24, %v1374_v57  ;;  %v1228_v46 = vpop.xlane.xlu0 %1227  ;;  %1637 = vadd.xlane.f32.xlu1 %v6745_v47  ;;  %v1532_v41 = vsel %vm1159_vm6, %v6745_v47, 0.0 }
 0x387   :  { %v1483_v22 = vmul.f32 1.442695, %v1439_v48 }
 0x388   :  { %v1440_v63 = vsel %vm6627_vm10, %v1406_v60, -1e+30  ;;  %1571 = vadd.xlane.f32.xlu0 %v1531_v20 }
 0x389   :  { %v1230_v1 = vpop.xlane.xlu1 %1229  ;;  %3870 = vpow2.f32 %v1483_v22  ;;  %v1485_v21 = vmul.f32 1.442695, %v1440_v63 }
 0x38a   :  { %1573 = vadd.xlane.f32.xlu1 %v1532_v41 }
 0x38b   :  { %v1326_v24 = vpop.xlane.xlu0 %1325  ;;  %v6761_v31 = vpop.eup %3866  ;;  %3872 = vpow2.f32 %v1485_v21 }
 0x38c   :  { %v1375_v61 = vsel %vm1159_vm6, %v1228_v46, %v1326_v24  ;;  %1639 = vadd.xlane.f32.xlu0 %v6761_v31 }
 0x38d   :  { %v1407_v5 = vsub.f32 %v6103_v52, %v1375_v61  ;;  %v1328_v17 = vpop.xlane.xlu1 %1327  ;;  %v6767_v12 = vpop.eup %3868  ;;  %v1533_v52 = vsel %vm1159_vm6, %v6761_v31, 0.0 }
 0x38e   :  { %v1376_v6 = vsel %vm1159_vm6, %v1230_v1, %v1328_v17  ;;  %1641 = vadd.xlane.f32.xlu1 %v6767_v12  ;;  %v1534_v34 = vsel %vm1159_vm6, %v6767_v12, 0.0 }
 0x38f   :  { %v1441_v50 = vsel %vm6627_vm10, %v1407_v5, -1e+30  ;;  %v1408_v56 = vsub.f32 %v6113_v44, %v1376_v6  ;;  %v1232_v4 = vpop.xlane.xlu0 %1231 }
 0x390   :  { %v1487_v42 = vmul.f32 1.442695, %v1441_v50  ;;  %1575 = vadd.xlane.f32.xlu0 %v1533_v52 }
 0x391   :  { %v1442_v55 = vsel %vm6627_vm10, %v1408_v56, -1e+30  ;;  %v1234_v11 = vpop.xlane.xlu1 %1233 }
 0x392   :  { %3874 = vpow2.f32 %v1487_v42  ;;  %v1489_v37 = vmul.f32 1.442695, %v1442_v55  ;;  %1577 = vadd.xlane.f32.xlu1 %v1534_v34 }
 0x393   :  { %v1330_v44 = vpop.xlane.xlu0 %1329  ;;  %v6783_v29 = vpop.eup %3870 }
 0x394   :  { %3876 = vpow2.f32 %v1489_v37  ;;  %v1377_v27 = vsel %vm1159_vm6, %v1232_v4, %v1330_v44  ;;  %1643 = vadd.xlane.f32.xlu0 %v6783_v29 }
 0x395   :  { %v1409_v57 = vsub.f32 %v6158_v26, %v1377_v27  ;;  %v1332_v48 = vpop.xlane.xlu1 %1331  ;;  %v6789_v60 = vpop.eup %3872  ;;  %v1535_v26 = vsel %vm1159_vm6, %v6783_v29, 0.0 }
 0x396   :  { %v1378_v46 = vsel %vm1159_vm6, %v1234_v11, %v1332_v48  ;;  %1645 = vadd.xlane.f32.xlu1 %v6789_v60  ;;  %v1536_v61 = vsel %vm1159_vm6, %v6789_v60, 0.0 }
 0x397   :  { %v1443_v22 = vsel %vm6627_vm10, %v1409_v57, -1e+30  ;;  %v1410_v20 = vsub.f32 %v6168_v0, %v1378_v46  ;;  %v1236_v63 = vpop.xlane.xlu0 %1235 }
 0x398   :  { %v1491_v1 = vmul.f32 1.442695, %v1443_v22  ;;  %1579 = vadd.xlane.f32.xlu0 %v1535_v26 }
 0x399   :  { %v1444_v21 = vsel %vm6627_vm10, %v1410_v20, -1e+30  ;;  %v1238_v41 = vpop.xlane.xlu1 %1237 }
 0x39a   :  { %3878 = vpow2.f32 %v1491_v1  ;;  %v1493_v24 = vmul.f32 1.442695, %v1444_v21  ;;  %1581 = vadd.xlane.f32.xlu1 %v1536_v61 }
 0x39b   :  { %v1334_v0 = vpop.xlane.xlu0 %1333 }
 0x39c   :  { %v6805_v5 = vpop.eup %3874  ;;  %3880 = vpow2.f32 %v1493_v24  ;;  %v1379_v17 = vsel %vm1159_vm6, %v1236_v63, %v1334_v0 }
 0x39d   :  { %v1411_v6 = vsub.f32 %v6211_v32, %v1379_v17  ;;  %1647 = vadd.xlane.f32.xlu0 %v6805_v5  ;;  %v1336_v50 = vpop.xlane.xlu1 %1335  ;;  %v1537_v32 = vsel %vm1159_vm6, %v6805_v5, 0.0 }
 0x39e   :  { %v6811_v56 = vpop.eup %3876  ;;  %v1380_v4 = vsel %vm1159_vm6, %v1238_v41, %v1336_v50 }
 0x39f   :  { %v1445_v42 = vsel %vm6627_vm10, %v1411_v6, -1e+30  ;;  %v1412_v52 = vsub.f32 %v6221_v28, %v1380_v4  ;;  %v1240_v55 = vpop.xlane.xlu0 %1239  ;;  %1649 = vadd.xlane.f32.xlu1 %v6811_v56  ;;  %v1538_v27 = vsel %vm1159_vm6, %v6811_v56, 0.0 }
 0x3a0   :  { %v1495_v11 = vmul.f32 1.442695, %v1445_v42 }
 0x3a1   :  { %v1446_v37 = vsel %vm6627_vm10, %v1412_v52, -1e+30  ;;  %1583 = vadd.xlane.f32.xlu0 %v1537_v32  ;;  %v1242_v34 = vpop.xlane.xlu1 %1241 }
 0x3a2   :  { %3882 = vpow2.f32 %v1495_v11  ;;  %v1497_v44 = vmul.f32 1.442695, %v1446_v37 }
 0x3a3   :  { %v1338_v28 = vpop.xlane.xlu0 %1337  ;;  %1585 = vadd.xlane.f32.xlu1 %v1538_v27 }
 0x3a4   :  { %v6827_v57 = vpop.eup %3878  ;;  %3884 = vpow2.f32 %v1497_v44  ;;  %v1381_v48 = vsel %vm1159_vm6, %v1240_v55, %v1338_v28 }
 0x3a5   :  { %v1413_v46 = vsub.f32 %v6263_v2, %v1381_v48  ;;  %1651 = vadd.xlane.f32.xlu0 %v6827_v57  ;;  %v1340_v22 = vpop.xlane.xlu1 %1339  ;;  %v1539_v2 = vsel %vm1159_vm6, %v6827_v57, 0.0 }
 0x3a6   :  { %v6833_v20 = vpop.eup %3880  ;;  %v1382_v63 = vsel %vm1159_vm6, %v1242_v34, %v1340_v22 }
 0x3a7   :  { %v1447_v1 = vsel %vm6627_vm10, %v1413_v46, -1e+30  ;;  %v1414_v26 = vsub.f32 %v6273_v39, %v1382_v63  ;;  %v1244_v21 = vpop.xlane.xlu0 %1243  ;;  %1653 = vadd.xlane.f32.xlu1 %v6833_v20  ;;  %v1540_v17 = vsel %vm1159_vm6, %v6833_v20, 0.0 }
 0x3a8   :  { %v1499_v41 = vmul.f32 1.442695, %v1447_v1 }
 0x3a9   :  { %v1448_v24 = vsel %vm6627_vm10, %v1414_v26, -1e+30  ;;  %1587 = vadd.xlane.f32.xlu0 %v1539_v2 }
 0x3aa   :  { %v1246_v61 = vpop.xlane.xlu1 %1245  ;;  %3886 = vpow2.f32 %v1499_v41  ;;  %v1501_v0 = vmul.f32 1.442695, %v1448_v24 }
 0x3ab   :  { %1589 = vadd.xlane.f32.xlu1 %v1540_v17 }
 0x3ac   :  { %v1342_v39 = vpop.xlane.xlu0 %1341  ;;  %v6849_v6 = vpop.eup %3882  ;;  %3888 = vpow2.f32 %v1501_v0 }
 0x3ad   :  { %v1383_v50 = vsel %vm1159_vm6, %v1244_v21, %v1342_v39  ;;  %1655 = vadd.xlane.f32.xlu0 %v6849_v6 }
 0x3ae   :  { %v1415_v4 = vsub.f32 %v6315_v14, %v1383_v50  ;;  %v1344_v42 = vpop.xlane.xlu1 %1343  ;;  %v6855_v52 = vpop.eup %3884  ;;  %v1541_v14 = vsel %vm1159_vm6, %v6849_v6, 0.0 }
 0x3af   :  { %v1384_v55 = vsel %vm1159_vm6, %v1246_v61, %v1344_v42  ;;  %1657 = vadd.xlane.f32.xlu1 %v6855_v52  ;;  %v1542_v48 = vsel %vm1159_vm6, %v6855_v52, 0.0 }
 0x3b0   :  { %v1449_v11 = vsel %vm6627_vm10, %v1415_v4, -1e+30  ;;  %v1416_v32 = vsub.f32 %v6325_v10, %v1384_v55  ;;  %v1248_v37 = vpop.xlane.xlu0 %1247 }
 0x3b1   :  { %v1503_v34 = vmul.f32 1.442695, %v1449_v11  ;;  %1591 = vadd.xlane.f32.xlu0 %v1541_v14 }
 0x3b2   :  { %v1450_v44 = vsel %vm6627_vm10, %v1416_v32, -1e+30  ;;  %v1250_v27 = vpop.xlane.xlu1 %1249 }
 0x3b3   :  { %3890 = vpow2.f32 %v1503_v34  ;;  %v1505_v28 = vmul.f32 1.442695, %v1450_v44  ;;  %1593 = vadd.xlane.f32.xlu1 %v1542_v48 }
 0x3b4   :  { %v1346_v10 = vpop.xlane.xlu0 %1345  ;;  %v6871_v46 = vpop.eup %3886 }
 0x3b5   :  { %3892 = vpow2.f32 %v1505_v28  ;;  %v1385_v22 = vsel %vm1159_vm6, %v1248_v37, %v1346_v10  ;;  %1659 = vadd.xlane.f32.xlu0 %v6871_v46 }
 0x3b6   :  { %v1417_v63 = vsub.f32 %v6369_v43, %v1385_v22  ;;  %v1348_v1 = vpop.xlane.xlu1 %1347  ;;  %v6877_v26 = vpop.eup %3888  ;;  %v1543_v43 = vsel %vm1159_vm6, %v6871_v46, 0.0 }
 0x3b7   :  { %v1386_v21 = vsel %vm1159_vm6, %v1250_v27, %v1348_v1  ;;  %1661 = vadd.xlane.f32.xlu1 %v6877_v26  ;;  %v1544_v50 = vsel %vm1159_vm6, %v6877_v26, 0.0 }
 0x3b8   :  { %v1451_v41 = vsel %vm6627_vm10, %v1417_v63, -1e+30  ;;  %v1418_v2 = vsub.f32 %v6379_v25, %v1386_v21  ;;  %v1252_v24 = vpop.xlane.xlu0 %1251 }
 0x3b9   :  { %v1507_v61 = vmul.f32 1.442695, %v1451_v41  ;;  %1595 = vadd.xlane.f32.xlu0 %v1543_v43 }
 0x3ba   :  { %v1452_v0 = vsel %vm6627_vm10, %v1418_v2, -1e+30  ;;  %v1254_v17 = vpop.xlane.xlu1 %1253 }
 0x3bb   :  { %3894 = vpow2.f32 %v1507_v61  ;;  %v1509_v39 = vmul.f32 1.442695, %v1452_v0  ;;  %1597 = vadd.xlane.f32.xlu1 %v1544_v50 }
 0x3bc   :  { %v1350_v25 = vpop.xlane.xlu0 %1349 }
 0x3bd   :  { %v6893_v4 = vpop.eup %3890  ;;  %3896 = vpow2.f32 %v1509_v39  ;;  %v1387_v42 = vsel %vm1159_vm6, %v1252_v24, %v1350_v25 }
 0x3be   :  { %v1419_v55 = vsub.f32 %v6419_v9, %v1387_v42  ;;  %1663 = vadd.xlane.f32.xlu0 %v6893_v4  ;;  %v1352_v11 = vpop.xlane.xlu1 %1351  ;;  %v1545_v9 = vsel %vm1159_vm6, %v6893_v4, 0.0 }
 0x3bf   :  { %v6899_v32 = vpop.eup %3892  ;;  %v1388_v37 = vsel %vm1159_vm6, %v1254_v17, %v1352_v11 }
 0x3c0   :  { %v1453_v34 = vsel %vm6627_vm10, %v1419_v55, -1e+30  ;;  %v1420_v14 = vsub.f32 %v6431_v58, %v1388_v37  ;;  %v1256_v44 = vpop.xlane.xlu0 %1255  ;;  %1665 = vadd.xlane.f32.xlu1 %v6899_v32  ;;  %v1546_v22 = vsel %vm1159_vm6, %v6899_v32, 0.0 }
 0x3c1   :  { %v1511_v27 = vmul.f32 1.442695, %v1453_v34 }
 0x3c2   :  { %v1454_v28 = vsel %vm6627_vm10, %v1420_v14, -1e+30  ;;  %1599 = vadd.xlane.f32.xlu0 %v1545_v9 }
 0x3c3   :  { %v1258_v48 = vpop.xlane.xlu1 %1257  ;;  %3898 = vpow2.f32 %v1511_v27  ;;  %v1513_v10 = vmul.f32 1.442695, %v1454_v28 }
 0x3c4   :  { %1601 = vadd.xlane.f32.xlu1 %v1546_v22 }
 0x3c5   :  { %v1354_v58 = vpop.xlane.xlu0 %1353  ;;  %v6915_v63 = vpop.eup %3894  ;;  %3900 = vpow2.f32 %v1513_v10 }
 0x3c6   :  { %v1389_v1 = vsel %vm1159_vm6, %v1256_v44, %v1354_v58  ;;  %1667 = vadd.xlane.f32.xlu0 %v6915_v63 }
 0x3c7   :  { %v1421_v21 = vsub.f32 %v6476_v62, %v1389_v1  ;;  %v1356_v41 = vpop.xlane.xlu1 %1355  ;;  %v6921_v2 = vpop.eup %3896  ;;  %v1547_v62 = vsel %vm1159_vm6, %v6915_v63, 0.0 }
 0x3c8   :  { %v1390_v24 = vsel %vm1159_vm6, %v1258_v48, %v1356_v41  ;;  %1669 = vadd.xlane.f32.xlu1 %v6921_v2  ;;  %v1548_v42 = vsel %vm1159_vm6, %v6921_v2, 0.0 }
 0x3c9   :  { %v1455_v61 = vsel %vm6627_vm10, %v1421_v21, -1e+30  ;;  %v1422_v43 = vsub.f32 %v6488_v15, %v1390_v24  ;;  %v1260_v0 = vpop.xlane.xlu0 %1259 }
 0x3ca   :  { %v1515_v17 = vmul.f32 1.442695, %v1455_v61  ;;  %1603 = vadd.xlane.f32.xlu0 %v1547_v62 }
 0x3cb   :  { %v1456_v39 = vsel %vm6627_vm10, %v1422_v43, -1e+30  ;;  %v1262_v50 = vpop.xlane.xlu1 %1261 }
 0x3cc   :  { %3902 = vpow2.f32 %v1515_v17  ;;  %v1517_v25 = vmul.f32 1.442695, %v1456_v39  ;;  %1605 = vadd.xlane.f32.xlu1 %v1548_v42  ;;  %v7426_v39 = vld [vmem:[#allocation2_spill] sm:$0xff]  ;;  %v7427_v42 = vld [vmem:[#allocation3_spill] sm:$0xff] }
 0x3cd   :  { %v1358_v15 = vpop.xlane.xlu0 %1357  ;;  %v6937_v55 = vpop.eup %3898 }
 0x3ce   :  { %3904 = vpow2.f32 %v1517_v25  ;;  %v1391_v11 = vsel %vm1159_vm6, %v1260_v0, %v1358_v15  ;;  %1671 = vadd.xlane.f32.xlu0 %v6937_v55  ;;  %v1549_v48 = vsel %vm1159_vm6, %v6937_v55, 0.0 }
 0x3cf   :  { %v1423_v37 = vsub.f32 %v6532_v23, %v1391_v11  ;;  %v1360_v34 = vpop.xlane.xlu1 %1359  ;;  %v6943_v14 = vpop.eup %3900 }
 0x3d0   :  { %v1392_v44 = vsel %vm1159_vm6, %v1262_v50, %v1360_v34  ;;  %1673 = vadd.xlane.f32.xlu1 %v6943_v14  ;;  %v1550_v58 = vsel %vm1159_vm6, %v6943_v14, 0.0 }
 0x3d1   :  { %v1457_v27 = vsel %vm6627_vm10, %v1423_v37, -1e+30  ;;  %v1424_v9 = vsub.f32 %v6541_v8, %v1392_v44 }
 0x3d2   :  { %v1519_v28 = vmul.f32 1.442695, %v1457_v27  ;;  %1607 = vadd.xlane.f32.xlu0 %v1549_v48 }
 0x3d3   :  { %v1458_v10 = vsel %vm6627_vm10, %v1424_v9, -1e+30 }
 0x3d4   :  { %3906 = vpow2.f32 %v1519_v28  ;;  %v1521_v22 = vmul.f32 1.442695, %v1458_v10  ;;  %1609 = vadd.xlane.f32.xlu1 %v1550_v58 }
 0x3d6   :  { %v6959_v1 = vpop.eup %3902  ;;  %3908 = vpow2.f32 %v1521_v22 }
 0x3d7   :  { %1675 = vadd.xlane.f32.xlu0 %v6959_v1  ;;  %v1551_v3 = vsel %vm1159_vm6, %v6959_v1, 0.0 }
 0x3d8   :  { %v6962_v21 = vpop.eup %3904 }
 0x3d9   :  { %1677 = vadd.xlane.f32.xlu1 %v6962_v21  ;;  %v1552_v41 = vsel %vm1159_vm6, %v6962_v21, 0.0 }
 0x3db   :  { %1611 = vadd.xlane.f32.xlu0 %v1551_v3 }
 0x3dd   :  { %1613 = vadd.xlane.f32.xlu1 %v1552_v41 }
 0x3de   :  { %v6971_v24 = vpop.eup %3906 }
 0x3df   :  { %1679 = vadd.xlane.f32.xlu0 %v6971_v24  ;;  %v1553_v43 = vsel %vm1159_vm6, %v6971_v24, 0.0 }
 0x3e0   :  { %v6974_v61 = vpop.eup %3908 }
 0x3e1   :  { %1681 = vadd.xlane.f32.xlu1 %v6974_v61  ;;  %v1554_v0 = vsel %vm1159_vm6, %v6974_v61, 0.0 }
 0x3e3   :  { %1615 = vadd.xlane.f32.xlu0 %v1553_v43 }
 0x3e5   :  { %1617 = vadd.xlane.f32.xlu1 %v1554_v0 }
 0x3ee   :  { %v1620_v17 = vpop.xlane.xlu0 %1619 }
 0x3f1   :  { %v1622_v62 = vpop.xlane.xlu1 %1621 }
 0x3f2   :  { %v1556_v50 = vpop.xlane.xlu0 %1555 }
 0x3f3   :  { %v1683_v25 = vsub.f32 %v1620_v17, %v1556_v50  ;;  %3910 = vrcp.f32 %v1556_v50 }
 0x3f5   :  { %3912 = vrcp.f32 %v1683_v25  ;;  %v1558_v15 = vpop.xlane.xlu1 %1557 }
 0x3f6   :  { %2906 = vperm.xlu1 %3688, %v7426_v39   ;;  %v1624_v11 = vpop.xlane.xlu0 %1623  ;;  %v1684_v37 = vsub.f32 %v1622_v62, %v1558_v15  ;;  %3914 = vrcp.f32 %v1558_v15 }
 0x3f8   :  { %3916 = vrcp.f32 %v1684_v37 }
 0x3f9   :  { %2902 = vperm.xlu0 %3689, %v7427_v42  }
 0x3fa   :  { %v1626_v34 = vpop.xlane.xlu1 %1625  ;;  %v1560_v44 = vpop.xlane.xlu0 %1559 }
 0x3fb   :  { %v1685_v27 = vsub.f32 %v1624_v11, %v1560_v44  ;;  %3918 = vrcp.f32 %v1560_v44 }
 0x3fd   :  { %3920 = vrcp.f32 %v1685_v27  ;;  %v3911_v9 = vpop.eup %3910 }
 0x3fe   :  { %v1562_v28 = vpop.xlane.xlu1 %1561  ;;  %v1628_v48 = vpop.xlane.xlu0 %1627 }
 0x3ff   :  { %v3913_v10 = vpop.eup %3912  ;;  %v1686_v22 = vsub.f32 %v1626_v34, %v1562_v28  ;;  %3922 = vrcp.f32 %v1562_v28 }
 0x400   :  { %v1779_v58 = vsel %vm1159_vm6, %v3911_v9, %v3913_v10  ;;  %v3915_v41 = vpop.eup %3914 }
 0x401   :  { %v1811_v3 = vmul.f32 %v6651_v45, %v1779_v58  ;;  %3924 = vrcp.f32 %v1686_v22 }
 0x402   :  { %v1630_v43 = vpop.xlane.xlu1 %1629  ;;  %v1564_v0 = vpop.xlane.xlu0 %1563 }
 0x403   :  { %v3917_v17 = vpop.eup %3916  ;;  %1843 = vst [vmem:[%s7227_s8] sm:$0xff] %v1811_v3  ;;  %v1687_v62 = vsub.f32 %v1628_v48, %v1564_v0  ;;  %3926 = vrcp.f32 %v1564_v0 }
 0x404   :  { %v1780_v39 = vsel %vm1159_vm6, %v3915_v41, %v3917_v17 }
 0x405   :  { %v1812_v50 = vmul.f32 %v6659_v38, %v1780_v39  ;;  %3928 = vrcp.f32 %v1687_v62  ;;  %v3919_v25 = vpop.eup %3918 }
 0x406   :  { %v1566_v42 = vpop.xlane.xlu1 %1565 }
 0x407   :  { %v3921_v45 = vpop.eup %3920  ;;  %1844 = vst [vmem:[%s7227_s8 + $0x8] sm:$0xff] %v1812_v50  ;;  %v1688_v15 = vsub.f32 %v1630_v43, %v1566_v42  ;;  %3930 = vrcp.f32 %v1566_v42 }
 0x408   :  { %v1781_v11 = vsel %vm1159_vm6, %v3919_v25, %v3921_v45 }
 0x409   :  { %v1632_v37 = vpop.xlane.xlu0 %1631  ;;  %v1813_v34 = vmul.f32 %v6670_v54, %v1781_v11  ;;  %3932 = vrcp.f32 %v1688_v15  ;;  %v3923_v44 = vpop.eup %3922 }
 0x40b   :  { %v1634_v27 = vpop.xlane.xlu1 %1633  ;;  %v3925_v38 = vpop.eup %3924  ;;  %1845 = vst [vmem:[%s7227_s8 + $0x10] sm:$0xff] %v1813_v34 }
 0x40c   :  { %v1782_v9 = vsel %vm1159_vm6, %v3923_v44, %v3925_v38 }
 0x40d   :  { %v1568_v28 = vpop.xlane.xlu0 %1567  ;;  %v1814_v48 = vmul.f32 %v6679_v51, %v1782_v9  ;;  %v3927_v22 = vpop.eup %3926 }
 0x40e   :  { %v1689_v10 = vsub.f32 %v1632_v37, %v1568_v28  ;;  %3934 = vrcp.f32 %v1568_v28 }
 0x40f   :  { %v1570_v58 = vpop.xlane.xlu1 %1569  ;;  %v3929_v3 = vpop.eup %3928  ;;  %1846 = vst [vmem:[%s7227_s8 + $0x18] sm:$0xff] %v1814_v48 }
 0x410   :  { %3936 = vrcp.f32 %v1689_v10  ;;  %v1690_v54 = vsub.f32 %v1634_v27, %v1570_v58  ;;  %v1783_v41 = vsel %vm1159_vm6, %v3927_v22, %v3929_v3 }
 0x411   :  { %3938 = vrcp.f32 %v1570_v58  ;;  %v1636_v43 = vpop.xlane.xlu0 %1635  ;;  %v1815_v0 = vmul.f32 %v6692_v53, %v1783_v41  ;;  %v3931_v51 = vpop.eup %3930 }
 0x412   :  { %3940 = vrcp.f32 %v1690_v54 }
 0x413   :  { %v1638_v17 = vpop.xlane.xlu1 %1637  ;;  %v3933_v62 = vpop.eup %3932  ;;  %1847 = vst [vmem:[%s7227_s8 + $0x20] sm:$0xff] %v1815_v0 }
 0x414   :  { %v1784_v39 = vsel %vm1159_vm6, %v3931_v51, %v3933_v62 }
 0x415   :  { %v1572_v50 = vpop.xlane.xlu0 %1571  ;;  %v1816_v25 = vmul.f32 %v6701_v40, %v1784_v39 }
 0x416   :  { %v1691_v42 = vsub.f32 %v1636_v43, %v1572_v50  ;;  %3942 = vrcp.f32 %v1572_v50 }
 0x417   :  { %v1574_v45 = vpop.xlane.xlu1 %1573  ;;  %1848 = vst [vmem:[%s7227_s8 + $0x28] sm:$0xff] %v1816_v25 }
 0x418   :  { %3944 = vrcp.f32 %v1691_v42  ;;  %v1692_v53 = vsub.f32 %v1638_v17, %v1574_v45  ;;  %v3935_v15 = vpop.eup %3934 }
 0x419   :  { %3946 = vrcp.f32 %v1574_v45  ;;  %v1640_v11 = vpop.xlane.xlu0 %1639 }
 0x41a   :  { %v3937_v37 = vpop.eup %3936  ;;  %3948 = vrcp.f32 %v1692_v53 }
 0x41b   :  { %v3939_v34 = vpop.eup %3938  ;;  %v1785_v44 = vsel %vm1159_vm6, %v3935_v15, %v3937_v37  ;;  %v1642_v27 = vpop.xlane.xlu1 %1641 }
 0x41c   :  { %v3941_v40 = vpop.eup %3940  ;;  %v1817_v38 = vmul.f32 %v6717_v7, %v1785_v44 }
 0x41d   :  { %v1786_v9 = vsel %vm1159_vm6, %v3939_v34, %v3941_v40  ;;  %v1576_v28 = vpop.xlane.xlu0 %1575 }
 0x41e   :  { %1849 = vst [vmem:[%s7227_s8 + $0x30] sm:$0xff] %v1817_v38  ;;  %v1818_v48 = vmul.f32 %v6723_v16, %v1786_v9  ;;  %v1693_v10 = vsub.f32 %v1640_v11, %v1576_v28  ;;  %3950 = vrcp.f32 %v1576_v28 }
 0x41f   :  { %v1578_v22 = vpop.xlane.xlu1 %1577 }
 0x420   :  { %1850 = vst [vmem:[%s7227_s8 + $0x38] sm:$0xff] %v1818_v48  ;;  %3952 = vrcp.f32 %v1693_v10  ;;  %v1694_v58 = vsub.f32 %v1642_v27, %v1578_v22  ;;  %v3943_v7 = vpop.eup %3942 }
 0x421   :  { %3954 = vrcp.f32 %v1578_v22  ;;  %v1644_v3 = vpop.xlane.xlu0 %1643 }
 0x422   :  { %v3945_v54 = vpop.eup %3944  ;;  %3956 = vrcp.f32 %v1694_v58 }
 0x423   :  { %v3947_v41 = vpop.eup %3946  ;;  %v1787_v43 = vsel %vm1159_vm6, %v3943_v7, %v3945_v54  ;;  %v1646_v0 = vpop.xlane.xlu1 %1645 }
 0x424   :  { %v3949_v16 = vpop.eup %3948  ;;  %v1819_v51 = vmul.f32 %v6739_v59, %v1787_v43 }
 0x425   :  { %v1788_v17 = vsel %vm1159_vm6, %v3947_v41, %v3949_v16  ;;  %v1580_v62 = vpop.xlane.xlu0 %1579 }
 0x426   :  { %1851 = vst [vmem:[%s7227_s8 + $0x40] sm:$0xff] %v1819_v51  ;;  %v1820_v39 = vmul.f32 %v6745_v47, %v1788_v17  ;;  %v1695_v50 = vsub.f32 %v1644_v3, %v1580_v62  ;;  %3958 = vrcp.f32 %v1580_v62 }
 0x427   :  { %v1582_v25 = vpop.xlane.xlu1 %1581 }
 0x428   :  { %1852 = vst [vmem:[%s7227_s8 + $0x48] sm:$0xff] %v1820_v39  ;;  %3960 = vrcp.f32 %v1695_v50  ;;  %v1696_v42 = vsub.f32 %v1646_v0, %v1582_v25  ;;  %v3951_v59 = vpop.eup %3950 }
 0x429   :  { %3962 = vrcp.f32 %v1582_v25 }
 0x42a   :  { %v1648_v45 = vpop.xlane.xlu0 %1647  ;;  %v3953_v53 = vpop.eup %3952  ;;  %3964 = vrcp.f32 %v1696_v42 }
 0x42b   :  { %v3955_v15 = vpop.eup %3954  ;;  %v1789_v11 = vsel %vm1159_vm6, %v3951_v59, %v3953_v53 }
 0x42c   :  { %v1650_v37 = vpop.xlane.xlu1 %1649  ;;  %v3957_v47 = vpop.eup %3956  ;;  %v1821_v34 = vmul.f32 %v6761_v31, %v1789_v11 }
 0x42d   :  { %v1790_v44 = vsel %vm1159_vm6, %v3955_v15, %v3957_v47 }
 0x42e   :  { %v1584_v27 = vpop.xlane.xlu0 %1583  ;;  %1853 = vst [vmem:[%s7227_s8 + $0x50] sm:$0xff] %v1821_v34  ;;  %v1822_v40 = vmul.f32 %v6767_v12, %v1790_v44 }
 0x42f   :  { %v1697_v38 = vsub.f32 %v1648_v45, %v1584_v27  ;;  %3966 = vrcp.f32 %v1584_v27 }
 0x430   :  { %v1586_v9 = vpop.xlane.xlu1 %1585  ;;  %1854 = vst [vmem:[%s7227_s8 + $0x58] sm:$0xff] %v1822_v40  ;;  %v3959_v31 = vpop.eup %3958 }
 0x431   :  { %3968 = vrcp.f32 %v1697_v38  ;;  %v1698_v28 = vsub.f32 %v1650_v37, %v1586_v9 }
 0x432   :  { %3970 = vrcp.f32 %v1586_v9  ;;  %v1652_v48 = vpop.xlane.xlu0 %1651  ;;  %v3961_v10 = vpop.eup %3960 }
 0x433   :  { %3972 = vrcp.f32 %v1698_v28  ;;  %v3963_v22 = vpop.eup %3962  ;;  %v1791_v58 = vsel %vm1159_vm6, %v3959_v31, %v3961_v10 }
 0x434   :  { %v1654_v7 = vpop.xlane.xlu1 %1653  ;;  %v3965_v12 = vpop.eup %3964  ;;  %v1823_v3 = vmul.f32 %v6783_v29, %v1791_v58 }
 0x435   :  { %v1792_v54 = vsel %vm1159_vm6, %v3963_v22, %v3965_v12 }
 0x436   :  { %v1588_v41 = vpop.xlane.xlu0 %1587  ;;  %1855 = vst [vmem:[%s7227_s8 + $0x60] sm:$0xff] %v1823_v3  ;;  %v1824_v43 = vmul.f32 %v6789_v60, %v1792_v54 }
 0x437   :  { %v1699_v0 = vsub.f32 %v1652_v48, %v1588_v41  ;;  %3974 = vrcp.f32 %v1588_v41 }
 0x438   :  { %v1590_v16 = vpop.xlane.xlu1 %1589  ;;  %1856 = vst [vmem:[%s7227_s8 + $0x68] sm:$0xff] %v1824_v43 }
 0x439   :  { %3976 = vrcp.f32 %v1699_v0  ;;  %v1700_v51 = vsub.f32 %v1654_v7, %v1590_v16  ;;  %v3967_v29 = vpop.eup %3966 }
 0x43a   :  { %3978 = vrcp.f32 %v1590_v16  ;;  %v1656_v17 = vpop.xlane.xlu0 %1655 }
 0x43b   :  { %v3969_v62 = vpop.eup %3968  ;;  %3980 = vrcp.f32 %v1700_v51 }
 0x43c   :  { %v3971_v39 = vpop.eup %3970  ;;  %v1793_v50 = vsel %vm1159_vm6, %v3967_v29, %v3969_v62  ;;  %v1658_v25 = vpop.xlane.xlu1 %1657 }
 0x43d   :  { %v3973_v60 = vpop.eup %3972  ;;  %v1825_v42 = vmul.f32 %v6805_v5, %v1793_v50 }
 0x43e   :  { %v1794_v59 = vsel %vm1159_vm6, %v3971_v39, %v3973_v60  ;;  %v1592_v45 = vpop.xlane.xlu0 %1591 }
 0x43f   :  { %1857 = vst [vmem:[%s7227_s8 + $0x70] sm:$0xff] %v1825_v42  ;;  %v1826_v53 = vmul.f32 %v6811_v56, %v1794_v59  ;;  %v1701_v15 = vsub.f32 %v1656_v17, %v1592_v45  ;;  %3982 = vrcp.f32 %v1592_v45  ;;  %v1144_v59 = vadd.f32 %v6528_v30, %v5621_v36 }
 0x440   :  { %v1594_v11 = vpop.xlane.xlu1 %1593 }
 0x441   :  { %1858 = vst [vmem:[%s7227_s8 + $0x78] sm:$0xff] %v1826_v53  ;;  %3984 = vrcp.f32 %v1701_v15  ;;  %v1702_v37 = vsub.f32 %v1658_v25, %v1594_v11  ;;  %v3975_v5 = vpop.eup %3974  ;;  %v1148_v15 = vadd.f32 %v6543_v19, %v5621_v36 }
 0x442   :  { %3986 = vrcp.f32 %v1594_v11  ;;  %v1660_v47 = vpop.xlane.xlu0 %1659 }
 0x443   :  { %v3977_v34 = vpop.eup %3976  ;;  %3988 = vrcp.f32 %v1702_v37 }
 0x444   :  { %v3979_v44 = vpop.eup %3978  ;;  %v1795_v27 = vsel %vm1159_vm6, %v3975_v5, %v3977_v34  ;;  %v1662_v40 = vpop.xlane.xlu1 %1661  ;;  %v3100_v34 = vmul.f32 %v5643_v13, %v1148_v15 }
 0x445   :  { %v3981_v56 = vpop.eup %3980  ;;  %v1827_v38 = vmul.f32 %v6827_v57, %v1795_v27 }
 0x446   :  { %v1796_v9 = vsel %vm1159_vm6, %v3979_v44, %v3981_v56  ;;  %v1596_v28 = vpop.xlane.xlu0 %1595 }
 0x447   :  { %1859 = vst [vmem:[%s7227_s8 + $0x80] sm:$0xff] %v1827_v38  ;;  %v1828_v31 = vmul.f32 %v6833_v20, %v1796_v9  ;;  %v1703_v48 = vsub.f32 %v1660_v47, %v1596_v28  ;;  %3990 = vrcp.f32 %v1596_v28  ;;  %v3099_v47 = vmul.f32 %v5643_v13, %v1144_v59 }
 0x448   :  { %v1598_v10 = vpop.xlane.xlu1 %1597 }
 0x449   :  { %1860 = vst [vmem:[%s7227_s8 + $0x88] sm:$0xff] %v1828_v31  ;;  %3992 = vrcp.f32 %v1703_v48  ;;  %v1704_v22 = vsub.f32 %v1662_v40, %v1598_v10  ;;  %v3983_v57 = vpop.eup %3982  ;;  %v3131_v38 = vmin.f32 %v3099_v47, 4.1351666  ;;  %v3132_v31 = vmin.f32 %v3100_v34, 4.1351666  ;;  %v7429_v47 = vld [vmem:[#allocation13_spill] sm:$0xff] }
 0x44a   :  { %3994 = vrcp.f32 %v1598_v10 }
 0x44b   :  { %v1664_v58 = vpop.xlane.xlu0 %1663  ;;  %v3985_v7 = vpop.eup %3984  ;;  %3996 = vrcp.f32 %v1704_v22 }
 0x44c   :  { %v3987_v12 = vpop.eup %3986  ;;  %v1797_v3 = vsel %vm1159_vm6, %v3983_v57, %v3985_v7  ;;  %v3193_v57 = vmul.f32 1.442695, %v3131_v38  ;;  %v7432_v38 = vld [vmem:[#allocation45_spill] sm:$0xff] }
 0x44d   :  { %v1666_v54 = vpop.xlane.xlu1 %1665  ;;  %v3989_v20 = vpop.eup %3988  ;;  %v1829_v41 = vmul.f32 %v6849_v6, %v1797_v3 }
 0x44e   :  { %v1798_v43 = vsel %vm1159_vm6, %v3987_v12, %v3989_v20  ;;  %v3195_v12 = vmul.f32 1.442695, %v3132_v31 }
 0x44f   :  { %v1600_v0 = vpop.xlane.xlu0 %1599  ;;  %1861 = vst [vmem:[%s7227_s8 + $0x90] sm:$0xff] %v1829_v41  ;;  %v1830_v16 = vmul.f32 %v6855_v52, %v1798_v43 }
 0x450   :  { %v1705_v51 = vsub.f32 %v1664_v58, %v1600_v0  ;;  %3998 = vrcp.f32 %v1600_v0 }
 0x451   :  { %v1602_v29 = vpop.xlane.xlu1 %1601  ;;  %1862 = vst [vmem:[%s7227_s8 + $0x98] sm:$0xff] %v1830_v16  ;;  %v3991_v6 = vpop.eup %3990 }
 0x452   :  { %4000 = vrcp.f32 %v1705_v51  ;;  %v1706_v17 = vsub.f32 %v1666_v54, %v1602_v29 }
 0x453   :  { %4002 = vrcp.f32 %v1602_v29  ;;  %v1668_v62 = vpop.xlane.xlu0 %1667  ;;  %v3993_v39 = vpop.eup %3992 }
 0x454   :  { %4004 = vrcp.f32 %v1706_v17  ;;  %v3995_v50 = vpop.eup %3994  ;;  %v1799_v25 = vsel %vm1159_vm6, %v3991_v6, %v3993_v39 }
 0x455   :  { %v1670_v60 = vpop.xlane.xlu1 %1669  ;;  %v3997_v52 = vpop.eup %3996  ;;  %v1831_v42 = vmul.f32 %v6871_v46, %v1799_v25 }
 0x456   :  { %v1800_v45 = vsel %vm1159_vm6, %v3995_v50, %v3997_v52 }
 0x457   :  { %v1604_v53 = vpop.xlane.xlu0 %1603  ;;  %1863 = vst [vmem:[%s7227_s8 + $0xa0] sm:$0xff] %v1831_v42  ;;  %v1832_v11 = vmul.f32 %v6877_v26, %v1800_v45 }
 0x458   :  { %v1707_v37 = vsub.f32 %v1668_v62, %v1604_v53  ;;  %4006 = vrcp.f32 %v1604_v53 }
 0x459   :  { %v1606_v5 = vpop.xlane.xlu1 %1605  ;;  %1864 = vst [vmem:[%s7227_s8 + $0xa8] sm:$0xff] %v1832_v11 }
 0x45a   :  { %4008 = vrcp.f32 %v1707_v37  ;;  %v1708_v30 = vsub.f32 %v1670_v60, %v1606_v5  ;;  %v3999_v46 = vpop.eup %3998 }
 0x45b   :  { %4010 = vrcp.f32 %v1606_v5  ;;  %v1672_v36 = vpop.xlane.xlu0 %1671  ;;  %v3004_v5 = vmul.f32 %v5746_v35, %v6541_v8 }
 0x45c   :  { %v4001_v19 = vpop.eup %4000  ;;  %4012 = vrcp.f32 %v1708_v30 }
 0x45d   :  { %v4003_v44 = vpop.eup %4002  ;;  %v1801_v26 = vsel %vm1159_vm6, %v3999_v46, %v4001_v19  ;;  %v1674_v27 = vpop.xlane.xlu1 %1673  ;;  %v7428_v46 = vld [vmem:[#allocation22_spill] sm:$0xff] }
 0x45e   :  { %v4005_v40 = vpop.eup %4004  ;;  %v1833_v56 = vmul.f32 %v6893_v4, %v1801_v26  ;;  %v3003_v26 = vmul.f32 %v5746_v35, %v6532_v23 }
 0x45f   :  { %v1802_v9 = vsel %vm1159_vm6, %v4003_v44, %v4005_v40  ;;  %v1608_v28 = vpop.xlane.xlu0 %1607  ;;  %v7430_v40 = vld [vmem:[#allocation19_spill] sm:$0xff] }
 0x460   :  { %1865 = vst [vmem:[%s7227_s8 + $0xb0] sm:$0xff] %v1833_v56  ;;  %v1834_v13 = vmul.f32 %v6899_v32, %v1802_v9  ;;  %v1709_v48 = vsub.f32 %v1672_v36, %v1608_v28  ;;  %4014 = vrcp.f32 %v1608_v28  ;;  %v7431_v56 = vld [vmem:[#allocation10_spill] sm:$0xff]  ;;  %v2778_v9 = vsel %vm5377_vm2, %v7432_v38, 0.0 }
 0x461   :  { %v1610_v10 = vpop.xlane.xlu1 %1609  ;;  %v2585_v8 = vsel %vm5377_vm2, %v7431_v56, %v7430_v40 }
 0x462   :  { %1866 = vst [vmem:[%s7227_s8 + $0xb8] sm:$0xff] %v1834_v13  ;;  %4016 = vrcp.f32 %v1709_v48  ;;  %v1710_v4 = vsub.f32 %v1674_v27, %v1610_v10  ;;  %v4007_v22 = vpop.eup %4006 }
 0x463   :  { %4018 = vrcp.f32 %v1610_v10 }
 0x464   :  { %v1676_v58 = vpop.xlane.xlu0 %1675  ;;  %v4009_v7 = vpop.eup %4008  ;;  %4020 = vrcp.f32 %v1710_v4  ;;  %v7433_v4 = vld [vmem:[#allocation46_spill] sm:$0xff] }
 0x465   :  { %v4011_v3 = vpop.eup %4010  ;;  %v1803_v32 = vsel %vm1159_vm6, %v4007_v22, %v4009_v7  ;;  %4022 = vpow2.f32 %v3193_v57  ;;  %v2777_v22 = vsel %vm5377_vm2, %v7433_v4, 0.0 }
 0x466   :  { %v1678_v54 = vpop.xlane.xlu1 %1677  ;;  %v4013_v20 = vpop.eup %4012  ;;  %v1835_v41 = vmul.f32 %v6915_v63, %v1803_v32  ;;  %4024 = vpow2.f32 %v3195_v12  ;;  %v3035_v12 = vmul.f32 %v3003_v26, %v2585_v8 }
 0x467   :  { %v1804_v43 = vsel %vm1159_vm6, %v4011_v3, %v4013_v20 }
 0x468   :  { %v1612_v0 = vpop.xlane.xlu0 %1611  ;;  %1867 = vst [vmem:[%s7227_s8 + $0xc0] sm:$0xff] %v1835_v41  ;;  %v1836_v16 = vmul.f32 %v6921_v2, %v1804_v43 }
 0x469   :  { %v1711_v51 = vsub.f32 %v1676_v58, %v1612_v0  ;;  %4026 = vrcp.f32 %v1612_v0 }
 0x46a   :  { %v1614_v29 = vpop.xlane.xlu1 %1613  ;;  %1868 = vst [vmem:[%s7227_s8 + $0xc8] sm:$0xff] %v1836_v16  ;;  %v4015_v17 = vpop.eup %4014 }
 0x46b   :  { %4028 = vrcp.f32 %v1711_v51  ;;  %v1712_v63 = vsub.f32 %v1678_v54, %v1614_v29 }
 0x46c   :  { %4030 = vrcp.f32 %v1614_v29  ;;  %v1680_v6 = vpop.xlane.xlu0 %1679  ;;  %v4017_v62 = vpop.eup %4016 }
 0x46d   :  { %4032 = vrcp.f32 %v1712_v63  ;;  %v4019_v39 = vpop.eup %4018  ;;  %v1805_v50 = vsel %vm1159_vm6, %v4015_v17, %v4017_v62 }
 0x46e   :  { %v1682_v25 = vpop.xlane.xlu1 %1681  ;;  %v4021_v2 = vpop.eup %4020  ;;  %v1837_v60 = vmul.f32 %v6937_v55, %v1805_v50 }
 0x46f   :  { %v1806_v52 = vsel %vm1159_vm6, %v4019_v39, %v4021_v2  ;;  %v4023_v53 = vpop.eup %4022 }
 0x470   :  { %v1616_v42 = vpop.xlane.xlu0 %1615  ;;  %1869 = vst [vmem:[%s7227_s8 + $0xd0] sm:$0xff] %v1837_v60  ;;  %v1838_v59 = vmul.f32 %v6943_v14, %v1806_v52  ;;  %v4025_v11 = vpop.eup %4024  ;;  %v2586_v14 = vsel %vm5377_vm2, %v7429_v47, %v7428_v46  ;;  %v3227_v23 = vmul.f32 %v4023_v53, %v2585_v8 }
 0x471   :  { %v1713_v45 = vsub.f32 %v1680_v6, %v1616_v42  ;;  %4034 = vrcp.f32 %v1616_v42  ;;  %v3228_v34 = vmul.f32 %v4025_v11, %v2586_v14  ;;  %v3036_v48 = vmul.f32 %v3004_v5, %v2586_v14 }
 0x472   :  { %v1618_v15 = vpop.xlane.xlu1 %1617  ;;  %1870 = vst [vmem:[%s7227_s8 + $0xd8] sm:$0xff] %v1838_v59  ;;  %v3259_v20 = vmul.f32 0.5, %v3227_v23 }
 0x473   :  { %4036 = vrcp.f32 %v1713_v45  ;;  %v1714_v55 = vsub.f32 %v1682_v25, %v1618_v15  ;;  %v4027_v37 = vpop.eup %4026  ;;  %v3260_v58 = vmul.f32 0.5, %v3228_v34 }
 0x474   :  { %4038 = vrcp.f32 %v1618_v15 }
 0x475   :  { %v4029_v30 = vpop.eup %4028  ;;  %4040 = vrcp.f32 %v1714_v55 }
 0x476   :  { %v4031_v36 = vpop.eup %4030  ;;  %v1807_v19 = vsel %vm1159_vm6, %v4027_v37, %v4029_v30  ;;  %v2907_v44 = vpop.permute.xlu1 %2906 }
 0x477   :  { %v4033_v27 = vpop.eup %4032  ;;  %v1839_v28 = vmul.f32 %v6959_v1, %v1807_v19  ;;  %v2940_v31 = vsel %vm5594_vm5, %v2907_v44, 0.0 }
 0x478   :  { %v1808_v13 = vsel %vm1159_vm6, %v4031_v36, %v4033_v27  ;;  %v2972_v35 = vadd.f32 %v2940_v31, %v2778_v9  ;;  %v2903_v10 = vpop.permute.xlu0 %2902 }
 0x479   :  { %1871 = vst [vmem:[%s7227_s8 + $0xe0] sm:$0xff] %v1839_v28  ;;  %v1840_v1 = vmul.f32 %v6962_v21, %v1808_v13  ;;  %v2939_v57 = vsel %vm5594_vm5, %v2903_v10, 0.0 }
 0x47a   :  { %v3068_v7 = vadd.f32 %v3036_v48, %v2972_v35  ;;  %v2971_v3 = vadd.f32 %v2939_v57, %v2777_v22 }
 0x47b   :  { %1872 = vst [vmem:[%s7227_s8 + $0xe8] sm:$0xff] %v1840_v1  ;;  %v4035_v32 = vpop.eup %4034 }
 0x47c   :  { %v3292_v33 = vsub.f32 %v3068_v7, %v3260_v58  ;;  %v3356_v54 = vadd.f32 %v3260_v58, %v3068_v7  ;;  %v3067_v41 = vadd.f32 %v3035_v12, %v2971_v3 }
 0x47d   :  { %v4037_v43 = vpop.eup %4036 }
 0x47e   :  { %v4039_v0 = vpop.eup %4038  ;;  %v1809_v21 = vsel %vm1159_vm6, %v4035_v32, %v4037_v43  ;;  %3324 = vst [vmem:[%s7225_s9 + $0xf8] sm:$0xff] %v3292_v33  ;;  %3388 = vst [vmem:[%s7226_s10 + $0xf8] sm:$0xff] %v3356_v54  ;;  %v3291_v18 = vsub.f32 %v3067_v41, %v3259_v20  ;;  %v3355_v16 = vadd.f32 %v3259_v20, %v3067_v41 }
 0x47f   :  { %v4041_v51 = vpop.eup %4040  ;;  %v1841_v29 = vmul.f32 %v6971_v24, %v1809_v21 }
 0x480   :  { %v1810_v63 = vsel %vm1159_vm6, %v4039_v0, %v4041_v51  ;;  %3323 = vst [vmem:[%s7225_s9 + $0xf0] sm:$0xff] %v3291_v18  ;;  %3387 = vst [vmem:[%s7226_s10 + $0xf0] sm:$0xff] %v3355_v16 }
 0x481   :  { %1873 = vst [vmem:[%s7227_s8 + $0xf0] sm:$0xff] %v1841_v29  ;;  %v1842_v17 = vmul.f32 %v6974_v61, %v1810_v63 }
 0x483   :  { %1874 = vst [vmem:[%s7227_s8 + $0xf8] sm:$0xff] %v1842_v17 }

// kernel: tile.19
= control target key start
LH: loop header
LB: loop body
LE: loop exit
PB: predicated region body
PF: predicated region fallthrough
CT: control target
= control target key end

     0   :  { %s67_s10 = smov 21   ;;  %s68_s11 = smov 15   ;;  %vm3_vm0 = vcmask 23552   ;;  %vm9_vm1 = vcmask 195752   ;;  %vm15_vm2 = vcmask 171152   ;;  %vm21_vm3 = vcmask 146552   ;;  %s111_s0 = inlined_call_operand.vmem [shape: s32[8,3], index: 0, kind: input, shape index: {}]   ;;  %s112_s1 = inlined_call_operand.vmem [shape: s32[24], index: 1, kind: output, shape index: {}]  }
   0x1   :  { %v53_v0 = vld [vmem:[%s111_s0 + $0x7] sm:$0x1]   ;;  %v55_v1 = vld [vmem:[%s111_s0 + $0x5] sm:$0x1]   ;;  %v54_v2 = vld [vmem:[%s111_s0 + $0x6] sm:$0x1]  }
   0x2   :  { %7 = vrot.lane.b32.xlu0 %v53_v0, %s67_s10  ;;  %19 = vrot.lane.b32.xlu1 %v55_v1, %s68_s11  ;;  %v56_v3 = vld [vmem:[%s111_s0 + $0x4] sm:$0x1]   ;;  %v2_v4 = vld [vmem:[%s111_s0] sm:$0x1]   ;;  %s69_s18 = smov 18   ;;  %s70_s19 = smov 12  }
   0x3   :  { %4 = vst.msk [vmem:[#allocation0] sm:$0x1] %vm3_vm0, %v2_v4   ;;  %v57_v5 = vld [vmem:[%s111_s0 + $0x3] sm:$0x1]   ;;  %v58_v6 = vld [vmem:[%s111_s0 + $0x2] sm:$0x1]  }
   0x4   :  { %s71_s24 = smov 9   ;;  %s72_s25 = smov 6   ;;  %v59_v7 = vld [vmem:[%s111_s0 + $0x1] sm:$0x1]   ;;  %vm27_vm4 = vcmask 121952   ;;  %vm33_vm5 = vcmask 97352  }
   0x5   :  { %s73_s0 = smov 3   ;;  %vm39_vm6 = vcmask 72752   ;;  %vm45_vm7 = vcmask 48152  }
   0x6   :  { %13 = vrot.lane.b32.xlu0 %v54_v2, %s69_s18  ;;  %25 = vrot.lane.b32.xlu1 %v56_v3, %s70_s19 }
   0xa   :  { %31 = vrot.lane.b32.xlu0 %v57_v5, %s71_s24  ;;  %37 = vrot.lane.b32.xlu1 %v58_v6, %s72_s25 }
   0xe   :  { %43 = vrot.lane.b32.xlu0 %v59_v7, %s73_s0 }
  0x74   :  { %v8_v8 = vpop.permute.xlu0 %7   ;;  %v20_v9 = vpop.permute.xlu1 %19  }
  0x75   :  { %10 = vst.msk [vmem:[#allocation0] sm:$0x1] %vm9_vm1, %v8_v8  }
  0x78   :  { %v14_v10 = vpop.permute.xlu0 %13   ;;  %v26_v11 = vpop.permute.xlu1 %25  }
  0x79   :  { %16 = vst.msk [vmem:[#allocation0] sm:$0x1] %vm15_vm2, %v14_v10  }
  0x7a   :  { %22 = vst.msk [vmem:[#allocation0] sm:$0x1] %vm21_vm3, %v20_v9  }
  0x7b   :  { %28 = vst.msk [vmem:[#allocation0] sm:$0x1] %vm27_vm4, %v26_v11  }
  0x7c   :  { %v32_v12 = vpop.permute.xlu0 %31   ;;  %v38_v13 = vpop.permute.xlu1 %37  }
  0x7d   :  { %34 = vst.msk [vmem:[#allocation0] sm:$0x1] %vm33_vm5, %v32_v12  }
  0x7e   :  { %40 = vst.msk [vmem:[#allocation0] sm:$0x1] %vm39_vm6, %v38_v13  }
  0x80   :  { %v44_v14 = vpop.permute.xlu0 %43  }
  0x81   :  { %46 = vst.msk [vmem:[#allocation0] sm:$0x1] %vm45_vm7, %v44_v14  }
  0x88   :  { %v50_v15 = vld [vmem:[#allocation0] sm:$0x1] }
  0x89   :  { %52 = vst [vmem:[%s112_s1] sm:$0x1] %v50_v15 }

</bundles_post_ra>
